<compile_context>
chip_gen: v6e
topology: v6e:2x2x1
jax: 0.10.0
libtpu: 0.0.40
codegen_flags: <defaults>
</compile_context>

<pallas_src>
import functools

import numpy as np
import jax
import jax.numpy as jnp
from jax import lax
from jax.experimental import pallas as pl
from jax.experimental.pallas import tpu as pltpu

# ----------------------------- configuration --------------------------------
# Small-but-faithful Unet hyperparameters (constructor args of the torch class).
IN_CHANNELS = 1
N_CLASSES = 1
DEPTH = 3
WF = 3
TF = 3
IN_KERNEL, IN_PAD = 3, 1
OUT_KERNEL, OUT_PAD = 3, 1
DOWN_KERNEL = [2, 2]
N_PROTEIN = 6

_SUBLANE = 8


def _level_dims(H, W):
    dims = [(H, W)]
    for i in range(DEPTH - 1):
        k = DOWN_KERNEL[0] if i == 0 else DOWN_KERNEL[1]
        dims.append((dims[-1][0] // k, dims[-1][1] // k))
    return dims


# ------------------------- in-kernel building blocks -------------------------
def _mm(a, b, dtype):
    """MXU matmul with f32 accumulation; optionally bf16 operands (v6e/v7x)."""
    if dtype != jnp.float32:
        a = a.astype(dtype)
        b = b.astype(dtype)
    return jnp.dot(a, b, preferred_element_type=jnp.float32)


def _shift_lane(x, s):
    """y[:, i] = x[:, i + s] where in range, 0 elsewhere.  x: (C, N), s static."""
    C, N = x.shape
    if s == 0:
        return x
    if abs(s) >= N:
        return jnp.zeros_like(x)
    z = jnp.zeros((C, abs(s)), x.dtype)
    if s > 0:
        return jnp.concatenate([x[:, s:], z], axis=1)
    return jnp.concatenate([z, x[:, :N + s]], axis=1)


def _conv_same(x, w, b, H, W, K, relu, mxu_dtype):
    """'Same' KxK conv (odd K, pad (K-1)//2) as ONE im2col MXU matmul.

    x: (Cin, H*W) activation (channels on sublanes, flat spatial on lanes).
    w: (Cout, K*K*Cin) torch weight rearranged tap-major.   b: (Cout, 1).
    """
    Cin, N = x.shape
    P = (K - 1) // 2
    if (W & (W - 1)) == 0:
        col = lax.broadcasted_iota(jnp.int32, (1, N), 1) & (W - 1)
    else:
        col = lax.broadcasted_iota(jnp.int32, (1, N), 1) % W
    pieces = []
    for dy in range(-P, K - P):
        for dx in range(-P, K - P):
            t = _shift_lane(x, dy * W + dx)        # row over/underflow -> zeros
            if dx != 0:                            # column out-of-range -> zeros
                valid = jnp.logical_and(col + dx >= 0, col + dx <= W - 1)
                t = jnp.where(valid, t, 0.0)
            pieces.append(t)
    patches = pieces[0] if len(pieces) == 1 else jnp.concatenate(pieces, axis=0)
    y = _mm(w, patches, mxu_dtype) + b
    return jnp.maximum(y, 0.0) if relu else y


def _maxpool(x, W, k, select):
    """Non-overlapping k x k max pool (F.max_pool2d(x, k)) on the flat layout.
    Window max = shift+max on the VPU; stride-k compaction = 0/1 select matmul."""
    m = x
    for d in range(1, k):
        m = jnp.maximum(m, _shift_lane(x, d))
    r = m
    for d in range(1, k):
        r = jnp.maximum(r, _shift_lane(m, d * W))
    return _mm(r, select, jnp.float32)             # exact 0/1 selection


def _conv_transpose(x, wT, b, scat_ref, mxu_dtype):
    """ConvTranspose2d with stride == kernel_size on the flat layout.
    x: (Cin, N); wT: (k*k*Cout, Cin); b: (Cout, 1); scat_ref: (k*k, N, k*k*N)."""
    Cout = b.shape[0]
    z = _mm(wT, x, mxu_dtype)                      # all k*k sub-pixel results
    n_out = scat_ref.shape[-1]
    out = jnp.zeros((Cout, n_out), jnp.float32)
    for ab in range(scat_ref.shape[0]):            # scatter each sub-pixel in place
        out = out + _mm(z[ab * Cout:(ab + 1) * Cout, :], scat_ref[ab], jnp.float32)
    return out + b


# ------------------------------ fused kernel ---------------------------------
def _unet_kernel(*refs, H, W, mxu_dtype):
    """Whole Unet forward for one batch element; everything stays in VMEM/vregs."""
    x_ref, theta_ref, o_ref = refs[0], refs[1], refs[-1]
    wrefs = refs[2:-1]
    cur = [0]

    def nxt():
        r = wrefs[cur[0]]
        cur[0] += 1
        return r

    dims = _level_dims(H, W)
    down_w = [(nxt(), nxt()) for _ in range(DEPTH)]
    pool_s = [nxt() for _ in range(DEPTH - 1)]
    up_w = [(nxt(), nxt(), nxt(), nxt(), nxt()) for _ in range(DEPTH - 1)]
    last_w, last_b = nxt(), nxt()

    x = x_ref[0]                                   # (Cin_pad, H*W), f32
    bridges = []

    # ------------------------------ down path -------------------------------
    for i in range(DEPTH):
        h, w = dims[i]
        wd, bd = down_w[i]
        x = _conv_same(x, wd[...], bd[...], h, w, IN_KERNEL, True, mxu_dtype)
        if i != DEPTH - 1:
            bridges.append(x)
            k = DOWN_KERNEL[0] if i == 0 else DOWN_KERNEL[1]
            x = _maxpool(x, w, k, pool_s[i][...])

    # --------------------- bottleneck: learned theta concat -----------------
    hb, wb = dims[-1]
    theta = theta_ref[0]                           # (2**TF, 1)
    x = jnp.concatenate(
        [x, jnp.broadcast_to(theta, (theta.shape[0], hb * wb))], axis=0)

    # ------------------------------- up path --------------------------------
    for j in range(DEPTH - 1):
        upw, upb, scat, cw, cb = up_w[j]
        upx = _conv_transpose(x, upw[...], upb[...], scat, mxu_dtype)
        # center_crop is the identity here (bridge spatial == upsampled spatial).
        # TODO(synk): emit a crop-selection matmul if pooling ever truncates.
        x = jnp.concatenate([upx, bridges[-j - 1]], axis=0)
        ho, wo = dims[DEPTH - 2 - j]
        x = _conv_same(x, cw[...], cb[...], ho, wo, OUT_KERNEL, True, mxu_dtype)

    # ------------------------------ 1x1 head ---------------------------------
    y = _mm(last_w[...], x, mxu_dtype) + last_b[...]
    o_ref[0] = y.astype(o_ref.dtype)


# ----------------------- host-side operand preparation -----------------------
def _rearrange_conv_w(w):
    """torch Conv2d (Cout, Cin, K, K) -> (Cout, K*K*Cin), tap-major."""
    Cout, Cin, K, _ = w.shape
    return jnp.transpose(w, (0, 2, 3, 1)).reshape(Cout, K * K * Cin)


def _rearrange_convT_w(w):
    """torch ConvTranspose2d (Cin, Cout, k, k) -> (k*k*Cout, Cin)."""
    Cin, Cout, k, _ = w.shape
    return jnp.transpose(w, (2, 3, 1, 0)).reshape(k * k * Cout, Cin)


def _pool_select_matrix(H, W, k):
    Ho, Wo = H // k, W // k
    S = np.zeros((H * W, Ho * Wo), np.float32)
    for oy in range(Ho):
        for ox in range(Wo):
            S[(k * oy) * W + k * ox, oy * Wo + ox] = 1.0
    return jnp.asarray(S)


def _upsample_scatter_matrix(H, W, k):
    N, No = H * W, H * W * k * k
    E = np.zeros((k * k, N, No), np.float32)
    for y in range(H):
        for x in range(W):
            for a in range(k):
                for b in range(k):
                    E[a * k + b, y * W + x, (k * y + a) * (k * W) + (k * x + b)] = 1.0
    return jnp.asarray(E)


def _pack_operands(params, H, W, cin_pad):
    dims = _level_dims(H, W)
    ops = []
    for i, layer in enumerate(params["down"]):
        w = layer["w"]
        if i == 0 and w.shape[1] < cin_pad:        # pad Cin to a sublane multiple
            w = jnp.pad(w, ((0, 0), (0, cin_pad - w.shape[1]), (0, 0), (0, 0)))
        ops.append(_rearrange_conv_w(w))
        ops.append(layer["b"].reshape(-1, 1))
    for i in range(DEPTH - 1):
        k = DOWN_KERNEL[0] if i == 0 else DOWN_KERNEL[1]
        ops.append(_pool_select_matrix(dims[i][0], dims[i][1], k))
    for j, up in enumerate(params["up"]):
        hin, win = dims[DEPTH - 1 - j]
        ops.append(_rearrange_convT_w(up["up_w"]))
        ops.append(up["up_b"].reshape(-1, 1))
        ops.append(_upsample_scatter_matrix(hin, win, up["up_k"]))
        ops.append(_rearrange_conv_w(up["conv_w"]))
        ops.append(up["conv_b"].reshape(-1, 1))
    ops.append(_rearrange_conv_w(params["last_w"]))
    ops.append(params["last_b"].reshape(-1, 1))
    return ops


def _cost_estimate(B, H, W, cin_pad, x, theta, weights):
    dims = _level_dims(H, W)
    flops = 0
    prev = cin_pad
    for i in range(DEPTH):
        h, w = dims[i]
        cout = 2 ** (WF + i)
        flops += 2 * (IN_KERNEL ** 2) * prev * cout * h * w
        if i != DEPTH - 1:
            hn, wn = dims[i + 1]
            flops += 2 * cout * h * w * hn * wn                   # pool select dot
        prev = cout
    prev += 2 ** TF
    for j in range(DEPTH - 1):
        i_t = DEPTH - 2 - j
        cout = 2 ** (WF + i_t)
        hin, win = dims[DEPTH - 1 - j]
        ho, wo = dims[i_t]
        k = DOWN_KERNEL[0] if i_t == 0 else DOWN_KERNEL[1]
        flops += 2 * prev * (k * k * cout) * hin * win            # convT mix
        flops += 2 * (k * k) * cout * hin * win * ho * wo         # scatter dots
        flops += 2 * (OUT_KERNEL ** 2) * (2 * cout) * cout * ho * wo
        prev = cout
    flops += 2 * prev * N_CLASSES * H * W
    flops *= B
    bytes_accessed = (x.size * x.dtype.itemsize +
                      theta.size * theta.dtype.itemsize +
                      sum(w.size * w.dtype.itemsize for w in weights) +
                      B * N_CLASSES * H * W * 4)
    return pl.CostEstimate(flops=int(flops), transcendentals=0,
                           bytes_accessed=int(bytes_accessed))


def unet_forward(params, x_nchw, protein, *, mxu_dtype=jnp.float32):
    """Fused Unet forward.  x_nchw: (B, Cin, H, W) f32; protein: (B,) int."""
    assert IN_PAD == (IN_KERNEL - 1) // 2 and OUT_PAD == (OUT_KERNEL - 1) // 2
    B, Cin, H, W = x_nchw.shape
    N0 = H * W
    dims = _level_dims(H, W)
    for i in range(DEPTH - 1):
        k = DOWN_KERNEL[0] if i == 0 else DOWN_KERNEL[1]
        assert dims[i] == (dims[i + 1][0] * k, dims[i + 1][1] * k)

    cin_pad = max(_SUBLANE, -(-Cin // _SUBLANE) * _SUBLANE)
    x = x_nchw.reshape(B, Cin, N0).astype(jnp.float32)
    if cin_pad != Cin:
        x = jnp.concatenate(
            [x, jnp.zeros((B, cin_pad - Cin, N0), jnp.float32)], axis=1)
    # is_gan = False path: theta = thetas[protein, :]
    theta = params["thetas"][protein][:, :, None].astype(jnp.float32)  # (B, 2**TF, 1)
    weights = _pack_operands(params, H, W, cin_pad)

    in_specs = [
        pl.BlockSpec((1, cin_pad, N0), lambda i: (i, 0, 0)),
        pl.BlockSpec((1, theta.shape[1], 1), lambda i: (i, 0, 0)),
    ]
    for wgt in weights:                          # whole weights resident in VMEM
        in_specs.append(pl.BlockSpec(wgt.shape, lambda i, nd=wgt.ndim: (0,) * nd))

    out = pl.pallas_call(
        functools.partial(_unet_kernel, H=H, W=W, mxu_dtype=mxu_dtype),
        out_shape=jax.ShapeDtypeStruct((B, N_CLASSES, N0), jnp.float32),
        grid=(B,),
        in_specs=in_specs,
        out_specs=pl.BlockSpec((1, N_CLASSES, N0), lambda i: (i, 0, 0)),
        compiler_params=pltpu.CompilerParams(
            dimension_semantics=("parallel",)),    # batch shards across v7x cores
        cost_estimate=_cost_estimate(B, H, W, cin_pad, x, theta, weights),
    )(x, theta, *weights)
    return out.reshape(B, N_CLASSES, H, W)


# ----------------------------- parameter init --------------------------------
def init_unet_params(key):
    keys = iter(jax.random.split(key, 64))

    def nrm(shape, scale=0.1):
        return (scale * jax.random.normal(next(keys), shape)).astype(jnp.float32)

    params = {}
    down = []
    prev = IN_CHANNELS
    for i in range(DEPTH):
        out_ch = 2 ** (WF + i)
        down.append({"w": nrm((out_ch, prev, IN_KERNEL, IN_KERNEL)),
                     "b": nrm((out_ch,))})
        prev = out_ch
    params["down"] = down

    params["thetas"] = (jax.random.normal(next(keys), (N_PROTEIN, 2 ** TF))
                        * (1.0 / 2 ** (TF - 1))).astype(jnp.float32)
    prev += 2 ** TF

    up = []
    for i in reversed(range(DEPTH - 1)):
        out_ch = 2 ** (WF + i)
        in_conv = prev - 2 ** TF if i == DEPTH - 2 else prev   # add_label=False
        up_k = DOWN_KERNEL[0] if i == 0 else DOWN_KERNEL[1]
        up.append({"up_w": nrm((prev, out_ch, up_k, up_k)),
                   "up_b": nrm((out_ch,)),
                   "conv_w": nrm((out_ch, in_conv, OUT_KERNEL, OUT_KERNEL)),
                   "conv_b": nrm((out_ch,)),
                   "up_k": up_k})
        prev = out_ch
    params["up"] = up
    params["last_w"] = nrm((N_CLASSES, prev, 1, 1))
    params["last_b"] = nrm((N_CLASSES,))
    return params


# ------------------------- pure-JAX reference ---------------------------------
def ref_forward(params, x_nchw, protein):
    hi = lax.Precision.HIGHEST
    x = jnp.transpose(x_nchw, (0, 2, 3, 1))

    def conv(x, w, b, pad, relu):
        y = lax.conv_general_dilated(
            x, jnp.transpose(w, (2, 3, 1, 0)), (1, 1),
            [(pad, pad), (pad, pad)],
            dimension_numbers=("NHWC", "HWIO", "NHWC"), precision=hi)
        y = y + b[None, None, None, :]
        return jnp.maximum(y, 0.0) if relu else y

    def pool(x, k):
        return lax.reduce_window(x, -jnp.inf, lax.max,
                                 (1, k, k, 1), (1, k, k, 1), "VALID")

    def convT(x, w, b, k):
        B, H, W, _ = x.shape
        Cout = w.shape[1]
        y = jnp.einsum("bhwc,coyx->bhywxo", x, w,
                       precision=hi).reshape(B, H * k, W * k, Cout)
        return y + b[None, None, None, :]

    blocks = []
    for i, layer in enumerate(params["down"]):
        x = conv(x, layer["w"], layer["b"], IN_PAD, True)
        if i != DEPTH - 1:
            blocks.append(x)
            x = pool(x, DOWN_KERNEL[0] if i == 0 else DOWN_KERNEL[1])
    theta = params["thetas"][protein, :]
    B, Hb, Wb, _ = x.shape
    x = jnp.concatenate(
        [x, jnp.broadcast_to(theta[:, None, None, :], (B, Hb, Wb, theta.shape[-1]))],
        axis=-1)
    for i, up in enumerate(params["up"]):
        upx = convT(x, up["up_w"], up["up_b"], up["up_k"])
        x = jnp.concatenate([upx, blocks[-i - 1]], axis=-1)
        x = conv(x, up["conv_w"], up["conv_b"], OUT_PAD, True)
    x = conv(x, params["last_w"], params["last_b"], 0, False)
    return jnp.transpose(x, (0, 3, 1, 2))


# ----------------------------------- main -------------------------------------
if __name__ == "__main__":
    key = jax.random.PRNGKey(0)
    kp, kx, kpr = jax.random.split(key, 3)
    params = init_unet_params(kp)
    x = jax.random.normal(kx, (2, IN_CHANNELS, 16, 16), jnp.float32)
    protein = jax.random.randint(kpr, (2,), 0, N_PROTEIN)

    ref = jax.block_until_ready(ref_forward(params, x, protein))

    # f32 MXU operands: tight check (tolerance covers the lowest-precision legal
    # MXU lowering of f32 matmuls; any structural bug would err at O(0.1)).
    out = jax.block_until_ready(unet_forward(params, x, protein))
    assert out.shape == (2, N_CLASSES, 16, 16), out.shape
    err = float(jnp.max(jnp.abs(out - ref)))
    assert err < 5e-3, f"f32 kernel mismatch vs reference: {err}"

    # bf16 MXU operands (v6e/v7x fast path), f32 accumulation + f32 epilogues.
    out_bf16 = jax.block_until_ready(
        unet_forward(params, x, protein, mxu_dtype=jnp.bfloat16))
    err_bf16 = float(jnp.max(jnp.abs(out_bf16 - ref)))
    assert err_bf16 < 3e-2, f"bf16-MXU kernel mismatch vs reference: {err_bf16}"

    print("KERNEL_OK")
</pallas_src>

<mosaic_0001>
module attributes {stable_mosaic.version = 11 : i64} {
  func.func @_unet_kernel(%arg0: i32, %arg1: memref<1x8x256xf32, #tpu.memory_space<vmem>>, %arg2: memref<1x8x1xf32, #tpu.memory_space<vmem>>, %arg3: memref<8x72xf32, #tpu.memory_space<vmem>>, %arg4: memref<8x1xf32, #tpu.memory_space<vmem>>, %arg5: memref<16x72xf32, #tpu.memory_space<vmem>>, %arg6: memref<16x1xf32, #tpu.memory_space<vmem>>, %arg7: memref<32x144xf32, #tpu.memory_space<vmem>>, %arg8: memref<32x1xf32, #tpu.memory_space<vmem>>, %arg9: memref<256x64xf32, #tpu.memory_space<vmem>>, %arg10: memref<64x16xf32, #tpu.memory_space<vmem>>, %arg11: memref<64x40xf32, #tpu.memory_space<vmem>>, %arg12: memref<16x1xf32, #tpu.memory_space<vmem>>, %arg13: memref<4x16x64xf32, #tpu.memory_space<vmem>>, %arg14: memref<16x288xf32, #tpu.memory_space<vmem>>, %arg15: memref<16x1xf32, #tpu.memory_space<vmem>>, %arg16: memref<32x16xf32, #tpu.memory_space<vmem>>, %arg17: memref<8x1xf32, #tpu.memory_space<vmem>>, %arg18: memref<4x64x256xf32, #tpu.memory_space<vmem>>, %arg19: memref<8x144xf32, #tpu.memory_space<vmem>>, %arg20: memref<8x1xf32, #tpu.memory_space<vmem>>, %arg21: memref<1x8xf32, #tpu.memory_space<vmem>>, %arg22: memref<1x1xf32, #tpu.memory_space<vmem>>, %arg23: memref<1x1x256xf32, #tpu.memory_space<vmem>>) attributes {dimension_semantics = [#tpu.dimension_semantics<parallel>], iteration_bounds = array<i64: 2>, scalar_prefetch = 0 : i64, scratch_operands = 0 : i64, tpu.core_type = #tpu.core_type<tc>, window_params = [{transform_indices = @transform_0, window_bounds = array<i64: 1, 8, 256>}, {transform_indices = @transform_1, window_bounds = array<i64: 1, 8, 1>}, {pipeline_mode = #tpu.pipeline_mode<synchronous>, transform_indices = @transform_2, window_bounds = array<i64: 8, 72>}, {pipeline_mode = #tpu.pipeline_mode<synchronous>, transform_indices = @transform_3, window_bounds = array<i64: 8, 1>}, {pipeline_mode = #tpu.pipeline_mode<synchronous>, transform_indices = @transform_4, window_bounds = array<i64: 16, 72>}, {pipeline_mode = #tpu.pipeline_mode<synchronous>, transform_indices = @transform_5, window_bounds = array<i64: 16, 1>}, {pipeline_mode = #tpu.pipeline_mode<synchronous>, transform_indices = @transform_6, window_bounds = array<i64: 32, 144>}, {pipeline_mode = #tpu.pipeline_mode<synchronous>, transform_indices = @transform_7, window_bounds = array<i64: 32, 1>}, {pipeline_mode = #tpu.pipeline_mode<synchronous>, transform_indices = @transform_8, window_bounds = array<i64: 256, 64>}, {pipeline_mode = #tpu.pipeline_mode<synchronous>, transform_indices = @transform_9, window_bounds = array<i64: 64, 16>}, {pipeline_mode = #tpu.pipeline_mode<synchronous>, transform_indices = @transform_10, window_bounds = array<i64: 64, 40>}, {pipeline_mode = #tpu.pipeline_mode<synchronous>, transform_indices = @transform_11, window_bounds = array<i64: 16, 1>}, {pipeline_mode = #tpu.pipeline_mode<synchronous>, transform_indices = @transform_12, window_bounds = array<i64: 4, 16, 64>}, {pipeline_mode = #tpu.pipeline_mode<synchronous>, transform_indices = @transform_13, window_bounds = array<i64: 16, 288>}, {pipeline_mode = #tpu.pipeline_mode<synchronous>, transform_indices = @transform_14, window_bounds = array<i64: 16, 1>}, {pipeline_mode = #tpu.pipeline_mode<synchronous>, transform_indices = @transform_15, window_bounds = array<i64: 32, 16>}, {pipeline_mode = #tpu.pipeline_mode<synchronous>, transform_indices = @transform_16, window_bounds = array<i64: 8, 1>}, {pipeline_mode = #tpu.pipeline_mode<synchronous>, transform_indices = @transform_17, window_bounds = array<i64: 4, 64, 256>}, {pipeline_mode = #tpu.pipeline_mode<synchronous>, transform_indices = @transform_18, window_bounds = array<i64: 8, 144>}, {pipeline_mode = #tpu.pipeline_mode<synchronous>, transform_indices = @transform_19, window_bounds = array<i64: 8, 1>}, {pipeline_mode = #tpu.pipeline_mode<synchronous>, transform_indices = @transform_20, window_bounds = array<i64: 1, 8>}, {pipeline_mode = #tpu.pipeline_mode<synchronous>, transform_indices = @transform_21, window_bounds = array<i64: 1, 1>}, {transform_indices = @transform_22, window_bounds = array<i64: 1, 1, 256>}]} {
    %c0 = arith.constant 0 : index
    %c0_0 = arith.constant 0 : index
    %c0_1 = arith.constant 0 : index
    %0 = vector.load %arg1[%c0, %c0_0, %c0_1] : memref<1x8x256xf32, #tpu.memory_space<vmem>>, vector<1x8x256xf32>
    %1 = vector.shape_cast %0 : vector<1x8x256xf32> to vector<8x256xf32>
    %c0_2 = arith.constant 0 : index
    %c0_3 = arith.constant 0 : index
    %2 = vector.load %arg3[%c0_2, %c0_3] : memref<8x72xf32, #tpu.memory_space<vmem>>, vector<8x72xf32>
    %c0_4 = arith.constant 0 : index
    %c0_5 = arith.constant 0 : index
    %3 = vector.load %arg4[%c0_4, %c0_5] : memref<8x1xf32, #tpu.memory_space<vmem>>, vector<8x1xf32>
    %4 = tpu.iota {dimensions = array<i32: 1>} : vector<1x256xi32>
    %c15_i32 = arith.constant 15 : i32
    %5 = vector.broadcast %c15_i32 : i32 to vector<1x256xi32>
    %6 = arith.andi %4, %5 : vector<1x256xi32>
    %cst = arith.constant 0.000000e+00 : f32
    %7 = vector.broadcast %cst : f32 to vector<8x17xf32>
    %8 = vector.extract_strided_slice %1 {offsets = [0, 0], sizes = [8, 239], strides = [1, 1]} : vector<8x256xf32> to vector<8x239xf32>
    %9 = tpu.concatenate %7, %8 in 1 : vector<8x17xf32>, vector<8x239xf32> -> vector<8x256xf32>
    %c-1_i32 = arith.constant -1 : i32
    %10 = vector.broadcast %c-1_i32 : i32 to vector<1x256xi32>
    %11 = arith.addi %6, %10 : vector<1x256xi32>
    %c0_i32 = arith.constant 0 : i32
    %12 = vector.broadcast %c0_i32 : i32 to vector<1x256xi32>
    %13 = arith.cmpi sge, %11, %12 : vector<1x256xi32>
    %c-1_i32_6 = arith.constant -1 : i32
    %14 = vector.broadcast %c-1_i32_6 : i32 to vector<1x256xi32>
    %15 = arith.addi %6, %14 : vector<1x256xi32>
    %c15_i32_7 = arith.constant 15 : i32
    %16 = vector.broadcast %c15_i32_7 : i32 to vector<1x256xi32>
    %17 = arith.cmpi sle, %15, %16 : vector<1x256xi32>
    %18 = arith.andi %13, %17 : vector<1x256xi1>
    %cst_8 = arith.constant 0.000000e+00 : f32
    %19 = vector.shape_cast %18 : vector<1x256xi1> to vector<1x256xi1>
    %20 = vector.broadcast %19 : vector<1x256xi1> to vector<8x256xi1>
    %21 = vector.broadcast %cst_8 : f32 to vector<8x256xf32>
    %22 = arith.select %20, %9, %21 : vector<8x256xi1>, vector<8x256xf32>
    %cst_9 = arith.constant 0.000000e+00 : f32
    %23 = vector.broadcast %cst_9 : f32 to vector<8x16xf32>
    %24 = vector.extract_strided_slice %1 {offsets = [0, 0], sizes = [8, 240], strides = [1, 1]} : vector<8x256xf32> to vector<8x240xf32>
    %25 = tpu.concatenate %23, %24 in 1 : vector<8x16xf32>, vector<8x240xf32> -> vector<8x256xf32>
    %cst_10 = arith.constant 0.000000e+00 : f32
    %26 = vector.broadcast %cst_10 : f32 to vector<8x15xf32>
    %27 = vector.extract_strided_slice %1 {offsets = [0, 0], sizes = [8, 241], strides = [1, 1]} : vector<8x256xf32> to vector<8x241xf32>
    %28 = tpu.concatenate %26, %27 in 1 : vector<8x15xf32>, vector<8x241xf32> -> vector<8x256xf32>
    %c1_i32 = arith.constant 1 : i32
    %29 = vector.broadcast %c1_i32 : i32 to vector<1x256xi32>
    %30 = arith.addi %6, %29 : vector<1x256xi32>
    %c0_i32_11 = arith.constant 0 : i32
    %31 = vector.broadcast %c0_i32_11 : i32 to vector<1x256xi32>
    %32 = arith.cmpi sge, %30, %31 : vector<1x256xi32>
    %c1_i32_12 = arith.constant 1 : i32
    %33 = vector.broadcast %c1_i32_12 : i32 to vector<1x256xi32>
    %34 = arith.addi %6, %33 : vector<1x256xi32>
    %c15_i32_13 = arith.constant 15 : i32
    %35 = vector.broadcast %c15_i32_13 : i32 to vector<1x256xi32>
    %36 = arith.cmpi sle, %34, %35 : vector<1x256xi32>
    %37 = arith.andi %32, %36 : vector<1x256xi1>
    %cst_14 = arith.constant 0.000000e+00 : f32
    %38 = vector.shape_cast %37 : vector<1x256xi1> to vector<1x256xi1>
    %39 = vector.broadcast %38 : vector<1x256xi1> to vector<8x256xi1>
    %40 = vector.broadcast %cst_14 : f32 to vector<8x256xf32>
    %41 = arith.select %39, %28, %40 : vector<8x256xi1>, vector<8x256xf32>
    %cst_15 = arith.constant 0.000000e+00 : f32
    %42 = vector.broadcast %cst_15 : f32 to vector<8x1xf32>
    %43 = vector.extract_strided_slice %1 {offsets = [0, 0], sizes = [8, 255], strides = [1, 1]} : vector<8x256xf32> to vector<8x255xf32>
    %44 = tpu.concatenate %42, %43 in 1 : vector<8x1xf32>, vector<8x255xf32> -> vector<8x256xf32>
    %c-1_i32_16 = arith.constant -1 : i32
    %45 = vector.broadcast %c-1_i32_16 : i32 to vector<1x256xi32>
    %46 = arith.addi %6, %45 : vector<1x256xi32>
    %c0_i32_17 = arith.constant 0 : i32
    %47 = vector.broadcast %c0_i32_17 : i32 to vector<1x256xi32>
    %48 = arith.cmpi sge, %46, %47 : vector<1x256xi32>
    %c-1_i32_18 = arith.constant -1 : i32
    %49 = vector.broadcast %c-1_i32_18 : i32 to vector<1x256xi32>
    %50 = arith.addi %6, %49 : vector<1x256xi32>
    %c15_i32_19 = arith.constant 15 : i32
    %51 = vector.broadcast %c15_i32_19 : i32 to vector<1x256xi32>
    %52 = arith.cmpi sle, %50, %51 : vector<1x256xi32>
    %53 = arith.andi %48, %52 : vector<1x256xi1>
    %cst_20 = arith.constant 0.000000e+00 : f32
    %54 = vector.shape_cast %53 : vector<1x256xi1> to vector<1x256xi1>
    %55 = vector.broadcast %54 : vector<1x256xi1> to vector<8x256xi1>
    %56 = vector.broadcast %cst_20 : f32 to vector<8x256xf32>
    %57 = arith.select %55, %44, %56 : vector<8x256xi1>, vector<8x256xf32>
    %cst_21 = arith.constant 0.000000e+00 : f32
    %58 = vector.broadcast %cst_21 : f32 to vector<8x1xf32>
    %59 = vector.extract_strided_slice %1 {offsets = [0, 1], sizes = [8, 255], strides = [1, 1]} : vector<8x256xf32> to vector<8x255xf32>
    %60 = tpu.concatenate %59, %58 in 1 : vector<8x255xf32>, vector<8x1xf32> -> vector<8x256xf32>
    %c1_i32_22 = arith.constant 1 : i32
    %61 = vector.broadcast %c1_i32_22 : i32 to vector<1x256xi32>
    %62 = arith.addi %6, %61 : vector<1x256xi32>
    %c0_i32_23 = arith.constant 0 : i32
    %63 = vector.broadcast %c0_i32_23 : i32 to vector<1x256xi32>
    %64 = arith.cmpi sge, %62, %63 : vector<1x256xi32>
    %c1_i32_24 = arith.constant 1 : i32
    %65 = vector.broadcast %c1_i32_24 : i32 to vector<1x256xi32>
    %66 = arith.addi %6, %65 : vector<1x256xi32>
    %c15_i32_25 = arith.constant 15 : i32
    %67 = vector.broadcast %c15_i32_25 : i32 to vector<1x256xi32>
    %68 = arith.cmpi sle, %66, %67 : vector<1x256xi32>
    %69 = arith.andi %64, %68 : vector<1x256xi1>
    %cst_26 = arith.constant 0.000000e+00 : f32
    %70 = vector.shape_cast %69 : vector<1x256xi1> to vector<1x256xi1>
    %71 = vector.broadcast %70 : vector<1x256xi1> to vector<8x256xi1>
    %72 = vector.broadcast %cst_26 : f32 to vector<8x256xf32>
    %73 = arith.select %71, %60, %72 : vector<8x256xi1>, vector<8x256xf32>
    %cst_27 = arith.constant 0.000000e+00 : f32
    %74 = vector.broadcast %cst_27 : f32 to vector<8x15xf32>
    %75 = vector.extract_strided_slice %1 {offsets = [0, 15], sizes = [8, 241], strides = [1, 1]} : vector<8x256xf32> to vector<8x241xf32>
    %76 = tpu.concatenate %75, %74 in 1 : vector<8x241xf32>, vector<8x15xf32> -> vector<8x256xf32>
    %c-1_i32_28 = arith.constant -1 : i32
    %77 = vector.broadcast %c-1_i32_28 : i32 to vector<1x256xi32>
    %78 = arith.addi %6, %77 : vector<1x256xi32>
    %c0_i32_29 = arith.constant 0 : i32
    %79 = vector.broadcast %c0_i32_29 : i32 to vector<1x256xi32>
    %80 = arith.cmpi sge, %78, %79 : vector<1x256xi32>
    %c-1_i32_30 = arith.constant -1 : i32
    %81 = vector.broadcast %c-1_i32_30 : i32 to vector<1x256xi32>
    %82 = arith.addi %6, %81 : vector<1x256xi32>
    %c15_i32_31 = arith.constant 15 : i32
    %83 = vector.broadcast %c15_i32_31 : i32 to vector<1x256xi32>
    %84 = arith.cmpi sle, %82, %83 : vector<1x256xi32>
    %85 = arith.andi %80, %84 : vector<1x256xi1>
    %cst_32 = arith.constant 0.000000e+00 : f32
    %86 = vector.shape_cast %85 : vector<1x256xi1> to vector<1x256xi1>
    %87 = vector.broadcast %86 : vector<1x256xi1> to vector<8x256xi1>
    %88 = vector.broadcast %cst_32 : f32 to vector<8x256xf32>
    %89 = arith.select %87, %76, %88 : vector<8x256xi1>, vector<8x256xf32>
    %cst_33 = arith.constant 0.000000e+00 : f32
    %90 = vector.broadcast %cst_33 : f32 to vector<8x16xf32>
    %91 = vector.extract_strided_slice %1 {offsets = [0, 16], sizes = [8, 240], strides = [1, 1]} : vector<8x256xf32> to vector<8x240xf32>
    %92 = tpu.concatenate %91, %90 in 1 : vector<8x240xf32>, vector<8x16xf32> -> vector<8x256xf32>
    %cst_34 = arith.constant 0.000000e+00 : f32
    %93 = vector.broadcast %cst_34 : f32 to vector<8x17xf32>
    %94 = vector.extract_strided_slice %1 {offsets = [0, 17], sizes = [8, 239], strides = [1, 1]} : vector<8x256xf32> to vector<8x239xf32>
    %95 = tpu.concatenate %94, %93 in 1 : vector<8x239xf32>, vector<8x17xf32> -> vector<8x256xf32>
    %c1_i32_35 = arith.constant 1 : i32
    %96 = vector.broadcast %c1_i32_35 : i32 to vector<1x256xi32>
    %97 = arith.addi %6, %96 : vector<1x256xi32>
    %c0_i32_36 = arith.constant 0 : i32
    %98 = vector.broadcast %c0_i32_36 : i32 to vector<1x256xi32>
    %99 = arith.cmpi sge, %97, %98 : vector<1x256xi32>
    %c1_i32_37 = arith.constant 1 : i32
    %100 = vector.broadcast %c1_i32_37 : i32 to vector<1x256xi32>
    %101 = arith.addi %6, %100 : vector<1x256xi32>
    %c15_i32_38 = arith.constant 15 : i32
    %102 = vector.broadcast %c15_i32_38 : i32 to vector<1x256xi32>
    %103 = arith.cmpi sle, %101, %102 : vector<1x256xi32>
    %104 = arith.andi %99, %103 : vector<1x256xi1>
    %cst_39 = arith.constant 0.000000e+00 : f32
    %105 = vector.shape_cast %104 : vector<1x256xi1> to vector<1x256xi1>
    %106 = vector.broadcast %105 : vector<1x256xi1> to vector<8x256xi1>
    %107 = vector.broadcast %cst_39 : f32 to vector<8x256xf32>
    %108 = arith.select %106, %95, %107 : vector<8x256xi1>, vector<8x256xf32>
    %109 = tpu.concatenate %22, %25, %41, %57, %1, %73, %89, %92, %108 in 0 : vector<8x256xf32>, vector<8x256xf32>, vector<8x256xf32>, vector<8x256xf32>, vector<8x256xf32>, vector<8x256xf32>, vector<8x256xf32>, vector<8x256xf32>, vector<8x256xf32> -> vector<72x256xf32>
    %cst_40 = arith.constant dense<0.000000e+00> : vector<8x256xf32>
    %110 = tpu.matmul %2, %109, %cst_40 {dimension_numbers = #tpu.dot_dimension_numbers<[1], [0], [0], [1], [0, 0, 1, 1], [], []>} : vector<8x72xf32>, vector<72x256xf32>, vector<8x256xf32> -> vector<8x256xf32>
    %111 = vector.broadcast %3 : vector<8x1xf32> to vector<8x256xf32>
    %112 = arith.addf %110, %111 : vector<8x256xf32>
    %cst_41 = arith.constant 0.000000e+00 : f32
    %113 = vector.broadcast %cst_41 : f32 to vector<8x256xf32>
    %114 = arith.maximumf %112, %113 : vector<8x256xf32>
    %c0_42 = arith.constant 0 : index
    %c0_43 = arith.constant 0 : index
    %115 = vector.load %arg9[%c0_42, %c0_43] : memref<256x64xf32, #tpu.memory_space<vmem>>, vector<256x64xf32>
    %cst_44 = arith.constant 0.000000e+00 : f32
    %116 = vector.broadcast %cst_44 : f32 to vector<8x1xf32>
    %117 = vector.extract_strided_slice %114 {offsets = [0, 1], sizes = [8, 255], strides = [1, 1]} : vector<8x256xf32> to vector<8x255xf32>
    %118 = tpu.concatenate %117, %116 in 1 : vector<8x255xf32>, vector<8x1xf32> -> vector<8x256xf32>
    %119 = arith.maximumf %114, %118 : vector<8x256xf32>
    %cst_45 = arith.constant 0.000000e+00 : f32
    %120 = vector.broadcast %cst_45 : f32 to vector<8x16xf32>
    %121 = vector.extract_strided_slice %119 {offsets = [0, 16], sizes = [8, 240], strides = [1, 1]} : vector<8x256xf32> to vector<8x240xf32>
    %122 = tpu.concatenate %121, %120 in 1 : vector<8x240xf32>, vector<8x16xf32> -> vector<8x256xf32>
    %123 = arith.maximumf %119, %122 : vector<8x256xf32>
    %cst_46 = arith.constant dense<0.000000e+00> : vector<8x64xf32>
    %124 = tpu.matmul %123, %115, %cst_46 {dimension_numbers = #tpu.dot_dimension_numbers<[1], [0], [0], [1], [0, 0, 1, 1], [], []>} : vector<8x256xf32>, vector<256x64xf32>, vector<8x64xf32> -> vector<8x64xf32>
    %c0_47 = arith.constant 0 : index
    %c0_48 = arith.constant 0 : index
    %125 = vector.load %arg5[%c0_47, %c0_48] : memref<16x72xf32, #tpu.memory_space<vmem>>, vector<16x72xf32>
    %c0_49 = arith.constant 0 : index
    %c0_50 = arith.constant 0 : index
    %126 = vector.load %arg6[%c0_49, %c0_50] : memref<16x1xf32, #tpu.memory_space<vmem>>, vector<16x1xf32>
    %127 = tpu.iota {dimensions = array<i32: 1>} : vector<1x64xi32>
    %c7_i32 = arith.constant 7 : i32
    %128 = vector.broadcast %c7_i32 : i32 to vector<1x64xi32>
    %129 = arith.andi %127, %128 : vector<1x64xi32>
    %cst_51 = arith.constant 0.000000e+00 : f32
    %130 = vector.broadcast %cst_51 : f32 to vector<8x9xf32>
    %131 = vector.extract_strided_slice %124 {offsets = [0, 0], sizes = [8, 55], strides = [1, 1]} : vector<8x64xf32> to vector<8x55xf32>
    %132 = tpu.concatenate %130, %131 in 1 : vector<8x9xf32>, vector<8x55xf32> -> vector<8x64xf32>
    %c-1_i32_52 = arith.constant -1 : i32
    %133 = vector.broadcast %c-1_i32_52 : i32 to vector<1x64xi32>
    %134 = arith.addi %129, %133 : vector<1x64xi32>
    %c0_i32_53 = arith.constant 0 : i32
    %135 = vector.broadcast %c0_i32_53 : i32 to vector<1x64xi32>
    %136 = arith.cmpi sge, %134, %135 : vector<1x64xi32>
    %c-1_i32_54 = arith.constant -1 : i32
    %137 = vector.broadcast %c-1_i32_54 : i32 to vector<1x64xi32>
    %138 = arith.addi %129, %137 : vector<1x64xi32>
    %c7_i32_55 = arith.constant 7 : i32
    %139 = vector.broadcast %c7_i32_55 : i32 to vector<1x64xi32>
    %140 = arith.cmpi sle, %138, %139 : vector<1x64xi32>
    %141 = arith.andi %136, %140 : vector<1x64xi1>
    %cst_56 = arith.constant 0.000000e+00 : f32
    %142 = vector.shape_cast %141 : vector<1x64xi1> to vector<1x64xi1>
    %143 = vector.broadcast %142 : vector<1x64xi1> to vector<8x64xi1>
    %144 = vector.broadcast %cst_56 : f32 to vector<8x64xf32>
    %145 = arith.select %143, %132, %144 : vector<8x64xi1>, vector<8x64xf32>
    %cst_57 = arith.constant 0.000000e+00 : f32
    %146 = vector.broadcast %cst_57 : f32 to vector<8x8xf32>
    %147 = vector.extract_strided_slice %124 {offsets = [0, 0], sizes = [8, 56], strides = [1, 1]} : vector<8x64xf32> to vector<8x56xf32>
    %148 = tpu.concatenate %146, %147 in 1 : vector<8x8xf32>, vector<8x56xf32> -> vector<8x64xf32>
    %cst_58 = arith.constant 0.000000e+00 : f32
    %149 = vector.broadcast %cst_58 : f32 to vector<8x7xf32>
    %150 = vector.extract_strided_slice %124 {offsets = [0, 0], sizes = [8, 57], strides = [1, 1]} : vector<8x64xf32> to vector<8x57xf32>
    %151 = tpu.concatenate %149, %150 in 1 : vector<8x7xf32>, vector<8x57xf32> -> vector<8x64xf32>
    %c1_i32_59 = arith.constant 1 : i32
    %152 = vector.broadcast %c1_i32_59 : i32 to vector<1x64xi32>
    %153 = arith.addi %129, %152 : vector<1x64xi32>
    %c0_i32_60 = arith.constant 0 : i32
    %154 = vector.broadcast %c0_i32_60 : i32 to vector<1x64xi32>
    %155 = arith.cmpi sge, %153, %154 : vector<1x64xi32>
    %c1_i32_61 = arith.constant 1 : i32
    %156 = vector.broadcast %c1_i32_61 : i32 to vector<1x64xi32>
    %157 = arith.addi %129, %156 : vector<1x64xi32>
    %c7_i32_62 = arith.constant 7 : i32
    %158 = vector.broadcast %c7_i32_62 : i32 to vector<1x64xi32>
    %159 = arith.cmpi sle, %157, %158 : vector<1x64xi32>
    %160 = arith.andi %155, %159 : vector<1x64xi1>
    %cst_63 = arith.constant 0.000000e+00 : f32
    %161 = vector.shape_cast %160 : vector<1x64xi1> to vector<1x64xi1>
    %162 = vector.broadcast %161 : vector<1x64xi1> to vector<8x64xi1>
    %163 = vector.broadcast %cst_63 : f32 to vector<8x64xf32>
    %164 = arith.select %162, %151, %163 : vector<8x64xi1>, vector<8x64xf32>
    %cst_64 = arith.constant 0.000000e+00 : f32
    %165 = vector.broadcast %cst_64 : f32 to vector<8x1xf32>
    %166 = vector.extract_strided_slice %124 {offsets = [0, 0], sizes = [8, 63], strides = [1, 1]} : vector<8x64xf32> to vector<8x63xf32>
    %167 = tpu.concatenate %165, %166 in 1 : vector<8x1xf32>, vector<8x63xf32> -> vector<8x64xf32>
    %c-1_i32_65 = arith.constant -1 : i32
    %168 = vector.broadcast %c-1_i32_65 : i32 to vector<1x64xi32>
    %169 = arith.addi %129, %168 : vector<1x64xi32>
    %c0_i32_66 = arith.constant 0 : i32
    %170 = vector.broadcast %c0_i32_66 : i32 to vector<1x64xi32>
    %171 = arith.cmpi sge, %169, %170 : vector<1x64xi32>
    %c-1_i32_67 = arith.constant -1 : i32
    %172 = vector.broadcast %c-1_i32_67 : i32 to vector<1x64xi32>
    %173 = arith.addi %129, %172 : vector<1x64xi32>
    %c7_i32_68 = arith.constant 7 : i32
    %174 = vector.broadcast %c7_i32_68 : i32 to vector<1x64xi32>
    %175 = arith.cmpi sle, %173, %174 : vector<1x64xi32>
    %176 = arith.andi %171, %175 : vector<1x64xi1>
    %cst_69 = arith.constant 0.000000e+00 : f32
    %177 = vector.shape_cast %176 : vector<1x64xi1> to vector<1x64xi1>
    %178 = vector.broadcast %177 : vector<1x64xi1> to vector<8x64xi1>
    %179 = vector.broadcast %cst_69 : f32 to vector<8x64xf32>
    %180 = arith.select %178, %167, %179 : vector<8x64xi1>, vector<8x64xf32>
    %cst_70 = arith.constant 0.000000e+00 : f32
    %181 = vector.broadcast %cst_70 : f32 to vector<8x1xf32>
    %182 = vector.extract_strided_slice %124 {offsets = [0, 1], sizes = [8, 63], strides = [1, 1]} : vector<8x64xf32> to vector<8x63xf32>
    %183 = tpu.concatenate %182, %181 in 1 : vector<8x63xf32>, vector<8x1xf32> -> vector<8x64xf32>
    %c1_i32_71 = arith.constant 1 : i32
    %184 = vector.broadcast %c1_i32_71 : i32 to vector<1x64xi32>
    %185 = arith.addi %129, %184 : vector<1x64xi32>
    %c0_i32_72 = arith.constant 0 : i32
    %186 = vector.broadcast %c0_i32_72 : i32 to vector<1x64xi32>
    %187 = arith.cmpi sge, %185, %186 : vector<1x64xi32>
    %c1_i32_73 = arith.constant 1 : i32
    %188 = vector.broadcast %c1_i32_73 : i32 to vector<1x64xi32>
    %189 = arith.addi %129, %188 : vector<1x64xi32>
    %c7_i32_74 = arith.constant 7 : i32
    %190 = vector.broadcast %c7_i32_74 : i32 to vector<1x64xi32>
    %191 = arith.cmpi sle, %189, %190 : vector<1x64xi32>
    %192 = arith.andi %187, %191 : vector<1x64xi1>
    %cst_75 = arith.constant 0.000000e+00 : f32
    %193 = vector.shape_cast %192 : vector<1x64xi1> to vector<1x64xi1>
    %194 = vector.broadcast %193 : vector<1x64xi1> to vector<8x64xi1>
    %195 = vector.broadcast %cst_75 : f32 to vector<8x64xf32>
    %196 = arith.select %194, %183, %195 : vector<8x64xi1>, vector<8x64xf32>
    %cst_76 = arith.constant 0.000000e+00 : f32
    %197 = vector.broadcast %cst_76 : f32 to vector<8x7xf32>
    %198 = vector.extract_strided_slice %124 {offsets = [0, 7], sizes = [8, 57], strides = [1, 1]} : vector<8x64xf32> to vector<8x57xf32>
    %199 = tpu.concatenate %198, %197 in 1 : vector<8x57xf32>, vector<8x7xf32> -> vector<8x64xf32>
    %c-1_i32_77 = arith.constant -1 : i32
    %200 = vector.broadcast %c-1_i32_77 : i32 to vector<1x64xi32>
    %201 = arith.addi %129, %200 : vector<1x64xi32>
    %c0_i32_78 = arith.constant 0 : i32
    %202 = vector.broadcast %c0_i32_78 : i32 to vector<1x64xi32>
    %203 = arith.cmpi sge, %201, %202 : vector<1x64xi32>
    %c-1_i32_79 = arith.constant -1 : i32
    %204 = vector.broadcast %c-1_i32_79 : i32 to vector<1x64xi32>
    %205 = arith.addi %129, %204 : vector<1x64xi32>
    %c7_i32_80 = arith.constant 7 : i32
    %206 = vector.broadcast %c7_i32_80 : i32 to vector<1x64xi32>
    %207 = arith.cmpi sle, %205, %206 : vector<1x64xi32>
    %208 = arith.andi %203, %207 : vector<1x64xi1>
    %cst_81 = arith.constant 0.000000e+00 : f32
    %209 = vector.shape_cast %208 : vector<1x64xi1> to vector<1x64xi1>
    %210 = vector.broadcast %209 : vector<1x64xi1> to vector<8x64xi1>
    %211 = vector.broadcast %cst_81 : f32 to vector<8x64xf32>
    %212 = arith.select %210, %199, %211 : vector<8x64xi1>, vector<8x64xf32>
    %cst_82 = arith.constant 0.000000e+00 : f32
    %213 = vector.broadcast %cst_82 : f32 to vector<8x8xf32>
    %214 = vector.extract_strided_slice %124 {offsets = [0, 8], sizes = [8, 56], strides = [1, 1]} : vector<8x64xf32> to vector<8x56xf32>
    %215 = tpu.concatenate %214, %213 in 1 : vector<8x56xf32>, vector<8x8xf32> -> vector<8x64xf32>
    %cst_83 = arith.constant 0.000000e+00 : f32
    %216 = vector.broadcast %cst_83 : f32 to vector<8x9xf32>
    %217 = vector.extract_strided_slice %124 {offsets = [0, 9], sizes = [8, 55], strides = [1, 1]} : vector<8x64xf32> to vector<8x55xf32>
    %218 = tpu.concatenate %217, %216 in 1 : vector<8x55xf32>, vector<8x9xf32> -> vector<8x64xf32>
    %c1_i32_84 = arith.constant 1 : i32
    %219 = vector.broadcast %c1_i32_84 : i32 to vector<1x64xi32>
    %220 = arith.addi %129, %219 : vector<1x64xi32>
    %c0_i32_85 = arith.constant 0 : i32
    %221 = vector.broadcast %c0_i32_85 : i32 to vector<1x64xi32>
    %222 = arith.cmpi sge, %220, %221 : vector<1x64xi32>
    %c1_i32_86 = arith.constant 1 : i32
    %223 = vector.broadcast %c1_i32_86 : i32 to vector<1x64xi32>
    %224 = arith.addi %129, %223 : vector<1x64xi32>
    %c7_i32_87 = arith.constant 7 : i32
    %225 = vector.broadcast %c7_i32_87 : i32 to vector<1x64xi32>
    %226 = arith.cmpi sle, %224, %225 : vector<1x64xi32>
    %227 = arith.andi %222, %226 : vector<1x64xi1>
    %cst_88 = arith.constant 0.000000e+00 : f32
    %228 = vector.shape_cast %227 : vector<1x64xi1> to vector<1x64xi1>
    %229 = vector.broadcast %228 : vector<1x64xi1> to vector<8x64xi1>
    %230 = vector.broadcast %cst_88 : f32 to vector<8x64xf32>
    %231 = arith.select %229, %218, %230 : vector<8x64xi1>, vector<8x64xf32>
    %232 = tpu.concatenate %145, %148, %164, %180, %124, %196, %212, %215, %231 in 0 : vector<8x64xf32>, vector<8x64xf32>, vector<8x64xf32>, vector<8x64xf32>, vector<8x64xf32>, vector<8x64xf32>, vector<8x64xf32>, vector<8x64xf32>, vector<8x64xf32> -> vector<72x64xf32>
    %cst_89 = arith.constant dense<0.000000e+00> : vector<16x64xf32>
    %233 = tpu.matmul %125, %232, %cst_89 {dimension_numbers = #tpu.dot_dimension_numbers<[1], [0], [0], [1], [0, 0, 1, 1], [], []>} : vector<16x72xf32>, vector<72x64xf32>, vector<16x64xf32> -> vector<16x64xf32>
    %234 = vector.broadcast %126 : vector<16x1xf32> to vector<16x64xf32>
    %235 = arith.addf %233, %234 : vector<16x64xf32>
    %cst_90 = arith.constant 0.000000e+00 : f32
    %236 = vector.broadcast %cst_90 : f32 to vector<16x64xf32>
    %237 = arith.maximumf %235, %236 : vector<16x64xf32>
    %c0_91 = arith.constant 0 : index
    %c0_92 = arith.constant 0 : index
    %238 = vector.load %arg10[%c0_91, %c0_92] : memref<64x16xf32, #tpu.memory_space<vmem>>, vector<64x16xf32>
    %cst_93 = arith.constant 0.000000e+00 : f32
    %239 = vector.broadcast %cst_93 : f32 to vector<16x1xf32>
    %240 = vector.extract_strided_slice %237 {offsets = [0, 1], sizes = [16, 63], strides = [1, 1]} : vector<16x64xf32> to vector<16x63xf32>
    %241 = tpu.concatenate %240, %239 in 1 : vector<16x63xf32>, vector<16x1xf32> -> vector<16x64xf32>
    %242 = arith.maximumf %237, %241 : vector<16x64xf32>
    %cst_94 = arith.constant 0.000000e+00 : f32
    %243 = vector.broadcast %cst_94 : f32 to vector<16x8xf32>
    %244 = vector.extract_strided_slice %242 {offsets = [0, 8], sizes = [16, 56], strides = [1, 1]} : vector<16x64xf32> to vector<16x56xf32>
    %245 = tpu.concatenate %244, %243 in 1 : vector<16x56xf32>, vector<16x8xf32> -> vector<16x64xf32>
    %246 = arith.maximumf %242, %245 : vector<16x64xf32>
    %cst_95 = arith.constant dense<0.000000e+00> : vector<16x16xf32>
    %247 = tpu.matmul %246, %238, %cst_95 {dimension_numbers = #tpu.dot_dimension_numbers<[1], [0], [0], [1], [0, 0, 1, 1], [], []>} : vector<16x64xf32>, vector<64x16xf32>, vector<16x16xf32> -> vector<16x16xf32>
    %c0_96 = arith.constant 0 : index
    %c0_97 = arith.constant 0 : index
    %248 = vector.load %arg7[%c0_96, %c0_97] : memref<32x144xf32, #tpu.memory_space<vmem>>, vector<32x144xf32>
    %c0_98 = arith.constant 0 : index
    %c0_99 = arith.constant 0 : index
    %249 = vector.load %arg8[%c0_98, %c0_99] : memref<32x1xf32, #tpu.memory_space<vmem>>, vector<32x1xf32>
    %250 = tpu.iota {dimensions = array<i32: 1>} : vector<1x16xi32>
    %c3_i32 = arith.constant 3 : i32
    %251 = vector.broadcast %c3_i32 : i32 to vector<1x16xi32>
    %252 = arith.andi %250, %251 : vector<1x16xi32>
    %cst_100 = arith.constant 0.000000e+00 : f32
    %253 = vector.broadcast %cst_100 : f32 to vector<16x5xf32>
    %254 = vector.extract_strided_slice %247 {offsets = [0, 0], sizes = [16, 11], strides = [1, 1]} : vector<16x16xf32> to vector<16x11xf32>
    %255 = tpu.concatenate %253, %254 in 1 : vector<16x5xf32>, vector<16x11xf32> -> vector<16x16xf32>
    %c-1_i32_101 = arith.constant -1 : i32
    %256 = vector.broadcast %c-1_i32_101 : i32 to vector<1x16xi32>
    %257 = arith.addi %252, %256 : vector<1x16xi32>
    %c0_i32_102 = arith.constant 0 : i32
    %258 = vector.broadcast %c0_i32_102 : i32 to vector<1x16xi32>
    %259 = arith.cmpi sge, %257, %258 : vector<1x16xi32>
    %c-1_i32_103 = arith.constant -1 : i32
    %260 = vector.broadcast %c-1_i32_103 : i32 to vector<1x16xi32>
    %261 = arith.addi %252, %260 : vector<1x16xi32>
    %c3_i32_104 = arith.constant 3 : i32
    %262 = vector.broadcast %c3_i32_104 : i32 to vector<1x16xi32>
    %263 = arith.cmpi sle, %261, %262 : vector<1x16xi32>
    %264 = arith.andi %259, %263 : vector<1x16xi1>
    %cst_105 = arith.constant 0.000000e+00 : f32
    %265 = vector.shape_cast %264 : vector<1x16xi1> to vector<1x16xi1>
    %266 = vector.broadcast %265 : vector<1x16xi1> to vector<16x16xi1>
    %267 = vector.broadcast %cst_105 : f32 to vector<16x16xf32>
    %268 = arith.select %266, %255, %267 : vector<16x16xi1>, vector<16x16xf32>
    %cst_106 = arith.constant 0.000000e+00 : f32
    %269 = vector.broadcast %cst_106 : f32 to vector<16x4xf32>
    %270 = vector.extract_strided_slice %247 {offsets = [0, 0], sizes = [16, 12], strides = [1, 1]} : vector<16x16xf32> to vector<16x12xf32>
    %271 = tpu.concatenate %269, %270 in 1 : vector<16x4xf32>, vector<16x12xf32> -> vector<16x16xf32>
    %cst_107 = arith.constant 0.000000e+00 : f32
    %272 = vector.broadcast %cst_107 : f32 to vector<16x3xf32>
    %273 = vector.extract_strided_slice %247 {offsets = [0, 0], sizes = [16, 13], strides = [1, 1]} : vector<16x16xf32> to vector<16x13xf32>
    %274 = tpu.concatenate %272, %273 in 1 : vector<16x3xf32>, vector<16x13xf32> -> vector<16x16xf32>
    %c1_i32_108 = arith.constant 1 : i32
    %275 = vector.broadcast %c1_i32_108 : i32 to vector<1x16xi32>
    %276 = arith.addi %252, %275 : vector<1x16xi32>
    %c0_i32_109 = arith.constant 0 : i32
    %277 = vector.broadcast %c0_i32_109 : i32 to vector<1x16xi32>
    %278 = arith.cmpi sge, %276, %277 : vector<1x16xi32>
    %c1_i32_110 = arith.constant 1 : i32
    %279 = vector.broadcast %c1_i32_110 : i32 to vector<1x16xi32>
    %280 = arith.addi %252, %279 : vector<1x16xi32>
    %c3_i32_111 = arith.constant 3 : i32
    %281 = vector.broadcast %c3_i32_111 : i32 to vector<1x16xi32>
    %282 = arith.cmpi sle, %280, %281 : vector<1x16xi32>
    %283 = arith.andi %278, %282 : vector<1x16xi1>
    %cst_112 = arith.constant 0.000000e+00 : f32
    %284 = vector.shape_cast %283 : vector<1x16xi1> to vector<1x16xi1>
    %285 = vector.broadcast %284 : vector<1x16xi1> to vector<16x16xi1>
    %286 = vector.broadcast %cst_112 : f32 to vector<16x16xf32>
    %287 = arith.select %285, %274, %286 : vector<16x16xi1>, vector<16x16xf32>
    %cst_113 = arith.constant 0.000000e+00 : f32
    %288 = vector.broadcast %cst_113 : f32 to vector<16x1xf32>
    %289 = vector.extract_strided_slice %247 {offsets = [0, 0], sizes = [16, 15], strides = [1, 1]} : vector<16x16xf32> to vector<16x15xf32>
    %290 = tpu.concatenate %288, %289 in 1 : vector<16x1xf32>, vector<16x15xf32> -> vector<16x16xf32>
    %c-1_i32_114 = arith.constant -1 : i32
    %291 = vector.broadcast %c-1_i32_114 : i32 to vector<1x16xi32>
    %292 = arith.addi %252, %291 : vector<1x16xi32>
    %c0_i32_115 = arith.constant 0 : i32
    %293 = vector.broadcast %c0_i32_115 : i32 to vector<1x16xi32>
    %294 = arith.cmpi sge, %292, %293 : vector<1x16xi32>
    %c-1_i32_116 = arith.constant -1 : i32
    %295 = vector.broadcast %c-1_i32_116 : i32 to vector<1x16xi32>
    %296 = arith.addi %252, %295 : vector<1x16xi32>
    %c3_i32_117 = arith.constant 3 : i32
    %297 = vector.broadcast %c3_i32_117 : i32 to vector<1x16xi32>
    %298 = arith.cmpi sle, %296, %297 : vector<1x16xi32>
    %299 = arith.andi %294, %298 : vector<1x16xi1>
    %cst_118 = arith.constant 0.000000e+00 : f32
    %300 = vector.shape_cast %299 : vector<1x16xi1> to vector<1x16xi1>
    %301 = vector.broadcast %300 : vector<1x16xi1> to vector<16x16xi1>
    %302 = vector.broadcast %cst_118 : f32 to vector<16x16xf32>
    %303 = arith.select %301, %290, %302 : vector<16x16xi1>, vector<16x16xf32>
    %cst_119 = arith.constant 0.000000e+00 : f32
    %304 = vector.broadcast %cst_119 : f32 to vector<16x1xf32>
    %305 = vector.extract_strided_slice %247 {offsets = [0, 1], sizes = [16, 15], strides = [1, 1]} : vector<16x16xf32> to vector<16x15xf32>
    %306 = tpu.concatenate %305, %304 in 1 : vector<16x15xf32>, vector<16x1xf32> -> vector<16x16xf32>
    %c1_i32_120 = arith.constant 1 : i32
    %307 = vector.broadcast %c1_i32_120 : i32 to vector<1x16xi32>
    %308 = arith.addi %252, %307 : vector<1x16xi32>
    %c0_i32_121 = arith.constant 0 : i32
    %309 = vector.broadcast %c0_i32_121 : i32 to vector<1x16xi32>
    %310 = arith.cmpi sge, %308, %309 : vector<1x16xi32>
    %c1_i32_122 = arith.constant 1 : i32
    %311 = vector.broadcast %c1_i32_122 : i32 to vector<1x16xi32>
    %312 = arith.addi %252, %311 : vector<1x16xi32>
    %c3_i32_123 = arith.constant 3 : i32
    %313 = vector.broadcast %c3_i32_123 : i32 to vector<1x16xi32>
    %314 = arith.cmpi sle, %312, %313 : vector<1x16xi32>
    %315 = arith.andi %310, %314 : vector<1x16xi1>
    %cst_124 = arith.constant 0.000000e+00 : f32
    %316 = vector.shape_cast %315 : vector<1x16xi1> to vector<1x16xi1>
    %317 = vector.broadcast %316 : vector<1x16xi1> to vector<16x16xi1>
    %318 = vector.broadcast %cst_124 : f32 to vector<16x16xf32>
    %319 = arith.select %317, %306, %318 : vector<16x16xi1>, vector<16x16xf32>
    %cst_125 = arith.constant 0.000000e+00 : f32
    %320 = vector.broadcast %cst_125 : f32 to vector<16x3xf32>
    %321 = vector.extract_strided_slice %247 {offsets = [0, 3], sizes = [16, 13], strides = [1, 1]} : vector<16x16xf32> to vector<16x13xf32>
    %322 = tpu.concatenate %321, %320 in 1 : vector<16x13xf32>, vector<16x3xf32> -> vector<16x16xf32>
    %c-1_i32_126 = arith.constant -1 : i32
    %323 = vector.broadcast %c-1_i32_126 : i32 to vector<1x16xi32>
    %324 = arith.addi %252, %323 : vector<1x16xi32>
    %c0_i32_127 = arith.constant 0 : i32
    %325 = vector.broadcast %c0_i32_127 : i32 to vector<1x16xi32>
    %326 = arith.cmpi sge, %324, %325 : vector<1x16xi32>
    %c-1_i32_128 = arith.constant -1 : i32
    %327 = vector.broadcast %c-1_i32_128 : i32 to vector<1x16xi32>
    %328 = arith.addi %252, %327 : vector<1x16xi32>
    %c3_i32_129 = arith.constant 3 : i32
    %329 = vector.broadcast %c3_i32_129 : i32 to vector<1x16xi32>
    %330 = arith.cmpi sle, %328, %329 : vector<1x16xi32>
    %331 = arith.andi %326, %330 : vector<1x16xi1>
    %cst_130 = arith.constant 0.000000e+00 : f32
    %332 = vector.shape_cast %331 : vector<1x16xi1> to vector<1x16xi1>
    %333 = vector.broadcast %332 : vector<1x16xi1> to vector<16x16xi1>
    %334 = vector.broadcast %cst_130 : f32 to vector<16x16xf32>
    %335 = arith.select %333, %322, %334 : vector<16x16xi1>, vector<16x16xf32>
    %cst_131 = arith.constant 0.000000e+00 : f32
    %336 = vector.broadcast %cst_131 : f32 to vector<16x4xf32>
    %337 = vector.extract_strided_slice %247 {offsets = [0, 4], sizes = [16, 12], strides = [1, 1]} : vector<16x16xf32> to vector<16x12xf32>
    %338 = tpu.concatenate %337, %336 in 1 : vector<16x12xf32>, vector<16x4xf32> -> vector<16x16xf32>
    %cst_132 = arith.constant 0.000000e+00 : f32
    %339 = vector.broadcast %cst_132 : f32 to vector<16x5xf32>
    %340 = vector.extract_strided_slice %247 {offsets = [0, 5], sizes = [16, 11], strides = [1, 1]} : vector<16x16xf32> to vector<16x11xf32>
    %341 = tpu.concatenate %340, %339 in 1 : vector<16x11xf32>, vector<16x5xf32> -> vector<16x16xf32>
    %c1_i32_133 = arith.constant 1 : i32
    %342 = vector.broadcast %c1_i32_133 : i32 to vector<1x16xi32>
    %343 = arith.addi %252, %342 : vector<1x16xi32>
    %c0_i32_134 = arith.constant 0 : i32
    %344 = vector.broadcast %c0_i32_134 : i32 to vector<1x16xi32>
    %345 = arith.cmpi sge, %343, %344 : vector<1x16xi32>
    %c1_i32_135 = arith.constant 1 : i32
    %346 = vector.broadcast %c1_i32_135 : i32 to vector<1x16xi32>
    %347 = arith.addi %252, %346 : vector<1x16xi32>
    %c3_i32_136 = arith.constant 3 : i32
    %348 = vector.broadcast %c3_i32_136 : i32 to vector<1x16xi32>
    %349 = arith.cmpi sle, %347, %348 : vector<1x16xi32>
    %350 = arith.andi %345, %349 : vector<1x16xi1>
    %cst_137 = arith.constant 0.000000e+00 : f32
    %351 = vector.shape_cast %350 : vector<1x16xi1> to vector<1x16xi1>
    %352 = vector.broadcast %351 : vector<1x16xi1> to vector<16x16xi1>
    %353 = vector.broadcast %cst_137 : f32 to vector<16x16xf32>
    %354 = arith.select %352, %341, %353 : vector<16x16xi1>, vector<16x16xf32>
    %355 = tpu.concatenate %268, %271, %287, %303, %247, %319, %335, %338, %354 in 0 : vector<16x16xf32>, vector<16x16xf32>, vector<16x16xf32>, vector<16x16xf32>, vector<16x16xf32>, vector<16x16xf32>, vector<16x16xf32>, vector<16x16xf32>, vector<16x16xf32> -> vector<144x16xf32>
    %cst_138 = arith.constant dense<0.000000e+00> : vector<32x16xf32>
    %356 = tpu.matmul %248, %355, %cst_138 {dimension_numbers = #tpu.dot_dimension_numbers<[1], [0], [0], [1], [0, 0, 1, 1], [], []>} : vector<32x144xf32>, vector<144x16xf32>, vector<32x16xf32> -> vector<32x16xf32>
    %357 = vector.broadcast %249 : vector<32x1xf32> to vector<32x16xf32>
    %358 = arith.addf %356, %357 : vector<32x16xf32>
    %cst_139 = arith.constant 0.000000e+00 : f32
    %359 = vector.broadcast %cst_139 : f32 to vector<32x16xf32>
    %360 = arith.maximumf %358, %359 : vector<32x16xf32>
    %c0_140 = arith.constant 0 : index
    %c0_141 = arith.constant 0 : index
    %c0_142 = arith.constant 0 : index
    %361 = vector.load %arg2[%c0_140, %c0_141, %c0_142] : memref<1x8x1xf32, #tpu.memory_space<vmem>>, vector<1x8x1xf32>
    %362 = vector.shape_cast %361 : vector<1x8x1xf32> to vector<8x1xf32>
    %363 = vector.shape_cast %362 : vector<8x1xf32> to vector<8x1xf32>
    %364 = vector.broadcast %363 : vector<8x1xf32> to vector<8x16xf32>
    %365 = tpu.concatenate %360, %364 in 0 : vector<32x16xf32>, vector<8x16xf32> -> vector<40x16xf32>
    %c0_143 = arith.constant 0 : index
    %c0_144 = arith.constant 0 : index
    %366 = vector.load %arg11[%c0_143, %c0_144] : memref<64x40xf32, #tpu.memory_space<vmem>>, vector<64x40xf32>
    %c0_145 = arith.constant 0 : index
    %c0_146 = arith.constant 0 : index
    %367 = vector.load %arg12[%c0_145, %c0_146] : memref<16x1xf32, #tpu.memory_space<vmem>>, vector<16x1xf32>
    %cst_147 = arith.constant dense<0.000000e+00> : vector<64x16xf32>
    %368 = tpu.matmul %366, %365, %cst_147 {dimension_numbers = #tpu.dot_dimension_numbers<[1], [0], [0], [1], [0, 0, 1, 1], [], []>} : vector<64x40xf32>, vector<40x16xf32>, vector<64x16xf32> -> vector<64x16xf32>
    %cst_148 = arith.constant 0.000000e+00 : f32
    %369 = vector.broadcast %cst_148 : f32 to vector<16x64xf32>
    %370 = vector.extract_strided_slice %368 {offsets = [0, 0], sizes = [16, 16], strides = [1, 1]} : vector<64x16xf32> to vector<16x16xf32>
    %c0_149 = arith.constant 0 : index
    %c0_150 = arith.constant 0 : index
    %c0_151 = arith.constant 0 : index
    %371 = vector.load %arg13[%c0_149, %c0_150, %c0_151] : memref<4x16x64xf32, #tpu.memory_space<vmem>>, vector<1x16x64xf32>
    %372 = vector.shape_cast %371 : vector<1x16x64xf32> to vector<16x64xf32>
    %cst_152 = arith.constant dense<0.000000e+00> : vector<16x64xf32>
    %373 = tpu.matmul %370, %372, %cst_152 {dimension_numbers = #tpu.dot_dimension_numbers<[1], [0], [0], [1], [0, 0, 1, 1], [], []>} : vector<16x16xf32>, vector<16x64xf32>, vector<16x64xf32> -> vector<16x64xf32>
    %374 = arith.addf %369, %373 : vector<16x64xf32>
    %375 = vector.extract_strided_slice %368 {offsets = [16, 0], sizes = [16, 16], strides = [1, 1]} : vector<64x16xf32> to vector<16x16xf32>
    %c1 = arith.constant 1 : index
    %c0_153 = arith.constant 0 : index
    %c0_154 = arith.constant 0 : index
    %376 = vector.load %arg13[%c1, %c0_153, %c0_154] : memref<4x16x64xf32, #tpu.memory_space<vmem>>, vector<1x16x64xf32>
    %377 = vector.shape_cast %376 : vector<1x16x64xf32> to vector<16x64xf32>
    %cst_155 = arith.constant dense<0.000000e+00> : vector<16x64xf32>
    %378 = tpu.matmul %375, %377, %cst_155 {dimension_numbers = #tpu.dot_dimension_numbers<[1], [0], [0], [1], [0, 0, 1, 1], [], []>} : vector<16x16xf32>, vector<16x64xf32>, vector<16x64xf32> -> vector<16x64xf32>
    %379 = arith.addf %374, %378 : vector<16x64xf32>
    %380 = vector.extract_strided_slice %368 {offsets = [32, 0], sizes = [16, 16], strides = [1, 1]} : vector<64x16xf32> to vector<16x16xf32>
    %c2 = arith.constant 2 : index
    %c0_156 = arith.constant 0 : index
    %c0_157 = arith.constant 0 : index
    %381 = vector.load %arg13[%c2, %c0_156, %c0_157] : memref<4x16x64xf32, #tpu.memory_space<vmem>>, vector<1x16x64xf32>
    %382 = vector.shape_cast %381 : vector<1x16x64xf32> to vector<16x64xf32>
    %cst_158 = arith.constant dense<0.000000e+00> : vector<16x64xf32>
    %383 = tpu.matmul %380, %382, %cst_158 {dimension_numbers = #tpu.dot_dimension_numbers<[1], [0], [0], [1], [0, 0, 1, 1], [], []>} : vector<16x16xf32>, vector<16x64xf32>, vector<16x64xf32> -> vector<16x64xf32>
    %384 = arith.addf %379, %383 : vector<16x64xf32>
    %385 = vector.extract_strided_slice %368 {offsets = [48, 0], sizes = [16, 16], strides = [1, 1]} : vector<64x16xf32> to vector<16x16xf32>
    %c3 = arith.constant 3 : index
    %c0_159 = arith.constant 0 : index
    %c0_160 = arith.constant 0 : index
    %386 = vector.load %arg13[%c3, %c0_159, %c0_160] : memref<4x16x64xf32, #tpu.memory_space<vmem>>, vector<1x16x64xf32>
    %387 = vector.shape_cast %386 : vector<1x16x64xf32> to vector<16x64xf32>
    %cst_161 = arith.constant dense<0.000000e+00> : vector<16x64xf32>
    %388 = tpu.matmul %385, %387, %cst_161 {dimension_numbers = #tpu.dot_dimension_numbers<[1], [0], [0], [1], [0, 0, 1, 1], [], []>} : vector<16x16xf32>, vector<16x64xf32>, vector<16x64xf32> -> vector<16x64xf32>
    %389 = arith.addf %384, %388 : vector<16x64xf32>
    %390 = vector.broadcast %367 : vector<16x1xf32> to vector<16x64xf32>
    %391 = arith.addf %389, %390 : vector<16x64xf32>
    %392 = tpu.concatenate %391, %237 in 0 : vector<16x64xf32>, vector<16x64xf32> -> vector<32x64xf32>
    %c0_162 = arith.constant 0 : index
    %c0_163 = arith.constant 0 : index
    %393 = vector.load %arg14[%c0_162, %c0_163] : memref<16x288xf32, #tpu.memory_space<vmem>>, vector<16x288xf32>
    %c0_164 = arith.constant 0 : index
    %c0_165 = arith.constant 0 : index
    %394 = vector.load %arg15[%c0_164, %c0_165] : memref<16x1xf32, #tpu.memory_space<vmem>>, vector<16x1xf32>
    %395 = tpu.iota {dimensions = array<i32: 1>} : vector<1x64xi32>
    %c7_i32_166 = arith.constant 7 : i32
    %396 = vector.broadcast %c7_i32_166 : i32 to vector<1x64xi32>
    %397 = arith.andi %395, %396 : vector<1x64xi32>
    %cst_167 = arith.constant 0.000000e+00 : f32
    %398 = vector.broadcast %cst_167 : f32 to vector<32x9xf32>
    %399 = vector.extract_strided_slice %392 {offsets = [0, 0], sizes = [32, 55], strides = [1, 1]} : vector<32x64xf32> to vector<32x55xf32>
    %400 = tpu.concatenate %398, %399 in 1 : vector<32x9xf32>, vector<32x55xf32> -> vector<32x64xf32>
    %c-1_i32_168 = arith.constant -1 : i32
    %401 = vector.broadcast %c-1_i32_168 : i32 to vector<1x64xi32>
    %402 = arith.addi %397, %401 : vector<1x64xi32>
    %c0_i32_169 = arith.constant 0 : i32
    %403 = vector.broadcast %c0_i32_169 : i32 to vector<1x64xi32>
    %404 = arith.cmpi sge, %402, %403 : vector<1x64xi32>
    %c-1_i32_170 = arith.constant -1 : i32
    %405 = vector.broadcast %c-1_i32_170 : i32 to vector<1x64xi32>
    %406 = arith.addi %397, %405 : vector<1x64xi32>
    %c7_i32_171 = arith.constant 7 : i32
    %407 = vector.broadcast %c7_i32_171 : i32 to vector<1x64xi32>
    %408 = arith.cmpi sle, %406, %407 : vector<1x64xi32>
    %409 = arith.andi %404, %408 : vector<1x64xi1>
    %cst_172 = arith.constant 0.000000e+00 : f32
    %410 = vector.shape_cast %409 : vector<1x64xi1> to vector<1x64xi1>
    %411 = vector.broadcast %410 : vector<1x64xi1> to vector<32x64xi1>
    %412 = vector.broadcast %cst_172 : f32 to vector<32x64xf32>
    %413 = arith.select %411, %400, %412 : vector<32x64xi1>, vector<32x64xf32>
    %cst_173 = arith.constant 0.000000e+00 : f32
    %414 = vector.broadcast %cst_173 : f32 to vector<32x8xf32>
    %415 = vector.extract_strided_slice %392 {offsets = [0, 0], sizes = [32, 56], strides = [1, 1]} : vector<32x64xf32> to vector<32x56xf32>
    %416 = tpu.concatenate %414, %415 in 1 : vector<32x8xf32>, vector<32x56xf32> -> vector<32x64xf32>
    %cst_174 = arith.constant 0.000000e+00 : f32
    %417 = vector.broadcast %cst_174 : f32 to vector<32x7xf32>
    %418 = vector.extract_strided_slice %392 {offsets = [0, 0], sizes = [32, 57], strides = [1, 1]} : vector<32x64xf32> to vector<32x57xf32>
    %419 = tpu.concatenate %417, %418 in 1 : vector<32x7xf32>, vector<32x57xf32> -> vector<32x64xf32>
    %c1_i32_175 = arith.constant 1 : i32
    %420 = vector.broadcast %c1_i32_175 : i32 to vector<1x64xi32>
    %421 = arith.addi %397, %420 : vector<1x64xi32>
    %c0_i32_176 = arith.constant 0 : i32
    %422 = vector.broadcast %c0_i32_176 : i32 to vector<1x64xi32>
    %423 = arith.cmpi sge, %421, %422 : vector<1x64xi32>
    %c1_i32_177 = arith.constant 1 : i32
    %424 = vector.broadcast %c1_i32_177 : i32 to vector<1x64xi32>
    %425 = arith.addi %397, %424 : vector<1x64xi32>
    %c7_i32_178 = arith.constant 7 : i32
    %426 = vector.broadcast %c7_i32_178 : i32 to vector<1x64xi32>
    %427 = arith.cmpi sle, %425, %426 : vector<1x64xi32>
    %428 = arith.andi %423, %427 : vector<1x64xi1>
    %cst_179 = arith.constant 0.000000e+00 : f32
    %429 = vector.shape_cast %428 : vector<1x64xi1> to vector<1x64xi1>
    %430 = vector.broadcast %429 : vector<1x64xi1> to vector<32x64xi1>
    %431 = vector.broadcast %cst_179 : f32 to vector<32x64xf32>
    %432 = arith.select %430, %419, %431 : vector<32x64xi1>, vector<32x64xf32>
    %cst_180 = arith.constant 0.000000e+00 : f32
    %433 = vector.broadcast %cst_180 : f32 to vector<32x1xf32>
    %434 = vector.extract_strided_slice %392 {offsets = [0, 0], sizes = [32, 63], strides = [1, 1]} : vector<32x64xf32> to vector<32x63xf32>
    %435 = tpu.concatenate %433, %434 in 1 : vector<32x1xf32>, vector<32x63xf32> -> vector<32x64xf32>
    %c-1_i32_181 = arith.constant -1 : i32
    %436 = vector.broadcast %c-1_i32_181 : i32 to vector<1x64xi32>
    %437 = arith.addi %397, %436 : vector<1x64xi32>
    %c0_i32_182 = arith.constant 0 : i32
    %438 = vector.broadcast %c0_i32_182 : i32 to vector<1x64xi32>
    %439 = arith.cmpi sge, %437, %438 : vector<1x64xi32>
    %c-1_i32_183 = arith.constant -1 : i32
    %440 = vector.broadcast %c-1_i32_183 : i32 to vector<1x64xi32>
    %441 = arith.addi %397, %440 : vector<1x64xi32>
    %c7_i32_184 = arith.constant 7 : i32
    %442 = vector.broadcast %c7_i32_184 : i32 to vector<1x64xi32>
    %443 = arith.cmpi sle, %441, %442 : vector<1x64xi32>
    %444 = arith.andi %439, %443 : vector<1x64xi1>
    %cst_185 = arith.constant 0.000000e+00 : f32
    %445 = vector.shape_cast %444 : vector<1x64xi1> to vector<1x64xi1>
    %446 = vector.broadcast %445 : vector<1x64xi1> to vector<32x64xi1>
    %447 = vector.broadcast %cst_185 : f32 to vector<32x64xf32>
    %448 = arith.select %446, %435, %447 : vector<32x64xi1>, vector<32x64xf32>
    %cst_186 = arith.constant 0.000000e+00 : f32
    %449 = vector.broadcast %cst_186 : f32 to vector<32x1xf32>
    %450 = vector.extract_strided_slice %392 {offsets = [0, 1], sizes = [32, 63], strides = [1, 1]} : vector<32x64xf32> to vector<32x63xf32>
    %451 = tpu.concatenate %450, %449 in 1 : vector<32x63xf32>, vector<32x1xf32> -> vector<32x64xf32>
    %c1_i32_187 = arith.constant 1 : i32
    %452 = vector.broadcast %c1_i32_187 : i32 to vector<1x64xi32>
    %453 = arith.addi %397, %452 : vector<1x64xi32>
    %c0_i32_188 = arith.constant 0 : i32
    %454 = vector.broadcast %c0_i32_188 : i32 to vector<1x64xi32>
    %455 = arith.cmpi sge, %453, %454 : vector<1x64xi32>
    %c1_i32_189 = arith.constant 1 : i32
    %456 = vector.broadcast %c1_i32_189 : i32 to vector<1x64xi32>
    %457 = arith.addi %397, %456 : vector<1x64xi32>
    %c7_i32_190 = arith.constant 7 : i32
    %458 = vector.broadcast %c7_i32_190 : i32 to vector<1x64xi32>
    %459 = arith.cmpi sle, %457, %458 : vector<1x64xi32>
    %460 = arith.andi %455, %459 : vector<1x64xi1>
    %cst_191 = arith.constant 0.000000e+00 : f32
    %461 = vector.shape_cast %460 : vector<1x64xi1> to vector<1x64xi1>
    %462 = vector.broadcast %461 : vector<1x64xi1> to vector<32x64xi1>
    %463 = vector.broadcast %cst_191 : f32 to vector<32x64xf32>
    %464 = arith.select %462, %451, %463 : vector<32x64xi1>, vector<32x64xf32>
    %cst_192 = arith.constant 0.000000e+00 : f32
    %465 = vector.broadcast %cst_192 : f32 to vector<32x7xf32>
    %466 = vector.extract_strided_slice %392 {offsets = [0, 7], sizes = [32, 57], strides = [1, 1]} : vector<32x64xf32> to vector<32x57xf32>
    %467 = tpu.concatenate %466, %465 in 1 : vector<32x57xf32>, vector<32x7xf32> -> vector<32x64xf32>
    %c-1_i32_193 = arith.constant -1 : i32
    %468 = vector.broadcast %c-1_i32_193 : i32 to vector<1x64xi32>
    %469 = arith.addi %397, %468 : vector<1x64xi32>
    %c0_i32_194 = arith.constant 0 : i32
    %470 = vector.broadcast %c0_i32_194 : i32 to vector<1x64xi32>
    %471 = arith.cmpi sge, %469, %470 : vector<1x64xi32>
    %c-1_i32_195 = arith.constant -1 : i32
    %472 = vector.broadcast %c-1_i32_195 : i32 to vector<1x64xi32>
    %473 = arith.addi %397, %472 : vector<1x64xi32>
    %c7_i32_196 = arith.constant 7 : i32
    %474 = vector.broadcast %c7_i32_196 : i32 to vector<1x64xi32>
    %475 = arith.cmpi sle, %473, %474 : vector<1x64xi32>
    %476 = arith.andi %471, %475 : vector<1x64xi1>
    %cst_197 = arith.constant 0.000000e+00 : f32
    %477 = vector.shape_cast %476 : vector<1x64xi1> to vector<1x64xi1>
    %478 = vector.broadcast %477 : vector<1x64xi1> to vector<32x64xi1>
    %479 = vector.broadcast %cst_197 : f32 to vector<32x64xf32>
    %480 = arith.select %478, %467, %479 : vector<32x64xi1>, vector<32x64xf32>
    %cst_198 = arith.constant 0.000000e+00 : f32
    %481 = vector.broadcast %cst_198 : f32 to vector<32x8xf32>
    %482 = vector.extract_strided_slice %392 {offsets = [0, 8], sizes = [32, 56], strides = [1, 1]} : vector<32x64xf32> to vector<32x56xf32>
    %483 = tpu.concatenate %482, %481 in 1 : vector<32x56xf32>, vector<32x8xf32> -> vector<32x64xf32>
    %cst_199 = arith.constant 0.000000e+00 : f32
    %484 = vector.broadcast %cst_199 : f32 to vector<32x9xf32>
    %485 = vector.extract_strided_slice %392 {offsets = [0, 9], sizes = [32, 55], strides = [1, 1]} : vector<32x64xf32> to vector<32x55xf32>
    %486 = tpu.concatenate %485, %484 in 1 : vector<32x55xf32>, vector<32x9xf32> -> vector<32x64xf32>
    %c1_i32_200 = arith.constant 1 : i32
    %487 = vector.broadcast %c1_i32_200 : i32 to vector<1x64xi32>
    %488 = arith.addi %397, %487 : vector<1x64xi32>
    %c0_i32_201 = arith.constant 0 : i32
    %489 = vector.broadcast %c0_i32_201 : i32 to vector<1x64xi32>
    %490 = arith.cmpi sge, %488, %489 : vector<1x64xi32>
    %c1_i32_202 = arith.constant 1 : i32
    %491 = vector.broadcast %c1_i32_202 : i32 to vector<1x64xi32>
    %492 = arith.addi %397, %491 : vector<1x64xi32>
    %c7_i32_203 = arith.constant 7 : i32
    %493 = vector.broadcast %c7_i32_203 : i32 to vector<1x64xi32>
    %494 = arith.cmpi sle, %492, %493 : vector<1x64xi32>
    %495 = arith.andi %490, %494 : vector<1x64xi1>
    %cst_204 = arith.constant 0.000000e+00 : f32
    %496 = vector.shape_cast %495 : vector<1x64xi1> to vector<1x64xi1>
    %497 = vector.broadcast %496 : vector<1x64xi1> to vector<32x64xi1>
    %498 = vector.broadcast %cst_204 : f32 to vector<32x64xf32>
    %499 = arith.select %497, %486, %498 : vector<32x64xi1>, vector<32x64xf32>
    %500 = tpu.concatenate %413, %416, %432, %448, %392, %464, %480, %483, %499 in 0 : vector<32x64xf32>, vector<32x64xf32>, vector<32x64xf32>, vector<32x64xf32>, vector<32x64xf32>, vector<32x64xf32>, vector<32x64xf32>, vector<32x64xf32>, vector<32x64xf32> -> vector<288x64xf32>
    %cst_205 = arith.constant dense<0.000000e+00> : vector<16x64xf32>
    %501 = tpu.matmul %393, %500, %cst_205 {dimension_numbers = #tpu.dot_dimension_numbers<[1], [0], [0], [1], [0, 0, 1, 1], [], []>} : vector<16x288xf32>, vector<288x64xf32>, vector<16x64xf32> -> vector<16x64xf32>
    %502 = vector.broadcast %394 : vector<16x1xf32> to vector<16x64xf32>
    %503 = arith.addf %501, %502 : vector<16x64xf32>
    %cst_206 = arith.constant 0.000000e+00 : f32
    %504 = vector.broadcast %cst_206 : f32 to vector<16x64xf32>
    %505 = arith.maximumf %503, %504 : vector<16x64xf32>
    %c0_207 = arith.constant 0 : index
    %c0_208 = arith.constant 0 : index
    %506 = vector.load %arg16[%c0_207, %c0_208] : memref<32x16xf32, #tpu.memory_space<vmem>>, vector<32x16xf32>
    %c0_209 = arith.constant 0 : index
    %c0_210 = arith.constant 0 : index
    %507 = vector.load %arg17[%c0_209, %c0_210] : memref<8x1xf32, #tpu.memory_space<vmem>>, vector<8x1xf32>
    %cst_211 = arith.constant dense<0.000000e+00> : vector<32x64xf32>
    %508 = tpu.matmul %506, %505, %cst_211 {dimension_numbers = #tpu.dot_dimension_numbers<[1], [0], [0], [1], [0, 0, 1, 1], [], []>} : vector<32x16xf32>, vector<16x64xf32>, vector<32x64xf32> -> vector<32x64xf32>
    %cst_212 = arith.constant 0.000000e+00 : f32
    %509 = vector.broadcast %cst_212 : f32 to vector<8x256xf32>
    %510 = vector.extract_strided_slice %508 {offsets = [0, 0], sizes = [8, 64], strides = [1, 1]} : vector<32x64xf32> to vector<8x64xf32>
    %c0_213 = arith.constant 0 : index
    %c0_214 = arith.constant 0 : index
    %c0_215 = arith.constant 0 : index
    %511 = vector.load %arg18[%c0_213, %c0_214, %c0_215] : memref<4x64x256xf32, #tpu.memory_space<vmem>>, vector<1x64x256xf32>
    %512 = vector.shape_cast %511 : vector<1x64x256xf32> to vector<64x256xf32>
    %cst_216 = arith.constant dense<0.000000e+00> : vector<8x256xf32>
    %513 = tpu.matmul %510, %512, %cst_216 {dimension_numbers = #tpu.dot_dimension_numbers<[1], [0], [0], [1], [0, 0, 1, 1], [], []>} : vector<8x64xf32>, vector<64x256xf32>, vector<8x256xf32> -> vector<8x256xf32>
    %514 = arith.addf %509, %513 : vector<8x256xf32>
    %515 = vector.extract_strided_slice %508 {offsets = [8, 0], sizes = [8, 64], strides = [1, 1]} : vector<32x64xf32> to vector<8x64xf32>
    %c1_217 = arith.constant 1 : index
    %c0_218 = arith.constant 0 : index
    %c0_219 = arith.constant 0 : index
    %516 = vector.load %arg18[%c1_217, %c0_218, %c0_219] : memref<4x64x256xf32, #tpu.memory_space<vmem>>, vector<1x64x256xf32>
    %517 = vector.shape_cast %516 : vector<1x64x256xf32> to vector<64x256xf32>
    %cst_220 = arith.constant dense<0.000000e+00> : vector<8x256xf32>
    %518 = tpu.matmul %515, %517, %cst_220 {dimension_numbers = #tpu.dot_dimension_numbers<[1], [0], [0], [1], [0, 0, 1, 1], [], []>} : vector<8x64xf32>, vector<64x256xf32>, vector<8x256xf32> -> vector<8x256xf32>
    %519 = arith.addf %514, %518 : vector<8x256xf32>
    %520 = vector.extract_strided_slice %508 {offsets = [16, 0], sizes = [8, 64], strides = [1, 1]} : vector<32x64xf32> to vector<8x64xf32>
    %c2_221 = arith.constant 2 : index
    %c0_222 = arith.constant 0 : index
    %c0_223 = arith.constant 0 : index
    %521 = vector.load %arg18[%c2_221, %c0_222, %c0_223] : memref<4x64x256xf32, #tpu.memory_space<vmem>>, vector<1x64x256xf32>
    %522 = vector.shape_cast %521 : vector<1x64x256xf32> to vector<64x256xf32>
    %cst_224 = arith.constant dense<0.000000e+00> : vector<8x256xf32>
    %523 = tpu.matmul %520, %522, %cst_224 {dimension_numbers = #tpu.dot_dimension_numbers<[1], [0], [0], [1], [0, 0, 1, 1], [], []>} : vector<8x64xf32>, vector<64x256xf32>, vector<8x256xf32> -> vector<8x256xf32>
    %524 = arith.addf %519, %523 : vector<8x256xf32>
    %525 = vector.extract_strided_slice %508 {offsets = [24, 0], sizes = [8, 64], strides = [1, 1]} : vector<32x64xf32> to vector<8x64xf32>
    %c3_225 = arith.constant 3 : index
    %c0_226 = arith.constant 0 : index
    %c0_227 = arith.constant 0 : index
    %526 = vector.load %arg18[%c3_225, %c0_226, %c0_227] : memref<4x64x256xf32, #tpu.memory_space<vmem>>, vector<1x64x256xf32>
    %527 = vector.shape_cast %526 : vector<1x64x256xf32> to vector<64x256xf32>
    %cst_228 = arith.constant dense<0.000000e+00> : vector<8x256xf32>
    %528 = tpu.matmul %525, %527, %cst_228 {dimension_numbers = #tpu.dot_dimension_numbers<[1], [0], [0], [1], [0, 0, 1, 1], [], []>} : vector<8x64xf32>, vector<64x256xf32>, vector<8x256xf32> -> vector<8x256xf32>
    %529 = arith.addf %524, %528 : vector<8x256xf32>
    %530 = vector.broadcast %507 : vector<8x1xf32> to vector<8x256xf32>
    %531 = arith.addf %529, %530 : vector<8x256xf32>
    %532 = tpu.concatenate %531, %114 in 0 : vector<8x256xf32>, vector<8x256xf32> -> vector<16x256xf32>
    %c0_229 = arith.constant 0 : index
    %c0_230 = arith.constant 0 : index
    %533 = vector.load %arg19[%c0_229, %c0_230] : memref<8x144xf32, #tpu.memory_space<vmem>>, vector<8x144xf32>
    %c0_231 = arith.constant 0 : index
    %c0_232 = arith.constant 0 : index
    %534 = vector.load %arg20[%c0_231, %c0_232] : memref<8x1xf32, #tpu.memory_space<vmem>>, vector<8x1xf32>
    %535 = tpu.iota {dimensions = array<i32: 1>} : vector<1x256xi32>
    %c15_i32_233 = arith.constant 15 : i32
    %536 = vector.broadcast %c15_i32_233 : i32 to vector<1x256xi32>
    %537 = arith.andi %535, %536 : vector<1x256xi32>
    %cst_234 = arith.constant 0.000000e+00 : f32
    %538 = vector.broadcast %cst_234 : f32 to vector<16x17xf32>
    %539 = vector.extract_strided_slice %532 {offsets = [0, 0], sizes = [16, 239], strides = [1, 1]} : vector<16x256xf32> to vector<16x239xf32>
    %540 = tpu.concatenate %538, %539 in 1 : vector<16x17xf32>, vector<16x239xf32> -> vector<16x256xf32>
    %c-1_i32_235 = arith.constant -1 : i32
    %541 = vector.broadcast %c-1_i32_235 : i32 to vector<1x256xi32>
    %542 = arith.addi %537, %541 : vector<1x256xi32>
    %c0_i32_236 = arith.constant 0 : i32
    %543 = vector.broadcast %c0_i32_236 : i32 to vector<1x256xi32>
    %544 = arith.cmpi sge, %542, %543 : vector<1x256xi32>
    %c-1_i32_237 = arith.constant -1 : i32
    %545 = vector.broadcast %c-1_i32_237 : i32 to vector<1x256xi32>
    %546 = arith.addi %537, %545 : vector<1x256xi32>
    %c15_i32_238 = arith.constant 15 : i32
    %547 = vector.broadcast %c15_i32_238 : i32 to vector<1x256xi32>
    %548 = arith.cmpi sle, %546, %547 : vector<1x256xi32>
    %549 = arith.andi %544, %548 : vector<1x256xi1>
    %cst_239 = arith.constant 0.000000e+00 : f32
    %550 = vector.shape_cast %549 : vector<1x256xi1> to vector<1x256xi1>
    %551 = vector.broadcast %550 : vector<1x256xi1> to vector<16x256xi1>
    %552 = vector.broadcast %cst_239 : f32 to vector<16x256xf32>
    %553 = arith.select %551, %540, %552 : vector<16x256xi1>, vector<16x256xf32>
    %cst_240 = arith.constant 0.000000e+00 : f32
    %554 = vector.broadcast %cst_240 : f32 to vector<16x16xf32>
    %555 = vector.extract_strided_slice %532 {offsets = [0, 0], sizes = [16, 240], strides = [1, 1]} : vector<16x256xf32> to vector<16x240xf32>
    %556 = tpu.concatenate %554, %555 in 1 : vector<16x16xf32>, vector<16x240xf32> -> vector<16x256xf32>
    %cst_241 = arith.constant 0.000000e+00 : f32
    %557 = vector.broadcast %cst_241 : f32 to vector<16x15xf32>
    %558 = vector.extract_strided_slice %532 {offsets = [0, 0], sizes = [16, 241], strides = [1, 1]} : vector<16x256xf32> to vector<16x241xf32>
    %559 = tpu.concatenate %557, %558 in 1 : vector<16x15xf32>, vector<16x241xf32> -> vector<16x256xf32>
    %c1_i32_242 = arith.constant 1 : i32
    %560 = vector.broadcast %c1_i32_242 : i32 to vector<1x256xi32>
    %561 = arith.addi %537, %560 : vector<1x256xi32>
    %c0_i32_243 = arith.constant 0 : i32
    %562 = vector.broadcast %c0_i32_243 : i32 to vector<1x256xi32>
    %563 = arith.cmpi sge, %561, %562 : vector<1x256xi32>
    %c1_i32_244 = arith.constant 1 : i32
    %564 = vector.broadcast %c1_i32_244 : i32 to vector<1x256xi32>
    %565 = arith.addi %537, %564 : vector<1x256xi32>
    %c15_i32_245 = arith.constant 15 : i32
    %566 = vector.broadcast %c15_i32_245 : i32 to vector<1x256xi32>
    %567 = arith.cmpi sle, %565, %566 : vector<1x256xi32>
    %568 = arith.andi %563, %567 : vector<1x256xi1>
    %cst_246 = arith.constant 0.000000e+00 : f32
    %569 = vector.shape_cast %568 : vector<1x256xi1> to vector<1x256xi1>
    %570 = vector.broadcast %569 : vector<1x256xi1> to vector<16x256xi1>
    %571 = vector.broadcast %cst_246 : f32 to vector<16x256xf32>
    %572 = arith.select %570, %559, %571 : vector<16x256xi1>, vector<16x256xf32>
    %cst_247 = arith.constant 0.000000e+00 : f32
    %573 = vector.broadcast %cst_247 : f32 to vector<16x1xf32>
    %574 = vector.extract_strided_slice %532 {offsets = [0, 0], sizes = [16, 255], strides = [1, 1]} : vector<16x256xf32> to vector<16x255xf32>
    %575 = tpu.concatenate %573, %574 in 1 : vector<16x1xf32>, vector<16x255xf32> -> vector<16x256xf32>
    %c-1_i32_248 = arith.constant -1 : i32
    %576 = vector.broadcast %c-1_i32_248 : i32 to vector<1x256xi32>
    %577 = arith.addi %537, %576 : vector<1x256xi32>
    %c0_i32_249 = arith.constant 0 : i32
    %578 = vector.broadcast %c0_i32_249 : i32 to vector<1x256xi32>
    %579 = arith.cmpi sge, %577, %578 : vector<1x256xi32>
    %c-1_i32_250 = arith.constant -1 : i32
    %580 = vector.broadcast %c-1_i32_250 : i32 to vector<1x256xi32>
    %581 = arith.addi %537, %580 : vector<1x256xi32>
    %c15_i32_251 = arith.constant 15 : i32
    %582 = vector.broadcast %c15_i32_251 : i32 to vector<1x256xi32>
    %583 = arith.cmpi sle, %581, %582 : vector<1x256xi32>
    %584 = arith.andi %579, %583 : vector<1x256xi1>
    %cst_252 = arith.constant 0.000000e+00 : f32
    %585 = vector.shape_cast %584 : vector<1x256xi1> to vector<1x256xi1>
    %586 = vector.broadcast %585 : vector<1x256xi1> to vector<16x256xi1>
    %587 = vector.broadcast %cst_252 : f32 to vector<16x256xf32>
    %588 = arith.select %586, %575, %587 : vector<16x256xi1>, vector<16x256xf32>
    %cst_253 = arith.constant 0.000000e+00 : f32
    %589 = vector.broadcast %cst_253 : f32 to vector<16x1xf32>
    %590 = vector.extract_strided_slice %532 {offsets = [0, 1], sizes = [16, 255], strides = [1, 1]} : vector<16x256xf32> to vector<16x255xf32>
    %591 = tpu.concatenate %590, %589 in 1 : vector<16x255xf32>, vector<16x1xf32> -> vector<16x256xf32>
    %c1_i32_254 = arith.constant 1 : i32
    %592 = vector.broadcast %c1_i32_254 : i32 to vector<1x256xi32>
    %593 = arith.addi %537, %592 : vector<1x256xi32>
    %c0_i32_255 = arith.constant 0 : i32
    %594 = vector.broadcast %c0_i32_255 : i32 to vector<1x256xi32>
    %595 = arith.cmpi sge, %593, %594 : vector<1x256xi32>
    %c1_i32_256 = arith.constant 1 : i32
    %596 = vector.broadcast %c1_i32_256 : i32 to vector<1x256xi32>
    %597 = arith.addi %537, %596 : vector<1x256xi32>
    %c15_i32_257 = arith.constant 15 : i32
    %598 = vector.broadcast %c15_i32_257 : i32 to vector<1x256xi32>
    %599 = arith.cmpi sle, %597, %598 : vector<1x256xi32>
    %600 = arith.andi %595, %599 : vector<1x256xi1>
    %cst_258 = arith.constant 0.000000e+00 : f32
    %601 = vector.shape_cast %600 : vector<1x256xi1> to vector<1x256xi1>
    %602 = vector.broadcast %601 : vector<1x256xi1> to vector<16x256xi1>
    %603 = vector.broadcast %cst_258 : f32 to vector<16x256xf32>
    %604 = arith.select %602, %591, %603 : vector<16x256xi1>, vector<16x256xf32>
    %cst_259 = arith.constant 0.000000e+00 : f32
    %605 = vector.broadcast %cst_259 : f32 to vector<16x15xf32>
    %606 = vector.extract_strided_slice %532 {offsets = [0, 15], sizes = [16, 241], strides = [1, 1]} : vector<16x256xf32> to vector<16x241xf32>
    %607 = tpu.concatenate %606, %605 in 1 : vector<16x241xf32>, vector<16x15xf32> -> vector<16x256xf32>
    %c-1_i32_260 = arith.constant -1 : i32
    %608 = vector.broadcast %c-1_i32_260 : i32 to vector<1x256xi32>
    %609 = arith.addi %537, %608 : vector<1x256xi32>
    %c0_i32_261 = arith.constant 0 : i32
    %610 = vector.broadcast %c0_i32_261 : i32 to vector<1x256xi32>
    %611 = arith.cmpi sge, %609, %610 : vector<1x256xi32>
    %c-1_i32_262 = arith.constant -1 : i32
    %612 = vector.broadcast %c-1_i32_262 : i32 to vector<1x256xi32>
    %613 = arith.addi %537, %612 : vector<1x256xi32>
    %c15_i32_263 = arith.constant 15 : i32
    %614 = vector.broadcast %c15_i32_263 : i32 to vector<1x256xi32>
    %615 = arith.cmpi sle, %613, %614 : vector<1x256xi32>
    %616 = arith.andi %611, %615 : vector<1x256xi1>
    %cst_264 = arith.constant 0.000000e+00 : f32
    %617 = vector.shape_cast %616 : vector<1x256xi1> to vector<1x256xi1>
    %618 = vector.broadcast %617 : vector<1x256xi1> to vector<16x256xi1>
    %619 = vector.broadcast %cst_264 : f32 to vector<16x256xf32>
    %620 = arith.select %618, %607, %619 : vector<16x256xi1>, vector<16x256xf32>
    %cst_265 = arith.constant 0.000000e+00 : f32
    %621 = vector.broadcast %cst_265 : f32 to vector<16x16xf32>
    %622 = vector.extract_strided_slice %532 {offsets = [0, 16], sizes = [16, 240], strides = [1, 1]} : vector<16x256xf32> to vector<16x240xf32>
    %623 = tpu.concatenate %622, %621 in 1 : vector<16x240xf32>, vector<16x16xf32> -> vector<16x256xf32>
    %cst_266 = arith.constant 0.000000e+00 : f32
    %624 = vector.broadcast %cst_266 : f32 to vector<16x17xf32>
    %625 = vector.extract_strided_slice %532 {offsets = [0, 17], sizes = [16, 239], strides = [1, 1]} : vector<16x256xf32> to vector<16x239xf32>
    %626 = tpu.concatenate %625, %624 in 1 : vector<16x239xf32>, vector<16x17xf32> -> vector<16x256xf32>
    %c1_i32_267 = arith.constant 1 : i32
    %627 = vector.broadcast %c1_i32_267 : i32 to vector<1x256xi32>
    %628 = arith.addi %537, %627 : vector<1x256xi32>
    %c0_i32_268 = arith.constant 0 : i32
    %629 = vector.broadcast %c0_i32_268 : i32 to vector<1x256xi32>
    %630 = arith.cmpi sge, %628, %629 : vector<1x256xi32>
    %c1_i32_269 = arith.constant 1 : i32
    %631 = vector.broadcast %c1_i32_269 : i32 to vector<1x256xi32>
    %632 = arith.addi %537, %631 : vector<1x256xi32>
    %c15_i32_270 = arith.constant 15 : i32
    %633 = vector.broadcast %c15_i32_270 : i32 to vector<1x256xi32>
    %634 = arith.cmpi sle, %632, %633 : vector<1x256xi32>
    %635 = arith.andi %630, %634 : vector<1x256xi1>
    %cst_271 = arith.constant 0.000000e+00 : f32
    %636 = vector.shape_cast %635 : vector<1x256xi1> to vector<1x256xi1>
    %637 = vector.broadcast %636 : vector<1x256xi1> to vector<16x256xi1>
    %638 = vector.broadcast %cst_271 : f32 to vector<16x256xf32>
    %639 = arith.select %637, %626, %638 : vector<16x256xi1>, vector<16x256xf32>
    %640 = tpu.concatenate %553, %556, %572, %588, %532, %604, %620, %623, %639 in 0 : vector<16x256xf32>, vector<16x256xf32>, vector<16x256xf32>, vector<16x256xf32>, vector<16x256xf32>, vector<16x256xf32>, vector<16x256xf32>, vector<16x256xf32>, vector<16x256xf32> -> vector<144x256xf32>
    %cst_272 = arith.constant dense<0.000000e+00> : vector<8x256xf32>
    %641 = tpu.matmul %533, %640, %cst_272 {dimension_numbers = #tpu.dot_dimension_numbers<[1], [0], [0], [1], [0, 0, 1, 1], [], []>} : vector<8x144xf32>, vector<144x256xf32>, vector<8x256xf32> -> vector<8x256xf32>
    %642 = vector.broadcast %534 : vector<8x1xf32> to vector<8x256xf32>
    %643 = arith.addf %641, %642 : vector<8x256xf32>
    %cst_273 = arith.constant 0.000000e+00 : f32
    %644 = vector.broadcast %cst_273 : f32 to vector<8x256xf32>
    %645 = arith.maximumf %643, %644 : vector<8x256xf32>
    %c0_274 = arith.constant 0 : index
    %c0_275 = arith.constant 0 : index
    %646 = vector.load %arg21[%c0_274, %c0_275] : memref<1x8xf32, #tpu.memory_space<vmem>>, vector<1x8xf32>
    %cst_276 = arith.constant dense<0.000000e+00> : vector<1x256xf32>
    %647 = tpu.matmul %646, %645, %cst_276 {dimension_numbers = #tpu.dot_dimension_numbers<[1], [0], [0], [1], [0, 0, 1, 1], [], []>} : vector<1x8xf32>, vector<8x256xf32>, vector<1x256xf32> -> vector<1x256xf32>
    %c0_277 = arith.constant 0 : index
    %c0_278 = arith.constant 0 : index
    %648 = vector.load %arg22[%c0_277, %c0_278] : memref<1x1xf32, #tpu.memory_space<vmem>>, vector<1x1xf32>
    %649 = vector.broadcast %648 : vector<1x1xf32> to vector<1x256xf32>
    %650 = arith.addf %647, %649 : vector<1x256xf32>
    %c0_279 = arith.constant 0 : index
    %c0_280 = arith.constant 0 : index
    %c0_281 = arith.constant 0 : index
    %651 = vector.load %arg23[%c0_279, %c0_280, %c0_281] : memref<1x1x256xf32, #tpu.memory_space<vmem>>, vector<1x1x256xf32>
    %652 = vector.shape_cast %651 : vector<1x1x256xf32> to vector<1x256xf32>
    %653 = vector.shape_cast %650 : vector<1x256xf32> to vector<1x1x256xf32>
    tpu.vector_store %arg23[%c0_279, %c0_280, %c0_281], %653 {strides = array<i32>} : memref<1x1x256xf32, #tpu.memory_space<vmem>>, vector<1x1x256xf32>,
    return
  }
  func.func @transform_0(%arg0: i32) -> (i32, i32, i32) {
    %c0_i32 = arith.constant 0 : i32
    %c0_i32_0 = arith.constant 0 : i32
    %c0_i32_1 = arith.constant 0 : i32
    return %arg0, %c0_i32, %c0_i32_0 : i32, i32, i32
  }
  func.func @transform_1(%arg0: i32) -> (i32, i32, i32) {
    %c0_i32 = arith.constant 0 : i32
    %c0_i32_0 = arith.constant 0 : i32
    %c0_i32_1 = arith.constant 0 : i32
    return %arg0, %c0_i32, %c0_i32_0 : i32, i32, i32
  }
  func.func @transform_2(%arg0: i32) -> (i32, i32) {
    %c0_i32 = arith.constant 0 : i32
    %c0_i32_0 = arith.constant 0 : i32
    %c0_i32_1 = arith.constant 0 : i32
    return %c0_i32, %c0_i32_0 : i32, i32
  }
  func.func @transform_3(%arg0: i32) -> (i32, i32) {
    %c0_i32 = arith.constant 0 : i32
    %c0_i32_0 = arith.constant 0 : i32
    %c0_i32_1 = arith.constant 0 : i32
    return %c0_i32, %c0_i32_0 : i32, i32
  }
  func.func @transform_4(%arg0: i32) -> (i32, i32) {
    %c0_i32 = arith.constant 0 : i32
    %c0_i32_0 = arith.constant 0 : i32
    %c0_i32_1 = arith.constant 0 : i32
    return %c0_i32, %c0_i32_0 : i32, i32
  }
  func.func @transform_5(%arg0: i32) -> (i32, i32) {
    %c0_i32 = arith.constant 0 : i32
    %c0_i32_0 = arith.constant 0 : i32
    %c0_i32_1 = arith.constant 0 : i32
    return %c0_i32, %c0_i32_0 : i32, i32
  }
  func.func @transform_6(%arg0: i32) -> (i32, i32) {
    %c0_i32 = arith.constant 0 : i32
    %c0_i32_0 = arith.constant 0 : i32
    %c0_i32_1 = arith.constant 0 : i32
    return %c0_i32, %c0_i32_0 : i32, i32
  }
  func.func @transform_7(%arg0: i32) -> (i32, i32) {
    %c0_i32 = arith.constant 0 : i32
    %c0_i32_0 = arith.constant 0 : i32
    %c0_i32_1 = arith.constant 0 : i32
    return %c0_i32, %c0_i32_0 : i32, i32
  }
  func.func @transform_8(%arg0: i32) -> (i32, i32) {
    %c0_i32 = arith.constant 0 : i32
    %c0_i32_0 = arith.constant 0 : i32
    %c0_i32_1 = arith.constant 0 : i32
    return %c0_i32, %c0_i32_0 : i32, i32
  }
  func.func @transform_9(%arg0: i32) -> (i32, i32) {
    %c0_i32 = arith.constant 0 : i32
    %c0_i32_0 = arith.constant 0 : i32
    %c0_i32_1 = arith.constant 0 : i32
    return %c0_i32, %c0_i32_0 : i32, i32
  }
  func.func @transform_10(%arg0: i32) -> (i32, i32) {
    %c0_i32 = arith.constant 0 : i32
    %c0_i32_0 = arith.constant 0 : i32
    %c0_i32_1 = arith.constant 0 : i32
    return %c0_i32, %c0_i32_0 : i32, i32
  }
  func.func @transform_11(%arg0: i32) -> (i32, i32) {
    %c0_i32 = arith.constant 0 : i32
    %c0_i32_0 = arith.constant 0 : i32
    %c0_i32_1 = arith.constant 0 : i32
    return %c0_i32, %c0_i32_0 : i32, i32
  }
  func.func @transform_12(%arg0: i32) -> (i32, i32, i32) {
    %c0_i32 = arith.constant 0 : i32
    %c0_i32_0 = arith.constant 0 : i32
    %c0_i32_1 = arith.constant 0 : i32
    %c0_i32_2 = arith.constant 0 : i32
    return %c0_i32, %c0_i32_0, %c0_i32_1 : i32, i32, i32
  }
  func.func @transform_13(%arg0: i32) -> (i32, i32) {
    %c0_i32 = arith.constant 0 : i32
    %c0_i32_0 = arith.constant 0 : i32
    %c0_i32_1 = arith.constant 0 : i32
    return %c0_i32, %c0_i32_0 : i32, i32
  }
  func.func @transform_14(%arg0: i32) -> (i32, i32) {
    %c0_i32 = arith.constant 0 : i32
    %c0_i32_0 = arith.constant 0 : i32
    %c0_i32_1 = arith.constant 0 : i32
    return %c0_i32, %c0_i32_0 : i32, i32
  }
  func.func @transform_15(%arg0: i32) -> (i32, i32) {
    %c0_i32 = arith.constant 0 : i32
    %c0_i32_0 = arith.constant 0 : i32
    %c0_i32_1 = arith.constant 0 : i32
    return %c0_i32, %c0_i32_0 : i32, i32
  }
  func.func @transform_16(%arg0: i32) -> (i32, i32) {
    %c0_i32 = arith.constant 0 : i32
    %c0_i32_0 = arith.constant 0 : i32
    %c0_i32_1 = arith.constant 0 : i32
    return %c0_i32, %c0_i32_0 : i32, i32
  }
  func.func @transform_17(%arg0: i32) -> (i32, i32, i32) {
    %c0_i32 = arith.constant 0 : i32
    %c0_i32_0 = arith.constant 0 : i32
    %c0_i32_1 = arith.constant 0 : i32
    %c0_i32_2 = arith.constant 0 : i32
    return %c0_i32, %c0_i32_0, %c0_i32_1 : i32, i32, i32
  }
  func.func @transform_18(%arg0: i32) -> (i32, i32) {
    %c0_i32 = arith.constant 0 : i32
    %c0_i32_0 = arith.constant 0 : i32
    %c0_i32_1 = arith.constant 0 : i32
    return %c0_i32, %c0_i32_0 : i32, i32
  }
  func.func @transform_19(%arg0: i32) -> (i32, i32) {
    %c0_i32 = arith.constant 0 : i32
    %c0_i32_0 = arith.constant 0 : i32
    %c0_i32_1 = arith.constant 0 : i32
    return %c0_i32, %c0_i32_0 : i32, i32
  }
  func.func @transform_20(%arg0: i32) -> (i32, i32) {
    %c0_i32 = arith.constant 0 : i32
    %c0_i32_0 = arith.constant 0 : i32
    %c0_i32_1 = arith.constant 0 : i32
    return %c0_i32, %c0_i32_0 : i32, i32
  }
  func.func @transform_21(%arg0: i32) -> (i32, i32) {
    %c0_i32 = arith.constant 0 : i32
    %c0_i32_0 = arith.constant 0 : i32
    %c0_i32_1 = arith.constant 0 : i32
    return %c0_i32, %c0_i32_0 : i32, i32
  }
  func.func @transform_22(%arg0: i32) -> (i32, i32, i32) {
    %c0_i32 = arith.constant 0 : i32
    %c0_i32_0 = arith.constant 0 : i32
    %c0_i32_1 = arith.constant 0 : i32
    return %arg0, %c0_i32, %c0_i32_0 : i32, i32, i32
  }
}

</mosaic_0001>

<bundles_post_ra>
// kernel: tpu_custom_call.1
= control target key start
LH: loop header
LB: loop body
LE: loop exit
PB: predicated region body
PF: predicated region fallthrough
CT: control target
= control target key end

     0   :  { %s5175_s0 = inlined_call_operand.vmem [shape: f32[2,8,256], index: 0, kind: input, shape index: {}]   ;;  %s5176_s1 = inlined_call_operand.vmem [shape: f32[2,8,1], index: 1, kind: input, shape index: {}]   ;;  %s5177_s2 = inlined_call_operand.vmem [shape: f32[8,72], index: 2, kind: input, shape index: {}]   ;;  %s5178_s3 = inlined_call_operand.vmem [shape: f32[8,1], index: 3, kind: input, shape index: {}]   ;;  %s5179_s4 = inlined_call_operand.vmem [shape: f32[16,72], index: 4, kind: input, shape index: {}]   ;;  %s5180_s5 = inlined_call_operand.vmem [shape: f32[16,1], index: 5, kind: input, shape index: {}]   ;;  %s5181_s6 = inlined_call_operand.vmem [shape: f32[32,144], index: 6, kind: input, shape index: {}]   ;;  %s5182_s7 = inlined_call_operand.vmem [shape: f32[32,1], index: 7, kind: input, shape index: {}]   ;;  %s5183_s8 = inlined_call_operand.vmem [shape: f32[256,64], index: 8, kind: input, shape index: {}]   ;;  %s5184_s9 = inlined_call_operand.vmem [shape: f32[64,16], index: 9, kind: input, shape index: {}]   ;;  %s5185_s10 = inlined_call_operand.vmem [shape: f32[64,40], index: 10, kind: input, shape index: {}]   ;;  %s5186_s11 = inlined_call_operand.vmem [shape: f32[16,1], index: 11, kind: input, shape index: {}]   ;;  %s5187_s12 = inlined_call_operand.vmem [shape: f32[4,16,64], index: 12, kind: input, shape index: {}]   ;;  %s5188_s13 = inlined_call_operand.vmem [shape: f32[16,288], index: 13, kind: input, shape index: {}]   ;;  %s5189_s14 = inlined_call_operand.vmem [shape: f32[16,1], index: 14, kind: input, shape index: {}]   ;;  %s5190_s15 = inlined_call_operand.vmem [shape: f32[32,16], index: 15, kind: input, shape index: {}]   ;;  %s5191_s16 = inlined_call_operand.vmem [shape: f32[8,1], index: 16, kind: input, shape index: {}]   ;;  %s5192_s17 = inlined_call_operand.vmem [shape: f32[4,64,256], index: 17, kind: input, shape index: {}]   ;;  %s5193_s18 = inlined_call_operand.vmem [shape: f32[8,144], index: 18, kind: input, shape index: {}]   ;;  %s5194_s19 = inlined_call_operand.vmem [shape: f32[8,1], index: 19, kind: input, shape index: {}]   ;;  %s5195_s20 = inlined_call_operand.vmem [shape: f32[1,8], index: 20, kind: input, shape index: {}]   ;;  %s5196_s21 = inlined_call_operand.<no memory space> [shape: f32[1,1], index: 21, kind: input, shape index: {}]   ;;  %s5197_s22 = inlined_call_operand.hbm [shape: f32[2,1,256], index: 22, kind: output, shape index: {}]  }
   0x1   :  { %5255 = sst [smem:[#allocation13_spill]] %s5175_s0  ;;  %v27_v0 = vstv %s5196_s21 }
   0x2   :  { %5256 = sst [smem:[#allocation14_spill]] %s5176_s1  ;;  %28 = vst [vmem:[#allocation2] sm:$0x1] %v27_v0 }
   0x3   :  { %5257 = sst [smem:[#allocation15_spill]] %s5177_s2 }
   0x4   :  { %5258 = sst [smem:[#allocation16_spill]] %s5178_s3 }
   0x5   :  { %5259 = sst [smem:[#allocation17_spill]] %s5179_s4 }
   0x6   :  { %5260 = sst [smem:[#allocation18_spill]] %s5180_s5 }
   0x7   :  { %5261 = sst [smem:[#allocation19_spill]] %s5181_s6 }
   0x8   :  { %5262 = sst [smem:[#allocation20_spill]] %s5183_s8 }
   0x9   :  { %5263 = sst [smem:[#allocation21_spill]] %s5184_s9 }
   0xa   :  { %5264 = sst [smem:[#allocation22_spill]] %s5197_s22 }
   0xb   :  { %29 = vsyncpa [#allocation4], 0 }
   0xc   :  { %31 = vsyncpa [#allocation4 + $0x1], 0  ;;  %s3981_s29 = smov 0   ;;  %s3983_s30 = smov 0  }
   0xd   :  { %s3985_s4 = smov 0   ;;  %s3987_s0 = smov 0  }
   0xe LB: > { %5265 = sst [smem:[#allocation6_spill]] %s3825_s29  ;;  %s4002_s21 = sadd.s32 4294967295, %s3837_s0   ;;  %s3837_s0 = sphi %s3987_s0, %s5367_s0   ;;  %s3833_s4 = sphi %s3985_s4, %s5369_s4   ;;  %s3829_s30 = sphi %s3983_s30, %s5371_s30   ;;  %s3825_s29 = sphi %s3981_s29, %s5370_s29  }
   0xf   : > { %5266 = sst [smem:[#allocation7_spill]] %s3833_s4  ;;  %s3248_s23 = sadd.s32 4294967294, %s3837_s0  }
  0x10   : > { %5267 = sst [smem:[#allocation8_spill]] %s3837_s0  ;;  %s4006_s1 = sadd.s32 1, %s3837_s0  }
  0x11   : > { %5268 = sst [smem:[#allocation9_spill]] %s4006_s1  ;;  %s516_s5 = sadd.s32 1, %s3833_s4 }
  0x12   : > { %s513_s24 = ssub.s32 %s3837_s0, %s4006_s1  ;;  %p526_p0 = scmp.ne.s32.totalorder %s3833_s4, %s3829_s30 }
  0x13   : > { %p514_p1 = scmp.eq.s32.totalorder %s513_s24, 0  ;;  %p527_p2 = scmp.eq.s32.totalorder %s4002_s21, 1 }
  0x14   : > { %p532_p3 = scmp.ne.s32.totalorder %s3829_s30, %s3825_s29  ;;  %p533_p4 = scmp.eq.s32.totalorder %s3248_s23, 1 }
  0x15   : > { %s4017_s6 = scalar_select %p514_p1, %s3833_s4, %s516_s5  }
  0x16   : > { %p4019_p5 = por %p527_p2, %p526_p0  ;;  %p4023_p6 = por %p533_p4, %p532_p3 }
  0x17   : > { %5269 = sst [smem:[#allocation10_spill]] %s4017_s6  ;;  %p3251_p7 = scmp.ge.s32.totalorder %s3837_s0, 1 }
  0x18   : > { %s5270_s25 = scalar_select %p4019_p5, 1, 0 }
  0x19   : > { %s5272_s26 = scalar_select %p4023_p6, 1, 0 }
  0x1a   : > { %5271 = sst [smem:[#allocation11_spill]] %s5270_s25  ;;  %p626_p8 = scmp.lt.s32.totalorder %s3837_s0, 3 }
  0x1b   : > { %5273 = sst [smem:[#allocation12_spill]] %s5272_s26 }
  0x1c   : > { %p627_p9 = pnand %p3251_p7, %p626_p8 }
  0x1d   : > { %p692_p10 = scmp.lt.s32.totalorder (!%p627_p9), %s4002_s21, 1  ;;  %s5274_s23 = sld [smem:[#allocation13_spill]] (!%p627_p9) }
  0x1e   : > { %630 = sbr.rel (%p627_p9) target bundleno = 3713 (0xe81), region = 108  ;;  %s5201_s24 = smov (!%p627_p9), 111  }
  0x1f   : > { %s5207_s6 = smov (!%p627_p9), 112   ;;  %s5203_s3 = smov (!%p627_p9), 113  }
  0x20   : > { %s5205_s28 = smov (!%p627_p9), 1   ;;  %s5279_s8 = sld [smem:[#allocation20_spill]] (!%p627_p9) }
  0x21   : > { %s5281_s1 = smov (!%p627_p9), 112   ;;  %s5241_s4 = smov (!%p627_p9), 7  }
  0x22   : > { %s5287_s9 = sld [smem:[#allocation21_spill]] (!%p627_p9)  ;;  %s3858_s26 = smov (!%p627_p9), 4  }
  0x23   : > { %s4031_s2 = scalar_select %p692_p10, %s4002_s21, 1  ;;  %v3844_v3 = vmov 0.0   ;;  %v3845_v4 = vmov 0   ;;  %v705_v6 = vlaneseq  ;;  %vm5229_vm0 = vcmask 908288  }
  0x24   : > { %893 = vmatprep.mubr.f32.mxu0 %v3844_v3  ;;  %3770 = vset.pattern.permute.xlu0 %v3845_v4  ;;  %vm5249_vm3 = vcmask 916480   ;;  %vm5236_vm4 = vcmask 924672   ;;  %vm5232_vm7 = vcmask 1039360   ;;  %vm771_vm8 = vcmask 7168   ;;  %s5289_s0 = sld [smem:[#allocation19_spill]]  ;;  %s5296_s25 = smov 119  }
  0x25   : > { %s3460_s27 = sshll.u32 %s4031_s2, 4  ;;  %3776 = vset.pattern.permute.xlu1 %v3845_v4  ;;  %v4078_v7 = vand.u32 127, %v705_v6  ;;  %vm5252_vm9 = vcmask 121856   ;;  %vm739_vm10 = vcmask 130048   ;;  %vm5230_vm12 = vcmask 138240   ;;  %s3862_s22 = smov [#allocation3]  }
  0x26   : > { %s696_s5 = scalar_lea.vmem %s5274_s23, %s3460_s27  ;;  %s5215_s27 = smov 127   ;;  %vm4129_vm11 = vmneg %vm739_vm10  ;;  %vm825_vm13 = vcmask 588800   ;;  %v933_v51 = vld [vmem:[%s5279_s8 + $0xf8] sm:$0xff]  ;;  %v932_v53 = vld [vmem:[%s5279_s8 + $0xf0] sm:$0xff]  ;;  %vm5251_vm14 = vcmask 449536  }
  0x27   : > { %v4037_v1 = vld [vmem:[%s696_s5 + $0x8] sm:$0xff]  ;;  %v4039_v2 = vld [vmem:[%s696_s5] sm:$0xff]  ;;  %s5213_s23 = smov 15   ;;  %s5211_s5 = smov 16   ;;  %v707_v8 = vadd.s32 128, %v4078_v7  ;;  %v708_v11 = vand.u32 15, %v4078_v7  ;;  %3462 = vmatprep.subr.mxu1 %v933_v51 }
  0x28   : > { %811 = vrot.lane.b32.xlu0 %v4037_v1, %s5201_s24  ;;  %800 = vrot.lane.b32.xlu1 %v4039_v2, %s5207_s6  ;;  %v917_v52 = vld [vmem:[%s5279_s8 + $0x78] sm:$0xff]  ;;  %v916_v54 = vld [vmem:[%s5279_s8 + $0x70] sm:$0xff] }
  0x29   : > { %v709_v9 = vand.u32 15, %v707_v8  ;;  %v4085_v12 = vadd.s32 1, %v708_v11  ;;  %v4093_v19 = vadd.s32 4294967295, %v708_v11  ;;  %3463 = vmatpush3.msra.mxu1 %v917_v52  ;;  %v931_v57 = vld [vmem:[%s5279_s8 + $0xe8] sm:$0xff]  ;;  %v930_v59 = vld [vmem:[%s5279_s8 + $0xe0] sm:$0xff]  ;;  %v929_v62 = vld [vmem:[%s5279_s8 + $0xd8] sm:$0xff] }
  0x2a   : > { %3464 = vmatprep.subr.mxu1 %v932_v53  ;;  %v915_v58 = vld [vmem:[%s5279_s8 + $0x68] sm:$0xff]  ;;  %v914_v60 = vld [vmem:[%s5279_s8 + $0x60] sm:$0xff]  ;;  %v913_v63 = vld [vmem:[%s5279_s8 + $0x58] sm:$0xff] }
  0x2b   : > { %v4081_v10 = vadd.s32 1, %v709_v9  ;;  %vm5231_vm2 = vcmp.le.s32.totalorder %v4085_v12, 15  ;;  %v4091_v16 = vadd.s32 4294967295, %v709_v9  ;;  %vm5234_vm6 = vcmp.ge.s32.totalorder %v4093_v19, 0  ;;  %3465 = vmatpush3.msra.mxu1 %v916_v54  ;;  %v928_v0 = vld [vmem:[%s5279_s8 + $0xd0] sm:$0xff]  ;;  %v911_v4 = vld [vmem:[%s5279_s8 + $0x48] sm:$0xff] }
  0x2c   : > { %802 = vrot.lane.b32.xlu1 %v4037_v1, %s5207_s6  ;;  %809 = vrot.lane.b32.xlu0 %v4039_v2, %s5201_s24  ;;  %s5209_s24 = smov 17   ;;  %s5275_s6 = sld [smem:[#allocation16_spill]]  ;;  %v910_v8 = vld [vmem:[%s5279_s8 + $0x40] sm:$0xff]  ;;  %v925_v9 = vld [vmem:[%s5279_s8 + $0xb8] sm:$0xff] }
  0x2d   : > { %vm5233_vm1 = vcmp.le.s32.totalorder %v4081_v10, 15  ;;  %vm5235_vm5 = vcmp.ge.s32.totalorder %v4091_v16, 0  ;;  %3466 = vmatprep.subr.mxu1 %v931_v57  ;;  %v909_v11 = vld [vmem:[%s5279_s8 + $0x38] sm:$0xff] }
  0x2e   : > { %3467 = vmatpush3.msra.mxu1 %v915_v58 }
  0x2f   : > { %3468 = vmatprep.subr.mxu1 %v930_v59 }
  0x30   : > { %789 = vrot.lane.b32.xlu1 %v4039_v2, %s5203_s3  ;;  %791 = vrot.lane.b32.xlu0 %v4037_v1, %s5203_s3  ;;  %s5282_s3 = sld [smem:[#allocation17_spill]] }
  0x31   : > { %3469 = vmatpush3.msra.mxu1 %v914_v60 }
  0x32   : > { %v704_v5 = vld [vmem:[%s5275_s6] sm:$0xff]  ;;  %s5280_s6 = smov 127   ;;  %3470 = vmatprep.subr.mxu1 %v929_v62 }
  0x33   : > { %3471 = vmatpush3.msra.mxu1 %v913_v63 }
  0x34   : > { %778 = vrot.lane.b32.xlu1 %v4039_v2, %s5215_s27  ;;  %780 = vrot.lane.b32.xlu0 %v4037_v1, %s5215_s27  ;;  %s5283_s27 = smov 1  }
  0x35   : > { %3472 = vmatprep.subr.mxu1 %v928_v0 }
  0x38   : > { %769 = vrot.lane.b32.xlu1 %v4037_v1, %s5205_s28  ;;  %767 = vrot.lane.b32.xlu0 %v4039_v2, %s5205_s28  ;;  %s5278_s28 = sld [smem:[#allocation15_spill]] }
  0x3c   : > { %746 = vrot.lane.b32.xlu1 %v4037_v1, %s5213_s23  ;;  %744 = vrot.lane.b32.xlu0 %v4039_v2, %s5213_s23  ;;  %s5222_s23 = smov 119  }
  0x3e   : > { %v703_v46 = vld [vmem:[%s5278_s28] sm:$0xff]  ;;  %s5237_s28 = smov 9  }
  0x40   : > { %737 = vrot.lane.b32.xlu1 %v4037_v1, %s5211_s5  ;;  %735 = vrot.lane.b32.xlu0 %v4039_v2, %s5211_s5  ;;  %s5226_s5 = smov 121  }
  0x44   : > { %714 = vrot.lane.b32.xlu1 %v4037_v1, %s5209_s24  ;;  %712 = vrot.lane.b32.xlu0 %v4039_v2, %s5209_s24  ;;  %s5224_s24 = smov 120  }
  0x48   : > { %822 = vperm.xlu0 %3770, %v704_v5   ;;  %v926_v5 = vld [vmem:[%s5279_s8 + $0xc0] sm:$0xff] }
  0x9a   : > { %v812_v13 = vpop.permute.xlu0 %811  ;;  %v801_v14 = vpop.permute.xlu1 %800 }
  0x9b   : > { %v817_v15 = vsel %vm5229_vm0, %v812_v13, 0.0 }
  0x9c   : > { %3256 = vmatprep.subr.msk.mxu0 %vm5233_vm1, %v817_v15  ;;  %v923_v15 = vld [vmem:[%s5279_s8 + $0xa8] sm:$0xff] }
  0x9e   : > { %v803_v17 = vpop.permute.xlu1 %802  ;;  %v810_v18 = vpop.permute.xlu0 %809 }
  0x9f   : > { %v814_v20 = vsel %vm5229_vm0, %v810_v18, %v812_v13  ;;  %v805_v21 = vsel %vm5249_vm3, %v801_v14, %v803_v17  ;;  %v924_v13 = vld [vmem:[%s5279_s8 + $0xb0] sm:$0xff]  ;;  %v922_v18 = vld [vmem:[%s5279_s8 + $0xa0] sm:$0xff]  ;;  %vm1083_vm0 = vcmask 457728  }
  0xa0   : > { %3257 = vmatpush1.msk.msra.mxu0 %vm5231_vm2, %v814_v20  ;;  %v908_v14 = vld [vmem:[%s5279_s8 + $0x30] sm:$0xff]  ;;  %v906_v20 = vld [vmem:[%s5279_s8 + $0x20] sm:$0xff] }
  0xa1   : > { %3258 = vmatprep.subr.msk.mxu0 %vm5249_vm3, %v803_v17  ;;  %v907_v17 = vld [vmem:[%s5279_s8 + $0x28] sm:$0xff] }
  0xa2   : > { %v790_v22 = vpop.permute.xlu1 %789  ;;  %846 = vmatpush1.msra.mxu0 %v805_v21  ;;  %v792_v23 = vpop.permute.xlu0 %791  ;;  %v921_v21 = vld [vmem:[%s5279_s8 + $0x98] sm:$0xff] }
  0xa3   : > { %v797_v24 = vsel %vm5236_vm4, %v792_v23, 0.0  ;;  %v794_v25 = vsel %vm5236_vm4, %v790_v22, %v792_v23  ;;  %v905_v22 = vld [vmem:[%s5279_s8 + $0x18] sm:$0xff]  ;;  %v920_v23 = vld [vmem:[%s5279_s8 + $0x90] sm:$0xff]  ;;  %vm5253_vm4 = vcmask 72704  }
  0xa4   : > { %3259 = vmatprep.subr.msk.mxu0 %vm5235_vm5, %v797_v24  ;;  %v904_v24 = vld [vmem:[%s5279_s8 + $0x10] sm:$0xff] }
  0xa5   : > { %3260 = vmatpush1.msk.msra.mxu0 %vm5234_vm6, %v794_v25  ;;  %v919_v25 = vld [vmem:[%s5279_s8 + $0x88] sm:$0xff] }
  0xa6   : > { %v779_v26 = vpop.permute.xlu1 %778  ;;  %v781_v27 = vpop.permute.xlu0 %780 }
  0xa7   : > { %v786_v28 = vsel %vm5232_vm7, %v781_v27, 0.0  ;;  %v783_v29 = vsel %vm5232_vm7, %v779_v26, %v781_v27  ;;  %v903_v26 = vld [vmem:[%s5279_s8 + $0x8] sm:$0xff]  ;;  %v918_v27 = vld [vmem:[%s5279_s8 + $0x80] sm:$0xff] }
  0xa8   : > { %3261 = vmatprep.subr.msk.mxu0 %vm5233_vm1, %v786_v28  ;;  %v902_v28 = vld [vmem:[%s5279_s8] sm:$0xff] }
  0xa9   : > { %3262 = vmatpush1.msk.msra.mxu0 %vm5231_vm2, %v783_v29 }
  0xaa   : > { %v770_v30 = vpop.permute.xlu1 %769  ;;  %851 = vmatprep.subr.mxu0 %v4037_v1  ;;  %v768_v31 = vpop.permute.xlu0 %767  ;;  %v912_v1 = vld [vmem:[%s5279_s8 + $0x50] sm:$0xff] }
  0xab   : > { %852 = vmatpush1.msra.mxu0 %v4039_v2  ;;  %v772_v32 = vsel %vm771_vm8, %v768_v31, %v770_v30  ;;  %v775_v33 = vsel %vm771_vm8, 0.0, %v768_v31  ;;  %v927_v2 = vld [vmem:[%s5279_s8 + $0xc8] sm:$0xff]  ;;  %3473 = vmatpush3.msra.mxu1 %v912_v1  ;;  %s5293_s8 = smov 7  }
  0xac   : > { %3263 = vmatprep.subr.msk.mxu0 %vm5235_vm5, %v772_v32  ;;  %3474 = vmatprep.subr.mxu1 %v927_v2 }
  0xad   : > { %3264 = vmatpush1.msk.msra.mxu0 %vm5234_vm6, %v775_v33  ;;  %3475 = vmatpush3.msra.mxu1 %v911_v4 }
  0xae   : > { %v747_v34 = vpop.permute.xlu1 %746  ;;  %v745_v35 = vpop.permute.xlu0 %744  ;;  %3476 = vmatprep.subr.mxu1 %v926_v5 }
  0xaf   : > { %v749_v36 = vsel %vm5252_vm9, %v745_v35, %v747_v34  ;;  %v752_v37 = vsel %vm5252_vm9, 0.0, %v745_v35  ;;  %3477 = vmatpush3.msra.mxu1 %v910_v8 }
  0xb0   : > { %3265 = vmatprep.subr.msk.mxu0 %vm5233_vm1, %v749_v36  ;;  %3478 = vmatprep.subr.mxu1 %v925_v9  ;;  %vm1054_vm1 = vcmask 56320   ;;  %v1029_v9 = vld [vmem:[%s5282_s3 + $0x8] sm:$0xff] }
  0xb1   : > { %3266 = vmatpush1.msk.msra.mxu0 %vm5231_vm2, %v752_v37  ;;  %3479 = vmatpush3.msra.mxu1 %v909_v11  ;;  %v1191_v11 = vld [vmem:[%s5287_s9 + $0x38] sm:$0xff] }
  0xb2   : > { %v738_v38 = vpop.permute.xlu1 %737  ;;  %v736_v39 = vpop.permute.xlu0 %735  ;;  %3480 = vmatprep.subr.mxu1 %v924_v13  ;;  %v1190_v13 = vld [vmem:[%s5287_s9 + $0x30] sm:$0xff] }
  0xb3   : > { %v740_v41 = vsel %vm739_vm10, %v736_v39, %v738_v38  ;;  %3481 = vmatpush3.msra.mxu1 %v908_v14 }
  0xb4   : > { %857 = vmatprep.subr.mxu0 %v740_v41  ;;  %3482 = vmatprep.subr.mxu1 %v923_v15  ;;  %v1189_v15 = vld [vmem:[%s5287_s9 + $0x28] sm:$0xff] }
  0xb5   : > { %3268 = vmatpush1.msk.msra.mxu0 %vm4129_vm11, %v736_v39  ;;  %3483 = vmatpush3.msra.mxu1 %v907_v17 }
  0xb6   : > { %v715_v42 = vpop.permute.xlu1 %714  ;;  %v713_v43 = vpop.permute.xlu0 %712  ;;  %3484 = vmatprep.subr.mxu1 %v922_v18 }
  0xb7   : > { %v717_v44 = vsel %vm5230_vm12, %v713_v43, %v715_v42  ;;  %v720_v45 = vsel %vm5230_vm12, 0.0, %v713_v43  ;;  %3485 = vmatpush3.msra.mxu1 %v906_v20  ;;  %vm1077_vm12 = vcmask 465920  }
  0xb8   : > { %3269 = vmatprep.subr.msk.mxu0 %vm5235_vm5, %v717_v44  ;;  %3486 = vmatprep.subr.mxu1 %v921_v21  ;;  %v1188_v21 = vld [vmem:[%s5287_s9 + $0x20] sm:$0xff] }
  0xb9   : > { %3270 = vmatpush1.msk.msra.mxu0 %vm5234_vm6, %v720_v45  ;;  %3487 = vmatpush3.msra.mxu1 %v905_v22  ;;  %vm5248_vm6 = vcmask 64512  }
  0xba   : > { %3271 = vmatmul.mubr.msk.f32.vlgmr.msra.gmra.mxu0 %vm825_vm13, %v703_v46  ;;  %3488 = vmatprep.subr.mxu1 %v920_v23  ;;  %vm4312_vm5 = vmneg %vm5248_vm6  ;;  %vm1393_vm6 = vcmask 97280  }
  0xbb   : > { %3489 = vmatpush3.msra.mxu1 %v904_v24 }
  0xbc   : > { %3490 = vmatprep.subr.mxu1 %v919_v25  ;;  %v1187_v25 = vld [vmem:[%s5287_s9 + $0x18] sm:$0xff] }
  0xbd   : > { %3491 = vmatpush3.msra.mxu1 %v903_v26 }
  0xbe   : > { %3492 = vmatprep.subr.mxu1 %v918_v27  ;;  %v1186_v27 = vld [vmem:[%s5287_s9 + $0x10] sm:$0xff] }
  0xbf   : > { %3493 = vmatpush3.msra.mxu1 %v902_v28  ;;  %v1185_v28 = vld [vmem:[%s5287_s9 + $0x8] sm:$0xff] }
  0xc3   : > { %v823_v48 = vpop.permute.xlu0 %822 }
 0x17a   : > { %v895_v47 = vpop.f32.mrf.mxu0 }
 0x17b   : > { %v896_v55 = vadd.f32 %v895_v47, %v823_v48  ;;  %v1028_v47 = vld [vmem:[%s5282_s3] sm:$0xff]  ;;  %s3255_s3 = sshll.u32 %s4031_s2, 3  ;;  %s689_s2 = sand.u32 1, %s3829_s30  }
 0x17c   : > { %v897_v49 = vpop.f32.mrf.mxu0  ;;  %3615 = vmatprep.mubr.msk.f32.mxu0 %vm825_vm13, %v1028_v47  ;;  %v1299_v47 = vld [vmem:[%s5289_s0 + $0x8] sm:$0xff] }
 0x17d   : > { %v898_v50 = vadd.f32 %v897_v49, %v823_v48  ;;  %v4174_v61 = vmax.f32 %v896_v55, 0.0 }
 0x17f   : > { %v4158_v56 = vmax.f32 %v898_v50, 0.0  ;;  %v1032_v50 = vand.u32 7, %v4078_v7 }
 0x181   : > { %938 = vrot.lane.b32.xlu1 %v4158_v56, %s5280_s6  ;;  %v4282_v51 = vadd.s32 1, %v1032_v50  ;;  %v4284_v52 = vadd.s32 4294967295, %v1032_v50 }
 0x183   : > { %vm1058_vm15 = vcmp.le.s32.totalorder %v4282_v51, 7  ;;  %vm1040_vm2 = vcmp.ge.s32.totalorder %v4284_v52, 0  ;;  %v2463_v51 = vld [vmem:[%s5192_s17 + $0x68] sm:$0xff] }
 0x185   : > { %936 = vrot.lane.b32.xlu1 %v4174_v61, %s5280_s6 }
 0x1f3   : > { %v939_v29 = vpop.permute.xlu1 %938 }
 0x1f4   : > { %v4251_v30 = vsel %vm5232_vm7, %v939_v29, 0.0 }
 0x1f5   : > { %v945_v33 = vmax.f32 %v4158_v56, %v4251_v30 }
 0x1f7   : > { %v937_v31 = vpop.permute.xlu1 %936 }
 0x1f8   : > { %v4254_v32 = vsel %vm5232_vm7, %v937_v31, %v939_v29  ;;  %vm5254_vm7 = vcmask 515072   ;;  %v1184_v29 = vld [vmem:[%s5287_s9] sm:$0xff] }
 0x1f9   : > { %v944_v34 = vmax.f32 %v4174_v61, %v4254_v32 }
 0x1fb   : > { %v3771_v35 = vpack.i.bf16 %v944_v34, %v945_v33 }
 0x1fd   : > { %3772 = vrot.lane.b32.xlu0 %v3771_v35, %s5281_s1 }
 0x26f   : > { %v3773_v36 = vpop.permute.xlu0 %3772 }
 0x270   : > { %v3775_v37 = vunpack.i.h.bf16 %v3773_v36  ;;  %v3774_v38 = vunpack.i.l.bf16 %v3773_v36 }
 0x272   : > { %v955_v39 = vsel %vm5249_vm3, %v3774_v38, 0.0  ;;  %v952_v41 = vsel %vm5249_vm3, %v3775_v37, %v3774_v38  ;;  %vm1382_vm3 = vcmask 105472  }
 0x273   : > { %v957_v42 = vmax.f32 %v945_v33, %v955_v39  ;;  %v956_v43 = vmax.f32 %v944_v34, %v952_v41 }
 0x275   : > { %1022 = vmatprep.mubr.f32.mxu1 %v957_v42 }
 0x276   : > { %1023 = vmatmul.mubr.f32.vlgmr.msra.gmra.mxu1 %v956_v43 }
 0x336   : > { %v3494_v44 = vpop.f32.mrf.mxu1 }
 0x338   : > { %v3495_v45 = vpop.f32.mrf.mxu1 }
 0x339   : > { %v3496_v46 = vadd.f32 %v3495_v45, %v3494_v44 }
 0x33b   : > { %1080 = vrot.lane.b32.xlu0 %v3496_v46, %s5224_s24  ;;  %1085 = vrot.lane.b32.xlu1 %v3496_v46, %s5222_s23  ;;  %s5239_s23 = smov 8   ;;  %s3855_s24 = smov 124  }
 0x33f   : > { %1068 = vrot.lane.b32.xlu0 %v3496_v46, %s5280_s6  ;;  %1074 = vrot.lane.b32.xlu1 %v3496_v46, %s5226_s5  ;;  %s5284_s5 = sld [smem:[#allocation18_spill]] }
 0x343   : > { %1051 = vrot.lane.b32.xlu0 %v3496_v46, %s5241_s4  ;;  %1063 = vrot.lane.b32.xlu1 %v3496_v46, %s5283_s27  ;;  %s3857_s4 = smov 3  }
 0x345   : > { %v1031_v48 = vld [vmem:[%s5284_s5 + $0x8] sm:$0xff]  ;;  %v1030_v49 = vld [vmem:[%s5284_s5] sm:$0xff]  ;;  %s3860_s5 = smov 123  }
 0x347   : > { %1034 = vrot.lane.b32.xlu0 %v3496_v46, %s5237_s28  ;;  %1046 = vrot.lane.b32.xlu1 %v3496_v46, %s5239_s23  ;;  %s5288_s28 = smov 120   ;;  %s3856_s23 = smov 125  }
 0x34b   : > { %1098 = vperm.xlu0 %3770, %v1031_v48   ;;  %1093 = vperm.xlu1 %3776, %v1030_v49   ;;  %v1309_v48 = vld [vmem:[%s5182_s7 + $0x18] sm:$0xff]  ;;  %v1308_v49 = vld [vmem:[%s5182_s7 + $0x10] sm:$0xff] }
 0x3ad   : > { %v1081_v53 = vpop.permute.xlu0 %1080  ;;  %v1086_v54 = vpop.permute.xlu1 %1085 }
 0x3ae   : > { %v1089_v55 = vsel %vm5251_vm14, %v1086_v54, 0.0  ;;  %v1306_v54 = vld [vmem:[%s5182_s7] sm:$0xff] }
 0x3af   : > { %3597 = vmatprep.subr.msk.mxu0 %vm1058_vm15, %v1089_v55 }
 0x3b0   : > { %3598 = vmatpush3.msk.msra.mxu0 %vm1058_vm15, %v1089_v55  ;;  %v1543_v55 = vld [vmem:[%s5186_s11 + $0x8] sm:$0xff] }
 0x3b1   : > { %v1069_v57 = vpop.permute.xlu0 %1068  ;;  %3599 = vmatprep.subr.msk.mxu0 %vm1083_vm0, %v1081_v53  ;;  %v1075_v58 = vpop.permute.xlu1 %1074 }
 0x3b2   : > { %v1078_v59 = vsel %vm1077_vm12, %v1075_v58, 0.0  ;;  %3600 = vmatpush3.msk.msra.mxu0 %vm1083_vm0, %v1081_v53  ;;  %v1072_v60 = vsel %vm5254_vm7, %v1069_v57, 0.0  ;;  %v1307_v53 = vld [vmem:[%s5182_s7 + $0x8] sm:$0xff]  ;;  %v1542_v57 = vld [vmem:[%s5186_s11] sm:$0xff]  ;;  %v1310_v58 = vand.u32 3, %v4078_v7 }
 0x3b3   : > { %3601 = vmatprep.subr.msk.mxu0 %vm1040_vm2, %v1078_v59 }
 0x3b4   : > { %3602 = vmatpush3.msk.msra.mxu0 %vm1040_vm2, %v1078_v59  ;;  %v4449_v59 = vadd.s32 4294967295, %v1310_v58 }
 0x3b5   : > { %v1052_v62 = vpop.permute.xlu0 %1051  ;;  %3603 = vmatprep.subr.msk.mxu0 %vm1058_vm15, %v1072_v60  ;;  %v1064_v63 = vpop.permute.xlu1 %1063 }
 0x3b6   : > { %3604 = vmatpush3.msk.msra.mxu0 %vm1058_vm15, %v1072_v60  ;;  %v1066_v0 = vsel %vm771_vm8, 0.0, %v1064_v63  ;;  %v1055_v1 = vsel %vm1054_vm1, 0.0, %v1052_v62  ;;  %v4453_v63 = vadd.s32 1, %v1310_v58 }
 0x3b7   : > { %3605 = vmatprep.subr.mxu0 %v3496_v46 }
 0x3b8   : > { %3606 = vmatpush3.msra.mxu0 %v3496_v46  ;;  %vm1350_vm14 = vcmp.le.s32.totalorder %v4453_v63, 3 }
 0x3b9   : > { %3607 = vmatprep.subr.msk.mxu0 %vm1040_vm2, %v1066_v0  ;;  %v1035_v4 = vpop.permute.xlu0 %1034  ;;  %v1047_v5 = vpop.permute.xlu1 %1046 }
 0x3ba   : > { %3608 = vmatpush3.msk.msra.mxu0 %vm1040_vm2, %v1066_v0  ;;  %v1038_v8 = vsel %vm5253_vm4, 0.0, %v1035_v4  ;;  %vm1319_vm4 = vcmask 39936  }
 0x3bb   : > { %3609 = vmatprep.subr.msk.mxu0 %vm1058_vm15, %v1055_v1 }
 0x3bc   : > { %3610 = vmatpush3.msk.msra.mxu0 %vm1058_vm15, %v1055_v1 }
 0x3bd   : > { %3611 = vmatprep.subr.msk.mxu0 %vm4312_vm5, %v1047_v5 }
 0x3be   : > { %3612 = vmatpush3.msk.msra.mxu0 %vm4312_vm5, %v1047_v5 }
 0x3bf   : > { %3613 = vmatprep.subr.msk.mxu0 %vm1040_vm2, %v1038_v8 }
 0x3c0   : > { %3614 = vmatpush3.msk.msra.mxu0 %vm1040_vm2, %v1038_v8 }
 0x3c1   : > { %3616 = vmatmul.mubr.msk.f32.vlgmr.msra.gmra.mxu0 %vm825_vm13, %v1029_v9  ;;  %3618 = vmatprep.subr.mxu0 %v1191_v11  ;;  %vm5250_vm13 = vcmask 523264  }
 0x3c2   : > { %3619 = vmatpush3.msra.mxu0 %v1191_v11 }
 0x3c3   : > { %3620 = vmatprep.subr.mxu0 %v1190_v13 }
 0x3c4   : > { %3621 = vmatpush3.msra.mxu0 %v1190_v13 }
 0x3c5   : > { %3622 = vmatprep.subr.mxu0 %v1189_v15 }
 0x3c6   : > { %v1099_v14 = vpop.permute.xlu0 %1098  ;;  %v1094_v18 = vpop.permute.xlu1 %1093  ;;  %3623 = vmatpush3.msra.mxu0 %v1189_v15 }
 0x3c7   : > { %3624 = vmatprep.subr.mxu0 %v1188_v21 }
 0x3c8   : > { %3625 = vmatpush3.msra.mxu0 %v1188_v21 }
 0x3c9   : > { %3626 = vmatprep.subr.mxu0 %v1187_v25 }
 0x3ca   : > { %3627 = vmatpush3.msra.mxu0 %v1187_v25 }
 0x3cb   : > { %3628 = vmatprep.subr.mxu0 %v1186_v27 }
 0x3cc   : > { %3629 = vmatpush3.msra.mxu0 %v1186_v27 }
 0x3cd   : > { %3630 = vmatprep.subr.mxu0 %v1185_v28 }
 0x3ce   : > { %3631 = vmatpush3.msra.mxu0 %v1185_v28 }
 0x3cf   : > { %3632 = vmatprep.subr.mxu0 %v1184_v29 }
 0x3d0   : > { %3633 = vmatpush3.msra.mxu0 %v1184_v29 }
 0x3d1   : > { %1439 = vmatprep.subr.mxu0 %v3844_v3 }
 0x481   : > { %v3617_v17 = vpop.f32.mrf.mxu0 }
 0x482   : > { %v1179_v20 = vadd.f32 %v3617_v17, %v1099_v14 }
 0x483   : > { %v1173_v22 = vpop.f32.mrf.mxu0 }
 0x484   : > { %v4345_v23 = vmax.f32 %v1179_v20, 0.0  ;;  %v1174_v24 = vadd.f32 %v1173_v22, %v1094_v18 }
 0x486   : > { %v4350_v26 = vmax.f32 %v1174_v24, 0.0  ;;  %1196 = vrot.lane.b32.xlu0 %v4345_v23, %s5280_s6 }
 0x488   : > { %1194 = vrot.lane.b32.xlu1 %v4350_v26, %s5280_s6 }
 0x4f8   : > { %v1197_v31 = vpop.permute.xlu0 %1196 }
 0x4f9   : > { %v4367_v33 = vsel %vm5254_vm7, %v1197_v31, 0.0 }
 0x4fa   : > { %v1203_v34 = vmax.f32 %v4345_v23, %v4367_v33  ;;  %v1195_v35 = vpop.permute.xlu1 %1194 }
 0x4fb   : > { %v4372_v36 = vsel %vm5254_vm7, %v1195_v35, 0.0  ;;  %vm1402_vm7 = vcmask 89088  }
 0x4fc   : > { %v1202_v37 = vmax.f32 %v4350_v26, %v4372_v36  ;;  %1208 = vrot.lane.b32.xlu0 %v1203_v34, %s5288_s28 }
 0x4fe   : > { %1206 = vrot.lane.b32.xlu1 %v1202_v37, %s5288_s28 }
 0x56e   : > { %v1209_v38 = vpop.permute.xlu0 %1208 }
 0x56f   : > { %v1213_v39 = vsel %vm1083_vm0, %v1209_v38, 0.0 }
 0x570   : > { %v1207_v41 = vpop.permute.xlu1 %1206  ;;  %v1215_v44 = vmax.f32 %v1203_v34, %v1213_v39 }
 0x571   : > { %v1212_v42 = vsel %vm1083_vm0, %v1207_v41, 0.0 }
 0x572   : > { %v1214_v43 = vmax.f32 %v1202_v37, %v1212_v42 }
 0x574   : > { %3634 = vmatprep.mubr.msk.f32.mxu0 %vm5250_vm13, %v1214_v43 }
 0x575   : > { %3635 = vmatmul.mubr.msk.f32.vlgmr.msra.gmra.mxu0 %vm5250_vm13, %v1215_v44  ;;  %vm1323_vm13 = vcmp.ge.s32.totalorder %v4449_v59, 0 }
 0x576   : > { %3303 = vmatprep.mubr.msk.f32.mxu0 %vm739_vm10, %v1299_v47 }
 0x635   : > { %v4382_v45 = vpop.f32.mrf.mxu0 }
 0x636   : > { %1389 = vrot.lane.b32.xlu1 %v4382_v45, %s3855_s24 }
 0x637   : > { %v4385_v46 = vpop.f32.mrf.mxu0 }
 0x638   : > { %1387 = vrot.lane.b32.xlu0 %v4385_v46, %s3855_s24  ;;  %s5290_s24 = smov %s5289_s0 }
 0x639   : > { %v1298_v38 = vld [vmem:[%s5290_s24] sm:$0xff]  ;;  %v1301_v41 = vld [vmem:[%s5290_s24 + $0x18] sm:$0xff]  ;;  %v1300_v42 = vld [vmem:[%s5290_s24 + $0x10] sm:$0xff] }
 0x63a   : > { %1378 = vrot.lane.b32.xlu1 %v4382_v45, %s3856_s23  ;;  %v1303_v43 = vld [vmem:[%s5290_s24 + $0x28] sm:$0xff]  ;;  %v1305_v47 = vld [vmem:[%s5290_s24 + $0x38] sm:$0xff] }
 0x63c   : > { %1376 = vrot.lane.b32.xlu0 %v4385_v46, %s3856_s23  ;;  %s3859_s23 = smov 5  }
 0x63e   : > { %1368 = vrot.lane.b32.xlu1 %v4382_v45, %s5280_s6 }
 0x640   : > { %1366 = vrot.lane.b32.xlu0 %v4385_v46, %s5280_s6 }
 0x642   : > { %1358 = vrot.lane.b32.xlu1 %v4382_v45, %s5283_s27 }
 0x644   : > { %1356 = vrot.lane.b32.xlu0 %v4385_v46, %s5283_s27 }
 0x646   : > { %1341 = vrot.lane.b32.xlu1 %v4382_v45, %s3857_s4 }
 0x648   : > { %1339 = vrot.lane.b32.xlu0 %v4385_v46, %s3857_s4  ;;  %s3461_s4 = sshll.u32 %s4002_s21, 5  ;;  %s3781_s21 = sshll.u32 %s3862_s22, 4  ;;  %s3782_s21 = int_to_ptr.vmem [resolvable:$false] %s3781_s21 }
 0x64a   : > { %1332 = vrot.lane.b32.xlu1 %v4382_v45, %s3858_s26 }
 0x64c   : > { %1330 = vrot.lane.b32.xlu0 %v4385_v46, %s3858_s26  ;;  %s5291_s26 = sld [smem:[#allocation14_spill]] }
 0x64e   : > { %1315 = vrot.lane.b32.xlu1 %v4382_v45, %s3859_s23 }
 0x650   : > { %1313 = vrot.lane.b32.xlu0 %v4385_v46, %s3859_s23  ;;  %s3252_s23 = sshll.u32 %s689_s2, 1 }
 0x651   : > { %s691_s29 = scalar_lea.vmem [#allocation3], %s3252_s23 }
 0x652   : > { %1398 = vrot.lane.b32.xlu1 %v4382_v45, %s3860_s5  ;;  %s700_s0 = scalar_lea.vmem %s5291_s26, %s3255_s3  ;;  %s5292_s3 = smov 121  }
 0x653   : > { %v1528_v50 = vld [vmem:[%s700_s0] sm:$0xff] }
 0x654   : > { %1396 = vrot.lane.b32.xlu0 %v4385_v46, %s3860_s5  ;;  %s5294_s5 = smov 8  }
 0x656   : > { %1424 = vperm.xlu1 %3776, %v1309_v48  }
 0x658   : > { %1419 = vperm.xlu0 %3770, %v1308_v49   ;;  %v1304_v49 = vld [vmem:[%s5290_s24 + $0x30] sm:$0xff] }
 0x65a   : > { %1531 = vperm.xlu1 %3776, %v1528_v50  }
 0x65c   : > { %1414 = vperm.xlu0 %3770, %v1307_v53  }
 0x65e   : > { %1409 = vperm.xlu1 %3776, %v1306_v54  }
 0x660   : > { %2020 = vperm.xlu0 %3770, %v1543_v55  }
 0x662   : > { %2015 = vperm.xlu1 %3776, %v1542_v57  }
 0x664   : > { %2097 = vrot.lane.b32.xlu0 %v4345_v23, %s5283_s27 }
 0x666   : > { %2149 = vrot.lane.b32.xlu1 %v4345_v23, %s5288_s28 }
 0x668   : > { %2095 = vrot.lane.b32.xlu0 %v4350_v26, %s5283_s27 }
 0x66a   : > { %2147 = vrot.lane.b32.xlu1 %v4350_v26, %s5288_s28 }
 0x66c   : > { %2129 = vrot.lane.b32.xlu0 %v4345_v23, %s5292_s3 }
 0x66e   : > { %2077 = vrot.lane.b32.xlu1 %v4345_v23, %s5293_s8 }
 0x670   : > { %2127 = vrot.lane.b32.xlu0 %v4350_v26, %s5292_s3 }
 0x672   : > { %2075 = vrot.lane.b32.xlu1 %v4350_v26, %s5293_s8 }
 0x6a8   : > { %v1390_v60 = vpop.permute.xlu1 %1389 }
 0x6a9   : > { %3285 = vmatpush1.msk.msra.mxu0 %vm1393_vm6, %v1390_v60 }
 0x6aa   : > { %1441 = vmatprep.subr.mxu0 %v3844_v3  ;;  %v1388_v62 = vpop.permute.xlu0 %1387 }
 0x6ab   : > { %3286 = vmatpush1.msk.msra.mxu0 %vm1393_vm6, %v1388_v62  ;;  %vm1336_vm6 = vcmask 31744  }
 0x6ac   : > { %v1379_v0 = vpop.permute.xlu1 %1378  ;;  %1443 = vmatprep.subr.mxu0 %v3844_v3 }
 0x6ad   : > { %v1384_v1 = vsel %vm1382_vm3, %v1379_v0, 0.0  ;;  %v1534_v0 = vld [vmem:[%s5185_s10] sm:$0xff] }
 0x6ae   : > { %3287 = vmatpush1.msk.msra.mxu0 %vm1323_vm13, %v1384_v1  ;;  %v1377_v7 = vpop.permute.xlu0 %1376 }
 0x6af   : > { %v1383_v4 = vsel %vm1382_vm3, %v1377_v7, 0.0  ;;  %1445 = vmatprep.subr.mxu0 %v3844_v3  ;;  %vm1345_vm3 = vcmask 23552  }
 0x6b0   : > { %v1369_v5 = vpop.permute.xlu1 %1368  ;;  %3288 = vmatpush1.msk.msra.mxu0 %vm1323_vm13, %v1383_v4 }
 0x6b1   : > { %v1373_v8 = vsel %vm5252_vm9, %v1369_v5, 0.0  ;;  %1447 = vmatprep.subr.mxu0 %v3844_v3 }
 0x6b2   : > { %3289 = vmatpush1.msk.msra.mxu0 %vm1350_vm14, %v1373_v8  ;;  %v1367_v9 = vpop.permute.xlu0 %1366 }
 0x6b3   : > { %v1372_v11 = vsel %vm5252_vm9, %v1367_v9, 0.0  ;;  %1449 = vmatprep.subr.mxu0 %v3844_v3  ;;  %vm3295_vm9 = vmneg %vm1336_vm6 }
 0x6b4   : > { %v1359_v13 = vpop.permute.xlu1 %1358  ;;  %3290 = vmatpush1.msk.msra.mxu0 %vm1350_vm14, %v1372_v11 }
 0x6b5   : > { %1451 = vmatprep.subr.mxu0 %v3844_v3  ;;  %v1363_v17 = vsel %vm771_vm8, 0.0, %v1359_v13 }
 0x6b6   : > { %1452 = vmatpush1.msra.mxu0 %v4382_v45  ;;  %v1357_v14 = vpop.permute.xlu0 %1356  ;;  %v1302_v45 = vld [vmem:[%s5290_s24 + $0x20] sm:$0xff] }
 0x6b7   : > { %1453 = vmatprep.subr.mxu0 %v3844_v3  ;;  %v1362_v20 = vsel %vm771_vm8, 0.0, %v1357_v14 }
 0x6b8   : > { %v1342_v15 = vpop.permute.xlu1 %1341  ;;  %1454 = vmatpush1.msra.mxu0 %v4385_v46 }
 0x6b9   : > { %1455 = vmatprep.subr.mxu0 %v3844_v3  ;;  %v1347_v22 = vsel %vm1345_vm3, 0.0, %v1342_v15 }
 0x6ba   : > { %3291 = vmatpush1.msk.msra.mxu0 %vm1323_vm13, %v1363_v17  ;;  %v1340_v18 = vpop.permute.xlu0 %1339 }
 0x6bb   : > { %1457 = vmatprep.subr.mxu0 %v3844_v3  ;;  %v1346_v25 = vsel %vm1345_vm3, 0.0, %v1340_v18 }
 0x6bc   : > { %v1333_v21 = vpop.permute.xlu1 %1332  ;;  %3292 = vmatpush1.msk.msra.mxu0 %vm1323_vm13, %v1362_v20 }
 0x6bd   : > { %1459 = vmatprep.subr.mxu0 %v3844_v3 }
 0x6be   : > { %3293 = vmatpush1.msk.msra.mxu0 %vm1350_vm14, %v1347_v22  ;;  %v1331_v24 = vpop.permute.xlu0 %1330 }
 0x6bf   : > { %1461 = vmatprep.subr.mxu0 %v3844_v3 }
 0x6c0   : > { %v1316_v27 = vpop.permute.xlu1 %1315  ;;  %3294 = vmatpush1.msk.msra.mxu0 %vm1350_vm14, %v1346_v25  ;;  %v1535_v25 = vld [vmem:[%s5185_s10 + $0x8] sm:$0xff] }
 0x6c1   : > { %1463 = vmatprep.subr.mxu0 %v3844_v3  ;;  %v1321_v29 = vsel %vm1319_vm4, 0.0, %v1316_v27  ;;  %v3316_v27 = vld [vmem:[%s5187_s12 + $0x18] sm:$0xff] }
 0x6c2   : > { %3296 = vmatpush1.msk.msra.mxu0 %vm3295_vm9, %v1333_v21  ;;  %v1314_v28 = vpop.permute.xlu0 %1313 }
 0x6c3   : > { %1465 = vmatprep.subr.mxu0 %v3844_v3  ;;  %v1320_v34 = vsel %vm1319_vm4, 0.0, %v1314_v28  ;;  %vm1544_vm4 = vcmask 326656   ;;  %v1536_v28 = vld [vmem:[%s5185_s10 + $0x10] sm:$0xff] }
 0x6c4   : > { %3298 = vmatpush1.msk.msra.mxu0 %vm3295_vm9, %v1331_v24  ;;  %v1399_v31 = vpop.permute.xlu1 %1398  ;;  %3647 = vmatprep.mubr.msk.f32.mxu1 %vm1544_vm4, %v1534_v0  ;;  %vm5301_vm9 = vcmask 72704  }
 0x6c5   : > { %1467 = vmatprep.subr.mxu0 %v3844_v3  ;;  %v1404_v37 = vsel %vm1402_vm7, %v1399_v31, 0.0  ;;  %v1538_v31 = vld [vmem:[%s5185_s10 + $0x20] sm:$0xff] }
 0x6c6   : > { %3299 = vmatpush1.msk.msra.mxu0 %vm1323_vm13, %v1321_v29  ;;  %v1397_v35 = vpop.permute.xlu0 %1396  ;;  %v1537_v29 = vld [vmem:[%s5185_s10 + $0x18] sm:$0xff] }
 0x6c7   : > { %1469 = vmatprep.subr.mxu0 %v3844_v3  ;;  %v1403_v39 = vsel %vm1402_vm7, %v1397_v35, 0.0  ;;  %v1540_v35 = vld [vmem:[%s5185_s10 + $0x30] sm:$0xff]  ;;  %vm2189_vm7 = vcmask 261120  }
 0x6c8   : > { %3300 = vmatpush1.msk.msra.mxu0 %vm1323_vm13, %v1320_v34  ;;  %v1539_v34 = vld [vmem:[%s5185_s10 + $0x28] sm:$0xff]  ;;  %vm5305_vm13 = vcmask 449536  }
 0x6c9   : > { %1499 = vmatprep.subr.mxu0 %v3844_v3  ;;  %vm5306_vm3 = vmmov %vm5305_vm13 }
 0x6ca   : > { %3301 = vmatpush2.msk.msra.mxu0 %vm1350_vm14, %v1404_v37  ;;  %v1541_v37 = vld [vmem:[%s5185_s10 + $0x38] sm:$0xff] }
 0x6cb   : > { %1501 = vmatprep.subr.mxu0 %v3844_v3 }
 0x6cc   : > { %3302 = vmatpush2.msk.msra.mxu0 %vm1350_vm14, %v1403_v39  ;;  %v1675_v39 = vld [vmem:[%s5187_s12 + $0x8] sm:$0xff]  ;;  %vm5303_vm14 = vmmov %vm5301_vm9 }
 0x6cd   : > { %1504 = vmatmul.mubr.f32.vlgmr.msra.gmra.mxu0 %v1298_v38  ;;  %v3315_v38 = vld [vmem:[%s5187_s12 + $0x10] sm:$0xff] }
 0x6ce   : > { %3304 = vmatprep.mubr.msk.f32.mxu0 %vm739_vm10, %v1301_v41 }
 0x6d1   : > { %v1425_v44 = vpop.permute.xlu1 %1424  ;;  %1509 = vmatmul.mubr.f32.gmra.mxu0 %v1300_v42 }
 0x6d2   : > { %3305 = vmatprep.mubr.msk.f32.mxu0 %vm739_vm10, %v1303_v43 }
 0x6d3   : > { %v1420_v46 = vpop.permute.xlu0 %1419 }
 0x6d5   : > { %v1532_v48 = vpop.permute.xlu1 %1531  ;;  %1514 = vmatmul.mubr.f32.gmra.mxu0 %v1302_v45  ;;  %v1674_v45 = vld [vmem:[%s5187_s12] sm:$0xff] }
 0x6d6   : > { %3637 = vmatprep.subr.mxu1 %v1532_v48  ;;  %3306 = vmatprep.mubr.msk.f32.mxu0 %vm739_vm10, %v1305_v47  ;;  %v3322_v47 = vld [vmem:[%s5187_s12 + $0x28] sm:$0xff] }
 0x6d7   : > { %3638 = vmatpush3.msra.mxu1 %v1532_v48  ;;  %v1415_v50 = vpop.permute.xlu0 %1414 }
 0x6d9   : > { %v1410_v53 = vpop.permute.xlu1 %1409  ;;  %1519 = vmatmul.mubr.f32.gmra.mxu0 %v1304_v49  ;;  %v3321_v49 = vld [vmem:[%s5187_s12 + $0x20] sm:$0xff] }
 0x6db   : > { %v4526_v54 = vpop.permute.xlu0 %2020 }
 0x6dd   : > { %v4528_v55 = vpop.permute.xlu1 %2015 }
 0x6df   : > { %v2098_v57 = vpop.permute.xlu0 %2097 }
 0x6e0   : > { %v2106_v59 = vsel %vm771_vm8, 0.0, %v2098_v57 }
 0x6e1   : > { %v2150_v58 = vpop.permute.xlu1 %2149 }
 0x6e2   : > { %3547 = vmatprep.subr.msk.mxu0 %vm1083_vm0, %v2150_v58  ;;  %v3325_v58 = vld [vmem:[%s5187_s12 + $0x30] sm:$0xff] }
 0x6e3   : > { %3548 = vmatpush3.msk.msra.mxu0 %vm1040_vm2, %v2106_v59  ;;  %v2096_v60 = vpop.permute.xlu0 %2095 }
 0x6e4   : > { %v2105_v63 = vsel %vm771_vm8, 0.0, %v2096_v60 }
 0x6e5   : > { %v2148_v62 = vpop.permute.xlu1 %2147 }
 0x6e6   : > { %3549 = vmatprep.subr.msk.mxu0 %vm1083_vm0, %v2148_v62 }
 0x6e7   : > { %3550 = vmatpush3.msk.msra.mxu0 %vm1040_vm2, %v2105_v63 }
 0x78d   : > { %v1505_v1 = vpop.f32.mrf.mxu0 }
 0x78e   : > { %v1506_v20 = vadd.f32 %v1505_v1, %v1410_v53  ;;  %v3326_v53 = vld [vmem:[%s5187_s12 + $0x38] sm:$0xff] }
 0x78f   : > { %v1507_v7 = vpop.f32.mrf.mxu0 }
 0x790   : > { %v1524_v24 = vmax.f32 %v1506_v20, 0.0  ;;  %v2032_v20 = vld [vmem:[%s5189_s14 + $0x8] sm:$0xff] }
 0x791   : > { %v1510_v4 = vpop.f32.mrf.mxu0 }
 0x792   : > { %v1511_v17 = vadd.f32 %v1510_v4, %v1415_v50 }
 0x793   : > { %v1512_v5 = vpop.f32.mrf.mxu0 }
 0x794   : > { %v1525_v22 = vmax.f32 %v1511_v17, 0.0 }
 0x795   : > { %v1515_v8 = vpop.f32.mrf.mxu0 }
 0x796   : > { %v1516_v13 = vadd.f32 %v1515_v8, %v1420_v46 }
 0x797   : > { %v1517_v9 = vpop.f32.mrf.mxu0 }
 0x798   : > { %v1526_v21 = vmax.f32 %v1516_v13, 0.0 }
 0x799   : > { %v1520_v11 = vpop.f32.mrf.mxu0 }
 0x79a   : > { %v1521_v14 = vadd.f32 %v1520_v11, %v1425_v44 }
 0x79b   : > { %v1522_v15 = vpop.f32.mrf.mxu0 }
 0x79c   : > { %v1527_v18 = vmax.f32 %v1521_v14, 0.0 }
 0x79e   : > { %3639 = vmatprep.subr.mxu1 %v1527_v18 }
 0x79f   : > { %3640 = vmatpush3.msra.mxu1 %v1527_v18  ;;  %v2031_v18 = vld [vmem:[%s5189_s14] sm:$0xff] }
 0x7a0   : > { %3641 = vmatprep.subr.mxu1 %v1526_v21 }
 0x7a1   : > { %3642 = vmatpush3.msra.mxu1 %v1526_v21  ;;  %v2352_v21 = vld [vmem:[%s5191_s16] sm:$0xff] }
 0x7a2   : > { %3643 = vmatprep.subr.mxu1 %v1525_v22 }
 0x7a3   : > { %3644 = vmatpush3.msra.mxu1 %v1525_v22  ;;  %v2130_v22 = vpop.permute.xlu0 %2129 }
 0x7a4   : > { %3645 = vmatprep.subr.mxu1 %v1524_v24 }
 0x7a5   : > { %3646 = vmatpush3.msra.mxu1 %v1524_v24  ;;  %v2078_v24 = vpop.permute.xlu1 %2077 }
 0x7a6   : > { %3648 = vmatmul.mubr.msk.f32.vlgmr.msra.gmra.mxu1 %vm1544_vm4, %v1535_v25  ;;  %3659 = vmatprep.subr.mxu1 %v3316_v27 }
 0x7a7   : > { %3650 = vmatprep.mubr.msk.f32.mxu1 %vm1544_vm4, %v1536_v28  ;;  %3660 = vmatpush3.msra.mxu1 %v3316_v27  ;;  %v2128_v25 = vpop.permute.xlu0 %2127 }
 0x7a8   : > { %3661 = vmatprep.subr.mxu1 %v3315_v38 }
 0x7a9   : > { %3662 = vmatpush3.msra.mxu1 %v3315_v38  ;;  %v2076_v27 = vpop.permute.xlu1 %2075 }
 0x7aa   : > { %3651 = vmatmul.mubr.msk.f32.gmra.mxu1 %vm1544_vm4, %v1537_v29  ;;  %3666 = vmatprep.subr.mxu1 %v1675_v39 }
 0x7ab   : > { %3653 = vmatprep.mubr.msk.f32.mxu1 %vm1544_vm4, %v1538_v31 }
 0x7ae   : > { %3654 = vmatmul.mubr.msk.f32.gmra.mxu1 %vm1544_vm4, %v1539_v34 }
 0x7af   : > { %3656 = vmatprep.mubr.msk.f32.mxu1 %vm1544_vm4, %v1540_v35 }
 0x7b2   : > { %3657 = vmatmul.mubr.msk.f32.gmra.mxu1 %vm1544_vm4, %v1541_v37 }
 0x866   : > { %v3649_v41 = vpop.f32.mrf.mxu1 }
 0x868   : > { %v1635_v42 = vpop.f32.mrf.mxu1 }
 0x86a   : > { %v3652_v43 = vpop.f32.mrf.mxu1 }
 0x86c   : > { %v1645_v44 = vpop.f32.mrf.mxu1 }
 0x86d   : > { %3663 = vmatprep.mubr.msk.f32.mxu1 %vm739_vm10, %v1645_v44 }
 0x86e   : > { %3664 = vmatmul.mubr.msk.f32.vlgmr.msra.gmra.mxu1 %vm739_vm10, %v3652_v43  ;;  %v3655_v46 = vpop.f32.mrf.mxu1  ;;  %v2137_v43 = vsel %vm1077_vm12, %v2128_v25, 0.0  ;;  %v2461_v25 = vld [vmem:[%s5192_s17 + $0x58] sm:$0xff] }
 0x86f   : > { %3667 = vmatpush3.msra.mxu1 %v1675_v39  ;;  %3670 = vmatprep.mubr.msk.f32.mxu1 %vm739_vm10, %v1635_v42  ;;  %v2086_v42 = vsel %vm1054_vm1, 0.0, %v2078_v24  ;;  %v2462_v24 = vld [vmem:[%s5192_s17 + $0x60] sm:$0xff] }
 0x870   : > { %3668 = vmatprep.subr.mxu1 %v1674_v45  ;;  %v1655_v48 = vpop.f32.mrf.mxu1 }
 0x871   : > { %3669 = vmatpush3.msra.mxu1 %v1674_v45 }
 0x872   : > { %3671 = vmatmul.mubr.msk.f32.vlgmr.msra.gmra.mxu1 %vm739_vm10, %v3649_v41  ;;  %3673 = vmatprep.subr.mxu1 %v3322_v47  ;;  %v3658_v50 = vpop.f32.mrf.mxu1  ;;  %v2138_v41 = vsel %vm1077_vm12, %v2130_v22, 0.0  ;;  %v2464_v22 = vld [vmem:[%s5192_s17 + $0x70] sm:$0xff] }
 0x873   : > { %3674 = vmatpush3.msra.mxu1 %v3322_v47  ;;  %3677 = vmatprep.mubr.msk.f32.mxu1 %vm739_vm10, %v1655_v48 }
 0x874   : > { %3675 = vmatprep.subr.mxu1 %v3321_v49  ;;  %v1665_v57 = vpop.f32.mrf.mxu1 }
 0x875   : > { %3676 = vmatpush3.msra.mxu1 %v3321_v49 }
 0x876   : > { %3678 = vmatmul.mubr.msk.f32.vlgmr.msra.gmra.mxu1 %vm739_vm10, %v3655_v46  ;;  %3680 = vmatprep.subr.mxu1 %v3326_v53  ;;  %v2085_v46 = vsel %vm1054_vm1, 0.0, %v2076_v27  ;;  %v2460_v27 = vld [vmem:[%s5192_s17 + $0x50] sm:$0xff] }
 0x877   : > { %3681 = vmatpush3.msra.mxu1 %v3326_v53  ;;  %3684 = vmatprep.mubr.msk.f32.mxu1 %vm739_vm10, %v1665_v57 }
 0x878   : > { %3682 = vmatprep.subr.mxu1 %v3325_v58 }
 0x879   : > { %3683 = vmatpush3.msra.mxu1 %v3325_v58 }
 0x87a   : > { %3685 = vmatmul.mubr.msk.f32.vlgmr.msra.gmra.mxu1 %vm739_vm10, %v3658_v50 }
 0x92e   : > { %v3665_v59 = vpop.f32.mrf.mxu1 }
 0x930   : > { %v1751_v60 = vpop.f32.mrf.mxu1 }
 0x932   : > { %v3672_v62 = vpop.f32.mrf.mxu1 }
 0x933   : > { %v1838_v1 = vadd.f32 %v3672_v62, %v3665_v59 }
 0x934   : > { %v1832_v63 = vpop.f32.mrf.mxu1 }
 0x935   : > { %v1833_v9 = vadd.f32 %v1832_v63, %v1751_v60 }
 0x936   : > { %v3679_v0 = vpop.f32.mrf.mxu1 }
 0x937   : > { %v1926_v4 = vadd.f32 %v3679_v0, %v1838_v1 }
 0x938   : > { %v1916_v7 = vpop.f32.mrf.mxu1 }
 0x939   : > { %v1925_v14 = vadd.f32 %v1916_v7, %v1833_v9 }
 0x93a   : > { %v3686_v5 = vpop.f32.mrf.mxu1 }
 0x93b   : > { %v2012_v8 = vadd.f32 %v3686_v5, %v1926_v4 }
 0x93c   : > { %v2002_v13 = vpop.f32.mrf.mxu1 }
 0x93d   : > { %v4603_v11 = vadd.f32 %v4526_v54, %v2012_v8  ;;  %v2011_v15 = vadd.f32 %v2002_v13, %v1925_v14  ;;  %v2026_v54 = vld [vmem:[%s5188_s13 + $0x8] sm:$0xff]  ;;  %v2028_v14 = vld [vmem:[%s5188_s13 + $0x18] sm:$0xff] }
 0x93e   : > { %2260 = vmatprep.mubr.f32.mxu0 %v2026_v54 }
 0x93f   : > { %2145 = vrot.lane.b32.xlu1 %v4603_v11, %s5288_s28  ;;  %2093 = vrot.lane.b32.xlu0 %v4603_v11, %s5283_s27  ;;  %v4614_v17 = vadd.f32 %v4528_v55, %v2011_v15  ;;  %v2027_v55 = vld [vmem:[%s5188_s13 + $0x10] sm:$0xff] }
 0x940   : > { %3695 = vmatprep.mubr.msk.f32.mxu1 %vm2189_vm7, %v2027_v55 }
 0x943   : > { %2073 = vrot.lane.b32.xlu1 %v4603_v11, %s5293_s8  ;;  %2125 = vrot.lane.b32.xlu0 %v4603_v11, %s5292_s3 }
 0x947   : > { %2143 = vrot.lane.b32.xlu1 %v4614_v17, %s5288_s28  ;;  %2091 = vrot.lane.b32.xlu0 %v4614_v17, %s5283_s27  ;;  %s5298_s28 = smov 15  }
 0x94b   : > { %2059 = vrot.lane.b32.xlu1 %v4350_v26, %s5294_s5  ;;  %2061 = vrot.lane.b32.xlu0 %v4345_v23, %s5294_s5 }
 0x94f   : > { %2071 = vrot.lane.b32.xlu1 %v4614_v17, %s5293_s8  ;;  %2123 = vrot.lane.b32.xlu0 %v4614_v17, %s5292_s3  ;;  %s5295_s8 = smov 9   ;;  %s5316_s3 = smov 17  }
 0x953   : > { %2057 = vrot.lane.b32.xlu1 %v4603_v11, %s5294_s5  ;;  %2113 = vrot.lane.b32.xlu0 %v4603_v11, %s5280_s6 }
 0x957   : > { %2055 = vrot.lane.b32.xlu1 %v4614_v17, %s5294_s5  ;;  %2111 = vrot.lane.b32.xlu0 %v4614_v17, %s5280_s6  ;;  %s5297_s5 = smov 113  }
 0x95b   : > { %2039 = vrot.lane.b32.xlu1 %v4350_v26, %s5295_s8  ;;  %2041 = vrot.lane.b32.xlu0 %v4345_v23, %s5295_s8 }
 0x95f   : > { %2035 = vrot.lane.b32.xlu1 %v4614_v17, %s5295_s8  ;;  %2037 = vrot.lane.b32.xlu0 %v4603_v11, %s5295_s8  ;;  %s5315_s8 = smov 16  }
 0x963   : > { %2163 = vrot.lane.b32.xlu1 %v4350_v26, %s5296_s25  ;;  %2165 = vrot.lane.b32.xlu0 %v4345_v23, %s5296_s25 }
 0x967   : > { %2159 = vrot.lane.b32.xlu1 %v4614_v17, %s5296_s25  ;;  %2161 = vrot.lane.b32.xlu0 %v4603_v11, %s5296_s25  ;;  %s3783_s25 = scalar_lea.vmem %s3782_s21, 64 }
 0x96b   : > { %2181 = vperm.xlu1 %3776, %v2031_v18   ;;  %2186 = vperm.xlu0 %3770, %v2032_v20   ;;  %v2030_v18 = vld [vmem:[%s5188_s13 + $0x28] sm:$0xff]  ;;  %v2348_v20 = vld [vmem:[%s5190_s15] sm:$0xff] }
 0x96f   : > { %2941 = vrot.lane.b32.xlu1 %v4174_v61, %s5281_s1  ;;  %2819 = vperm.xlu0 %3770, %v2352_v21   ;;  %v2465_v21 = vld [vmem:[%s5192_s17 + $0x78] sm:$0xff] }
 0x973   : > { %2923 = vrot.lane.b32.xlu1 %v4158_v56, %s5297_s5  ;;  %2943 = vrot.lane.b32.xlu0 %v4158_v56, %s5281_s1 }
 0x977   : > { %2889 = vrot.lane.b32.xlu1 %v4174_v61, %s5283_s27  ;;  %2921 = vrot.lane.b32.xlu0 %v4174_v61, %s5297_s5 }
 0x97b   : > { %2869 = vrot.lane.b32.xlu1 %v4174_v61, %s5298_s28  ;;  %2891 = vrot.lane.b32.xlu0 %v4158_v56, %s5283_s27 }
 0x97f   : > { %2871 = vrot.lane.b32.xlu0 %v4158_v56, %s5298_s28 }
 0x9b1   : > { %v2146_v28 = vpop.permute.xlu1 %2145  ;;  %v2094_v29 = vpop.permute.xlu0 %2093 }
 0x9b2   : > { %v2104_v31 = vsel %vm771_vm8, 0.0, %v2094_v29  ;;  %3551 = vmatprep.subr.msk.mxu0 %vm1083_vm0, %v2146_v28  ;;  %v2459_v28 = vld [vmem:[%s5192_s17 + $0x48] sm:$0xff]  ;;  %v2458_v29 = vld [vmem:[%s5192_s17 + $0x40] sm:$0xff] }
 0x9b3   : > { %3552 = vmatpush3.msk.msra.mxu0 %vm1040_vm2, %v2104_v31  ;;  %v2457_v31 = vld [vmem:[%s5192_s17 + $0x38] sm:$0xff] }
 0x9b5   : > { %v2074_v34 = vpop.permute.xlu1 %2073  ;;  %v2126_v35 = vpop.permute.xlu0 %2125 }
 0x9b6   : > { %v2136_v47 = vsel %vm1077_vm12, %v2126_v35, 0.0  ;;  %v2084_v48 = vsel %vm1054_vm1, 0.0, %v2074_v34  ;;  %v2456_v34 = vld [vmem:[%s5192_s17 + $0x30] sm:$0xff]  ;;  %v2455_v35 = vld [vmem:[%s5192_s17 + $0x28] sm:$0xff] }
 0x9b9   : > { %v2144_v37 = vpop.permute.xlu1 %2143  ;;  %v2092_v38 = vpop.permute.xlu0 %2091 }
 0x9ba   : > { %v2103_v39 = vsel %vm771_vm8, 0.0, %v2092_v38  ;;  %3553 = vmatprep.subr.msk.mxu0 %vm1083_vm0, %v2144_v37  ;;  %vm5299_vm0 = vcmask 515072   ;;  %v2454_v37 = vld [vmem:[%s5192_s17 + $0x20] sm:$0xff]  ;;  %v2453_v38 = vld [vmem:[%s5192_s17 + $0x18] sm:$0xff] }
 0x9bb   : > { %3554 = vmatpush3.msk.msra.mxu0 %vm1040_vm2, %v2103_v39  ;;  %v2452_v39 = vld [vmem:[%s5192_s17 + $0x10] sm:$0xff] }
 0x9bc   : > { %3555 = vmatprep.subr.msk.mxu0 %vm1040_vm2, %v2138_v41 }
 0x9bd   : > { %v2060_v44 = vpop.permute.xlu1 %2059  ;;  %3556 = vmatpush3.msk.msra.mxu0 %vm1058_vm15, %v2086_v42  ;;  %v2062_v45 = vpop.permute.xlu0 %2061 }
 0x9be   : > { %3557 = vmatprep.subr.msk.mxu0 %vm1040_vm2, %v2137_v43 }
 0x9bf   : > { %3558 = vmatpush3.msk.msra.mxu0 %vm1058_vm15, %v2085_v46 }
 0x9c0   : > { %3559 = vmatprep.subr.msk.mxu0 %vm1040_vm2, %v2136_v47 }
 0x9c1   : > { %v2072_v49 = vpop.permute.xlu1 %2071  ;;  %3560 = vmatpush3.msk.msra.mxu0 %vm1058_vm15, %v2084_v48  ;;  %v2124_v50 = vpop.permute.xlu0 %2123 }
 0x9c2   : > { %v2083_v53 = vsel %vm1054_vm1, 0.0, %v2072_v49  ;;  %v2135_v57 = vsel %vm1077_vm12, %v2124_v50, 0.0  ;;  %vm5300_vm1 = vmmov %vm5299_vm0 }
 0x9c3   : > { %3561 = vmatprep.subr.msk.mxu0 %vm1040_vm2, %v2135_v57  ;;  %vm5302_vm12 = vmmov %vm5301_vm9 }
 0x9c4   : > { %3562 = vmatpush3.msk.msra.mxu0 %vm1058_vm15, %v2083_v53 }
 0x9c5   : > { %v2058_v58 = vpop.permute.xlu1 %2057  ;;  %3563 = vmatprep.subr.msk.mxu0 %vm1058_vm15, %v4367_v33  ;;  %v2114_v59 = vpop.permute.xlu0 %2113 }
 0x9c6   : > { %3564 = vmatpush3.msk.msra.mxu0 %vm4312_vm5, %v2062_v45  ;;  %v2118_v60 = vsel %vm5299_vm0, %v2114_v59, 0.0  ;;  %vm5312_vm0 = vcmask 916480  }
 0x9c7   : > { %3565 = vmatprep.subr.msk.mxu0 %vm1058_vm15, %v4372_v36 }
 0x9c8   : > { %3566 = vmatpush3.msk.msra.mxu0 %vm4312_vm5, %v2060_v44 }
 0x9c9   : > { %v2056_v62 = vpop.permute.xlu1 %2055  ;;  %3567 = vmatprep.subr.msk.mxu0 %vm1058_vm15, %v2118_v60  ;;  %v2112_v63 = vpop.permute.xlu0 %2111 }
 0x9ca   : > { %v2117_v33 = vsel %vm5300_vm1, %v2112_v63, 0.0  ;;  %3568 = vmatpush3.msk.msra.mxu0 %vm4312_vm5, %v2058_v58  ;;  %v2349_v63 = vld [vmem:[%s5190_s15 + $0x8] sm:$0xff]  ;;  %vm5313_vm1 = vmmov %vm5312_vm0 }
 0x9cb   : > { %3569 = vmatprep.subr.msk.mxu0 %vm1058_vm15, %v2117_v33  ;;  %v3386_v33 = vld [vmem:[%s5192_s17 + $0xf8] sm:$0xff] }
 0x9cc   : > { %3570 = vmatpush3.msk.msra.mxu0 %vm4312_vm5, %v2056_v62  ;;  %vm5304_vm5 = vmmov %vm5301_vm9 }
 0x9cd   : > { %v2040_v36 = vpop.permute.xlu1 %2039  ;;  %3571 = vmatprep.subr.mxu0 %v4345_v23  ;;  %v2042_v0 = vpop.permute.xlu0 %2041  ;;  %v2025_v23 = vld [vmem:[%s5188_s13] sm:$0xff] }
 0x9ce   : > { %v2050_v1 = vsel %vm5301_vm9, 0.0, %v2042_v0  ;;  %v2049_v7 = vsel %vm5302_vm12, 0.0, %v2040_v36  ;;  %v2350_v36 = vld [vmem:[%s5190_s15 + $0x10] sm:$0xff]  ;;  %vm5318_vm12 = vmmov %vm5312_vm0 }
 0x9cf   : > { %3572 = vmatpush3.msk.msra.mxu0 %vm1040_vm2, %v2050_v1  ;;  %v3385_v0 = vld [vmem:[%s5192_s17 + $0xf0] sm:$0xff]  ;;  %v3384_v1 = vld [vmem:[%s5192_s17 + $0xe8] sm:$0xff] }
 0x9d0   : > { %3573 = vmatprep.subr.mxu0 %v4350_v26  ;;  %v2029_v26 = vld [vmem:[%s5188_s13 + $0x20] sm:$0xff] }
 0x9d1   : > { %v2036_v4 = vpop.permute.xlu1 %2035  ;;  %3574 = vmatpush3.msk.msra.mxu0 %vm1040_vm2, %v2049_v7  ;;  %v2038_v5 = vpop.permute.xlu0 %2037  ;;  %v3383_v7 = vld [vmem:[%s5192_s17 + $0xe0] sm:$0xff] }
 0x9d2   : > { %v2048_v2 = vsel %vm5303_vm14, 0.0, %v2038_v5  ;;  %3575 = vmatprep.subr.mxu0 %v4603_v11  ;;  %v2047_v8 = vsel %vm5304_vm5, 0.0, %v2036_v4  ;;  %v2351_v4 = vld [vmem:[%s5190_s15 + $0x18] sm:$0xff]  ;;  %vm5319_vm14 = vmmov %vm5312_vm0  ;;  %vm5320_vm5 = vcmask 924672  }
 0x9d3   : > { %3576 = vmatpush3.msk.msra.mxu0 %vm1040_vm2, %v2048_v2  ;;  %v3382_v5 = vld [vmem:[%s5192_s17 + $0xd8] sm:$0xff]  ;;  %v3381_v2 = vld [vmem:[%s5192_s17 + $0xd0] sm:$0xff] }
 0x9d4   : > { %3577 = vmatprep.subr.mxu0 %v4614_v17 }
 0x9d5   : > { %v2164_v9 = vpop.permute.xlu1 %2163  ;;  %3578 = vmatpush3.msk.msra.mxu0 %vm1040_vm2, %v2047_v8  ;;  %v2166_v11 = vpop.permute.xlu0 %2165  ;;  %vm5307_vm2 = vmmov %vm5306_vm3  ;;  %v3379_v8 = vld [vmem:[%s5192_s17 + $0xc0] sm:$0xff] }
 0x9d6   : > { %v2174_v13 = vsel %vm5305_vm13, %v2166_v11, 0.0  ;;  %2261 = vmatmul.mubr.f32.vlgmr.msra.gmra.mxu0 %v2025_v23  ;;  %v2173_v15 = vsel %vm5306_vm3, %v2164_v9, 0.0  ;;  %vm5308_vm6 = vmmov %vm5307_vm2  ;;  %2576 = vmatprep.subr.mxu0 %v2465_v21  ;;  %v3380_v23 = vld [vmem:[%s5192_s17 + $0xc8] sm:$0xff]  ;;  %v3377_v9 = vld [vmem:[%s5192_s17 + $0xb0] sm:$0xff]  ;;  %vm5322_vm3 = vcmp.ge.s32.totalorder %v4091_v16, 0 }
 0x9d7   : > { %3687 = vmatprep.subr.msk.mxu1 %vm1058_vm15, %v2174_v13  ;;  %2265 = vmatprep.mubr.f32.mxu0 %v2029_v26  ;;  %v3378_v26 = vld [vmem:[%s5192_s17 + $0xb8] sm:$0xff]  ;;  %v3376_v11 = vld [vmem:[%s5192_s17 + $0xa8] sm:$0xff]  ;;  %v3403_v21 = vld [vmem:[%s5192_s17 + $0x170] sm:$0xff] }
 0x9d8   : > { %3688 = vmatpush3.msk.msra.mxu1 %vm1058_vm15, %v2174_v13  ;;  %2577 = vmatpush1.msra.mxu0 %v2464_v22  ;;  %v3375_v13 = vld [vmem:[%s5192_s17 + $0xa0] sm:$0xff]  ;;  %vm5321_vm13 = vmmov %vm5320_vm5 }
 0x9d9   : > { %v2160_v17 = vpop.permute.xlu1 %2159  ;;  %3689 = vmatprep.subr.msk.mxu1 %vm1058_vm15, %v2173_v15  ;;  %v2162_v52 = vpop.permute.xlu0 %2161  ;;  %2578 = vmatprep.subr.mxu0 %v2463_v51  ;;  %v3402_v51 = vld [vmem:[%s5192_s17 + $0x168] sm:$0xff]  ;;  %v2824_v16 = vld [vmem:[%s5193_s18] sm:$0xff] }
 0x9da   : > { %v2172_v54 = vsel %vm5307_vm2, %v2162_v52, 0.0  ;;  %2266 = vmatmul.mubr.f32.gmra.mxu0 %v2028_v14  ;;  %3690 = vmatpush3.msk.msra.mxu1 %vm1058_vm15, %v2173_v15  ;;  %v2171_v55 = vsel %vm5308_vm6, %v2160_v17, 0.0  ;;  %v3374_v14 = vld [vmem:[%s5192_s17 + $0x98] sm:$0xff]  ;;  %v3373_v15 = vld [vmem:[%s5192_s17 + $0x90] sm:$0xff]  ;;  %v3372_v17 = vld [vmem:[%s5192_s17 + $0x88] sm:$0xff]  ;;  %vm5323_vm2 = vcmp.ge.s32.totalorder %v4093_v19, 0 }
 0x9db   : > { %3691 = vmatprep.subr.msk.mxu1 %vm1058_vm15, %v2172_v54  ;;  %2624 = vmatprep.mubr.f32.mxu0 %v3844_v3  ;;  %v3371_v52 = vld [vmem:[%s5192_s17 + $0x80] sm:$0xff]  ;;  %vm5324_vm6 = vmmov %vm5320_vm5 }
 0x9dc   : > { %3692 = vmatpush3.msk.msra.mxu1 %vm1058_vm15, %v2172_v54  ;;  %2579 = vmatpush1.msra.mxu0 %v2462_v24  ;;  %v2451_v54 = vld [vmem:[%s5192_s17 + $0x8] sm:$0xff]  ;;  %v3401_v24 = vld [vmem:[%s5192_s17 + $0x160] sm:$0xff] }
 0x9dd   : > { %3693 = vmatprep.subr.msk.mxu1 %vm1058_vm15, %v2171_v55  ;;  %2580 = vmatprep.subr.mxu0 %v2461_v25  ;;  %v3420_v25 = vld [vmem:[%s5192_s17 + $0x1f0] sm:$0xff] }
 0x9de   : > { %3694 = vmatpush3.msk.msra.mxu1 %vm1058_vm15, %v2171_v55  ;;  %2581 = vmatpush1.msra.mxu0 %v2460_v27  ;;  %v3404_v55 = vld [vmem:[%s5192_s17 + $0x178] sm:$0xff]  ;;  %vm5309_vm15 = vcmask 523264  }
 0x9df   : > { %3696 = vmatmul.mubr.msk.f32.vlgmr.msra.gmra.mxu1 %vm2189_vm7, %v2030_v18  ;;  %2582 = vmatprep.subr.mxu0 %v2459_v28  ;;  %v2450_v18 = vld [vmem:[%s5192_s17] sm:$0xff]  ;;  %v3400_v28 = vld [vmem:[%s5192_s17 + $0x158] sm:$0xff]  ;;  %vm5310_vm4 = vmmov %vm5309_vm15 }
 0x9e0   : > { %3702 = vmatprep.mubr.msk.f32.mxu1 %vm739_vm10, %v2348_v20  ;;  %2583 = vmatpush1.msra.mxu0 %v2458_v29  ;;  %v3421_v20 = vld [vmem:[%s5192_s17 + $0x1f8] sm:$0xff]  ;;  %v3419_v29 = vld [vmem:[%s5192_s17 + $0x1e8] sm:$0xff]  ;;  %vm5311_vm7 = vmmov %vm5310_vm4 }
 0x9e1   : > { %2584 = vmatprep.subr.mxu0 %v2457_v31  ;;  %v3399_v31 = vld [vmem:[%s5192_s17 + $0x150] sm:$0xff]  ;;  %vm5314_vm9 = vmmov %vm5310_vm4 }
 0x9e2   : > { %2585 = vmatpush1.msra.mxu0 %v2456_v34  ;;  %v3418_v34 = vld [vmem:[%s5192_s17 + $0x1e0] sm:$0xff] }
 0x9e3   : > { %2586 = vmatprep.subr.mxu0 %v2455_v35  ;;  %v3398_v35 = vld [vmem:[%s5192_s17 + $0x148] sm:$0xff] }
 0x9e4   : > { %2587 = vmatpush1.msra.mxu0 %v2454_v37  ;;  %v3417_v37 = vld [vmem:[%s5192_s17 + $0x1d8] sm:$0xff] }
 0x9e5   : > { %2588 = vmatprep.subr.mxu0 %v2453_v38  ;;  %v3397_v38 = vld [vmem:[%s5192_s17 + $0x140] sm:$0xff] }
 0x9e6   : > { %2589 = vmatpush1.msra.mxu0 %v2452_v39  ;;  %v2187_v47 = vpop.permute.xlu0 %2186  ;;  %v2182_v48 = vpop.permute.xlu1 %2181  ;;  %v3416_v39 = vld [vmem:[%s5192_s17 + $0x1d0] sm:$0xff] }
 0x9e7   : > { %2590 = vmatprep.subr.mxu0 %v2451_v54 }
 0x9e8   : > { %2591 = vmatpush1.msra.mxu0 %v2450_v18 }
 0x9e9   : > { %2760 = vmatprep.subr.mxu0 %v3421_v20 }
 0xa96   : > { %v3579_v41 = vpop.f32.mrf.mxu0 }
 0xa98   : > { %v3580_v42 = vpop.f32.mrf.mxu0 }
 0xa99   : > { %v3581_v44 = vadd.f32 %v3580_v42, %v3579_v41  ;;  %v3396_v41 = vld [vmem:[%s5192_s17 + $0x138] sm:$0xff]  ;;  %v3415_v42 = vld [vmem:[%s5192_s17 + $0x1c8] sm:$0xff] }
 0xa9a   : > { %v3582_v43 = vpop.f32.mrf.mxu0 }
 0xa9b   : > { %v2263_v53 = vadd.f32 %v3581_v44, %v2182_v48  ;;  %v3414_v44 = vld [vmem:[%s5192_s17 + $0x1c0] sm:$0xff] }
 0xa9c   : > { %v3583_v45 = vpop.f32.mrf.mxu0  ;;  %v3393_v48 = vld [vmem:[%s5192_s17 + $0x120] sm:$0xff] }
 0xa9d   : > { %v3584_v46 = vadd.f32 %v3583_v45, %v3582_v43  ;;  %v3395_v43 = vld [vmem:[%s5192_s17 + $0x130] sm:$0xff]  ;;  %v3394_v45 = vld [vmem:[%s5192_s17 + $0x128] sm:$0xff] }
 0xa9f   : > { %v2268_v49 = vadd.f32 %v3584_v46, %v2187_v47  ;;  %v3697_v50 = vpop.f32.mrf.mxu1  ;;  %v3413_v46 = vld [vmem:[%s5192_s17 + $0x1b8] sm:$0xff]  ;;  %v2820_v47 = vpop.permute.xlu0 %2819 }
 0xaa1   : > { %v2343_v57 = vadd.f32 %v3697_v50, %v2268_v49  ;;  %v2337_v58 = vpop.f32.mrf.mxu1  ;;  %v3412_v49 = vld [vmem:[%s5192_s17 + $0x1b0] sm:$0xff]  ;;  %v3392_v50 = vld [vmem:[%s5192_s17 + $0x118] sm:$0xff] }
 0xaa2   : > { %v2338_v59 = vadd.f32 %v2337_v58, %v2263_v53  ;;  %v3411_v53 = vld [vmem:[%s5192_s17 + $0x1a8] sm:$0xff]  ;;  %v3410_v58 = vld [vmem:[%s5192_s17 + $0x1a0] sm:$0xff] }
 0xaa3   : > { %v2347_v60 = vmax.f32 %v2343_v57, 0.0  ;;  %v3391_v57 = vld [vmem:[%s5192_s17 + $0x110] sm:$0xff] }
 0xaa4   : > { %v2346_v62 = vmax.f32 %v2338_v59, 0.0 }
 0xaa5   : > { %3698 = vmatprep.subr.mxu1 %v2347_v60 }
 0xaa6   : > { %3699 = vmatpush3.msra.mxu1 %v2347_v60  ;;  %v3390_v60 = vld [vmem:[%s5192_s17 + $0x108] sm:$0xff] }
 0xaa7   : > { %3700 = vmatprep.subr.mxu1 %v2346_v62 }
 0xaa8   : > { %3701 = vmatpush3.msra.mxu1 %v2346_v62  ;;  %v3409_v62 = vld [vmem:[%s5192_s17 + $0x198] sm:$0xff] }
 0xaa9   : > { %3703 = vmatmul.mubr.msk.f32.vlgmr.msra.gmra.mxu1 %vm739_vm10, %v2349_v63  ;;  %2502 = vmatprep.subr.mxu1 %v3386_v33  ;;  %v3389_v63 = vld [vmem:[%s5192_s17 + $0x100] sm:$0xff]  ;;  %v3408_v33 = vld [vmem:[%s5192_s17 + $0x190] sm:$0xff] }
 0xaaa   : > { %3705 = vmatprep.mubr.msk.f32.mxu1 %vm739_vm10, %v2350_v36  ;;  %2503 = vmatpush1.msra.mxu1 %v3385_v0  ;;  %v3407_v36 = vld [vmem:[%s5192_s17 + $0x188] sm:$0xff]  ;;  %v2944_v0 = vpop.permute.xlu0 %2943 }
 0xaab   : > { %2504 = vmatprep.subr.mxu1 %v3384_v1  ;;  %v3406_v1 = vld [vmem:[%s5192_s17 + $0x180] sm:$0xff] }
 0xaac   : > { %2505 = vmatpush1.msra.mxu1 %v3383_v7 }
 0xaad   : > { %3706 = vmatmul.mubr.msk.f32.gmra.mxu1 %vm739_vm10, %v2351_v4  ;;  %2506 = vmatprep.subr.mxu1 %v3382_v5  ;;  %v2942_v4 = vpop.permute.xlu1 %2941 }
 0xaae   : > { %2507 = vmatpush1.msra.mxu1 %v3381_v2  ;;  %2550 = vmatprep.mubr.f32.mxu1 %v3844_v3  ;;  %v2946_v5 = vsel %vm5312_vm0, %v2942_v4, %v2944_v0  ;;  %vm5328_vm0 = vcmp.le.s32.totalorder %v4081_v10, 15  ;;  %v3062_v10 = vshrl.u32 %v705_v6, 7 }
 0xaaf   : > { %2508 = vmatprep.subr.mxu1 %v3380_v23 }
 0xab0   : > { %2509 = vmatpush1.msra.mxu1 %v3379_v8 }
 0xab1   : > { %2510 = vmatprep.subr.mxu1 %v3378_v26 }
 0xab2   : > { %2511 = vmatpush1.msra.mxu1 %v3377_v9 }
 0xab3   : > { %2512 = vmatprep.subr.mxu1 %v3376_v11 }
 0xab4   : > { %2513 = vmatpush1.msra.mxu1 %v3375_v13 }
 0xab5   : > { %2514 = vmatprep.subr.mxu1 %v3374_v14 }
 0xab6   : > { %2515 = vmatpush1.msra.mxu1 %v3373_v15 }
 0xab7   : > { %2516 = vmatprep.subr.mxu1 %v3372_v17 }
 0xab8   : > { %2517 = vmatpush1.msra.mxu1 %v3371_v52 }
 0xab9   : > { %2667 = vmatprep.subr.mxu1 %v3404_v55 }
 0xb69   : > { %v3704_v22 = vpop.f32.mrf.mxu1 }
 0xb6a   : > { %3387 = vmatmul.mubr.msk.f32.vlgmr.msra.gmra.mxu1 %vm5309_vm15, %v3704_v22  ;;  %v2825_v22 = vld [vmem:[%s5193_s18 + $0x8] sm:$0xff]  ;;  %vm5325_vm15 = vmmov %vm5320_vm5 }
 0xb6b   : > { %2668 = vmatpush1.msra.mxu1 %v3403_v21  ;;  %v2431_v27 = vpop.f32.mrf.mxu1  ;;  %2715 = vmatprep.mubr.f32.mxu1 %v3844_v3 }
 0xb6c   : > { %2669 = vmatprep.subr.mxu1 %v3402_v51  ;;  %3388 = vmatmul.mubr.msk.f32.vlgmr.msra.gmra.mxu0 %vm5310_vm4, %v2431_v27  ;;  %v3055_v51 = vld [vmem:[#allocation2] sm:$0x1]  ;;  %v2922_v27 = vpop.permute.xlu0 %2921  ;;  %vm5326_vm4 = vmmov %vm5322_vm3 }
 0xb6d   : > { %2670 = vmatpush1.msra.mxu1 %v3401_v24  ;;  %2761 = vmatpush1.msra.mxu0 %v3420_v25  ;;  %v3707_v59 = vpop.f32.mrf.mxu1  ;;  %v2826_v24 = vld [vmem:[%s5194_s19] sm:$0xff]  ;;  %v2924_v25 = vpop.permute.xlu1 %2923 }
 0xb6e   : > { %2671 = vmatprep.subr.mxu1 %v3400_v28  ;;  %2762 = vmatprep.subr.mxu0 %v3419_v29 }
 0xb6f   : > { %2672 = vmatpush1.msra.mxu1 %v3399_v31  ;;  %2763 = vmatpush1.msra.mxu0 %v3418_v34  ;;  %v2441_v7 = vpop.f32.mrf.mxu1 }
 0xb70   : > { %2673 = vmatprep.subr.mxu1 %v3398_v35  ;;  %2764 = vmatprep.subr.mxu0 %v3417_v37  ;;  %v2892_v29 = vpop.permute.xlu0 %2891 }
 0xb71   : > { %2674 = vmatpush1.msra.mxu1 %v3397_v38  ;;  %2765 = vmatpush1.msra.mxu0 %v3416_v39  ;;  %v2890_v28 = vpop.permute.xlu1 %2889 }
 0xb72   : > { %2675 = vmatprep.subr.mxu1 %v3396_v41  ;;  %2766 = vmatprep.subr.mxu0 %v3415_v42 }
 0xb73   : > { %2676 = vmatpush1.msra.mxu1 %v3395_v43  ;;  %2767 = vmatpush1.msra.mxu0 %v3414_v44  ;;  %v2932_v44 = vsel %vm5320_vm5, %v2924_v25, 0.0 }
 0xb74   : > { %2677 = vmatprep.subr.mxu1 %v3394_v45  ;;  %2768 = vmatprep.subr.mxu0 %v3413_v46  ;;  %v2872_v34 = vpop.permute.xlu0 %2871  ;;  %v2926_v45 = vsel %vm5321_vm13, %v2922_v27, %v2924_v25  ;;  %vm5334_vm13 = vmmov %vm5322_vm3  ;;  %v3054_v27 = vld [vmem:[%s5195_s20] sm:$0x1] }
 0xb75   : > { %2678 = vmatpush1.msra.mxu1 %v3393_v48  ;;  %2769 = vmatpush1.msra.mxu0 %v3412_v49  ;;  %v2870_v31 = vpop.permute.xlu1 %2869 }
 0xb76   : > { %2679 = vmatprep.subr.mxu1 %v3392_v50  ;;  %2770 = vmatprep.subr.mxu0 %v3411_v53 }
 0xb77   : > { %2680 = vmatpush1.msra.mxu1 %v3391_v57  ;;  %2771 = vmatpush1.msra.mxu0 %v3410_v58 }
 0xb78   : > { %2681 = vmatprep.subr.mxu1 %v3390_v60  ;;  %2772 = vmatprep.subr.mxu0 %v3409_v62  ;;  %v2900_v62 = vsel %vm771_vm8, 0.0, %v2890_v28 }
 0xb79   : > { %2682 = vmatpush1.msra.mxu1 %v3389_v63  ;;  %2773 = vmatpush1.msra.mxu0 %v3408_v33 }
 0xb7a   : > { %3405 = vmatmul.mubr.msk.f32.vlgmr.msra.gmra.mxu1 %vm5311_vm7, %v2441_v7  ;;  %2774 = vmatprep.subr.mxu0 %v3407_v36  ;;  %vm5327_vm7 = vmmov %vm5323_vm2 }
 0xb7b   : > { %3423 = vmatprep.subr.msk.mxu1 %vm5313_vm1, %v2944_v0  ;;  %2775 = vmatpush1.msra.mxu0 %v3406_v1  ;;  %vm5329_vm1 = vcmask 1039360  }
 0xb7c   : > { %2808 = vmatprep.mubr.f32.mxu0 %v3844_v3  ;;  %2982 = vmatpush1.msra.mxu1 %v2946_v5 }
 0xb7d   : > { %3422 = vmatmul.mubr.msk.f32.vlgmr.msra.gmra.mxu0 %vm5314_vm9, %v3707_v59  ;;  %3453 = vmatprep.mubr.msk.f32.mxu1 %vm739_vm10, %v2825_v22  ;;  %vm5330_vm9 = vmmov %vm5329_vm1 }
 0xc2a   : > { %v2552_v2 = vpop.f32.mrf.mxu1 }
 0xc2c   : > { %v2626_v23 = vpop.f32.mrf.mxu0  ;;  %v2554_v8 = vpop.f32.mrf.mxu1 }
 0xc2d   : > { %v2627_v26 = vadd.f32 %v2626_v23, %v2552_v2 }
 0xc2e   : > { %v2628_v11 = vpop.f32.mrf.mxu0 }
 0xc2f   : > { %v2629_v17 = vadd.f32 %v2628_v11, %v2554_v8 }
 0xc3a   : > { %v2717_v9 = vpop.f32.mrf.mxu1 }
 0xc3b   : > { %v2722_v13 = vadd.f32 %v2717_v9, %v2627_v26 }
 0xc3c   : > { %v2719_v14 = vpop.f32.mrf.mxu1 }
 0xc3d   : > { %v2810_v15 = vpop.f32.mrf.mxu0  ;;  %v2723_v54 = vadd.f32 %v2719_v14, %v2629_v17 }
 0xc3e   : > { %v2815_v52 = vadd.f32 %v2810_v15, %v2722_v13 }
 0xc3f   : > { %v2812_v18 = vpop.f32.mrf.mxu0 }
 0xc40   : > { %v5003_v55 = vadd.f32 %v2820_v47, %v2815_v52  ;;  %v2816_v20 = vadd.f32 %v2812_v18, %v2723_v54 }
 0xc42   : > { %2917 = vrot.lane.b32.xlu0 %v5003_v55, %s5297_s5  ;;  %2937 = vrot.lane.b32.xlu1 %v5003_v55, %s5281_s1  ;;  %v2823_v21 = vadd.f32 %v2820_v47, %v2816_v20 }
 0xc46   : > { %2905 = vrot.lane.b32.xlu0 %v5003_v55, %s5280_s6  ;;  %2885 = vrot.lane.b32.xlu1 %v5003_v55, %s5283_s27 }
 0xc4a   : > { %2939 = vrot.lane.b32.xlu0 %v2823_v21, %s5281_s1  ;;  %2865 = vrot.lane.b32.xlu1 %v5003_v55, %s5298_s28 }
 0xc4e   : > { %2855 = vrot.lane.b32.xlu0 %v4158_v56, %s5315_s8  ;;  %2919 = vrot.lane.b32.xlu1 %v2823_v21, %s5297_s5  ;;  %s5363_s5 = sld [smem:[#allocation22_spill]] }
 0xc52   : > { %2835 = vrot.lane.b32.xlu0 %v4158_v56, %s5316_s3  ;;  %2907 = vrot.lane.b32.xlu1 %v2823_v21, %s5280_s6  ;;  %s5317_s6 = smov 111  }
 0xc56   : > { %2887 = vrot.lane.b32.xlu0 %v2823_v21, %s5283_s27  ;;  %2853 = vrot.lane.b32.xlu1 %v4174_v61, %s5315_s8  ;;  %s3163_s27 = scalar_lea.sflag [#allocation4], %s689_s2 }
 0xc5a   : > { %2867 = vrot.lane.b32.xlu0 %v2823_v21, %s5298_s28  ;;  %2849 = vrot.lane.b32.xlu1 %v5003_v55, %s5315_s8 }
 0xc5e   : > { %2851 = vrot.lane.b32.xlu0 %v2823_v21, %s5315_s8  ;;  %2833 = vrot.lane.b32.xlu1 %v4174_v61, %s5316_s3  ;;  %s3177_s8 = sshll.u32 %s691_s29, 4  ;;  %s3178_s8 = int_to_ptr.vmem [resolvable:$true] %s3177_s8 }
 0xc5f   : > { %s3777_s28 = scalar_lea.vmem %s3178_s8, 32  ;;  %p3784_p0 = scmp.lt.s32.totalorder %s3178_s8, %s3782_s21 }
 0xc60   : > { %p3778_p11 = scmp.ne.s32.totalorder %s3178_s8, %s3777_s28  ;;  %p3785_p1 = scmp.lt.s32.totalorder %s3783_s25, %s3777_s28 }
 0xc62   : > { %2831 = vrot.lane.b32.xlu0 %v2823_v21, %s5316_s3  ;;  %2829 = vrot.lane.b32.xlu1 %v5003_v55, %s5316_s3  ;;  %p3779_p12 = pnand %p3778_p11, %p4019_p5  ;;  %p3786_p2 = por %p3785_p1, %p3784_p0 }
 0xc64   : > { %p3780_p13 = pneg %p3779_p12 }
 0xc66   : > { %2957 = vrot.lane.b32.xlu0 %v4174_v61, %s5317_s6  ;;  %2959 = vrot.lane.b32.xlu1 %v4158_v56, %s5317_s6  ;;  %p3787_p3 = pnand %p3786_p2, %p3780_p13 }
 0xc6a   : > { %2953 = vrot.lane.b32.xlu0 %v5003_v55, %s5317_s6  ;;  %2955 = vrot.lane.b32.xlu1 %v2823_v21, %s5317_s6  ;;  %s3175_s6 = scalar_lea.hbm %s5363_s5, %s3461_s4 }
 0xc6e   : > { %3058 = vperm.xlu0 %3770, %v3055_v51   ;;  %2975 = vperm.xlu1 %3776, %v2826_v24  }
 0xcb4   : > { %v2938_v35 = vpop.permute.xlu1 %2937  ;;  %v2918_v37 = vpop.permute.xlu0 %2917 }
 0xcb8   : > { %v2886_v38 = vpop.permute.xlu1 %2885  ;;  %v2906_v39 = vpop.permute.xlu0 %2905 }
 0xcbc   : > { %v2866_v41 = vpop.permute.xlu1 %2865  ;;  %v2940_v42 = vpop.permute.xlu0 %2939 }
 0xcbd   : > { %v2945_v43 = vsel %vm5318_vm12, %v2938_v35, %v2940_v42  ;;  %3424 = vmatprep.subr.msk.mxu1 %vm5319_vm14, %v2940_v42  ;;  %vm5331_vm12 = vcmp.le.s32.totalorder %v4085_v12, 15  ;;  %vm5332_vm14 = vmmov %vm5328_vm0 }
 0xcbe   : > { %2984 = vmatpush1.msra.mxu1 %v2945_v43  ;;  %vm5333_vm5 = vmmov %vm5331_vm12 }
 0xcbf   : > { %3425 = vmatprep.subr.msk.mxu1 %vm5322_vm3, %v2932_v44  ;;  %vm5335_vm3 = vmmov %vm5323_vm2 }
 0xcc0   : > { %v2920_v46 = vpop.permute.xlu1 %2919  ;;  %3426 = vmatpush1.msk.msra.mxu1 %vm5323_vm2, %v2926_v45  ;;  %v2856_v47 = vpop.permute.xlu0 %2855  ;;  %vm5336_vm2 = vmmov %vm5326_vm4 }
 0xcc1   : > { %v2925_v48 = vsel %vm5324_vm6, %v2918_v37, %v2920_v46  ;;  %v2931_v49 = vsel %vm5325_vm15, %v2920_v46, 0.0  ;;  %vm5337_vm6 = vcmask 121856   ;;  %vm5338_vm15 = vmmov %vm5335_vm3 }
 0xcc2   : > { %3427 = vmatprep.subr.msk.mxu1 %vm5326_vm4, %v2931_v49  ;;  %vm5339_vm4 = vmmov %vm5337_vm6 }
 0xcc3   : > { %3428 = vmatpush1.msk.msra.mxu1 %vm5327_vm7, %v2925_v48  ;;  %v2880_v36 = vsel %vm5339_vm4, 0.0, %v2870_v31  ;;  %vm5340_vm7 = vmmov %vm5328_vm0 }
 0xcc4   : > { %v2908_v50 = vpop.permute.xlu1 %2907  ;;  %3429 = vmatprep.subr.msk.mxu1 %vm5328_vm0, %v4251_v30  ;;  %v2836_v53 = vpop.permute.xlu0 %2835  ;;  %v2894_v30 = vsel %vm771_vm8, %v2890_v28, %v2892_v29  ;;  %vm5341_vm0 = vmmov %vm5339_vm4  ;;  %v3063_v28 = vsub.s32 0, %v3062_v10 }
 0xcc5   : > { %v2909_v57 = vsel %vm5329_vm1, %v2906_v39, %v2908_v50  ;;  %v2912_v58 = vsel %vm5330_vm9, %v2908_v50, 0.0  ;;  %3430 = vmatpush1.msk.msra.mxu1 %vm5331_vm12, %v4254_v32  ;;  %vm5342_vm1 = vmmov %vm5333_vm5 }
 0xcc6   : > { %3431 = vmatprep.subr.msk.mxu1 %vm5332_vm14, %v2912_v58  ;;  %vm5344_vm9 = vmmov %vm5340_vm7  ;;  %vm5346_vm14 = vcmask 138240  }
 0xcc7   : > { %3432 = vmatpush1.msk.msra.mxu1 %vm5333_vm5, %v2909_v57  ;;  %vm5345_vm12 = vmmov %vm5342_vm1 }
 0xcc8   : > { %v2854_v59 = vpop.permute.xlu1 %2853  ;;  %2993 = vmatprep.subr.mxu1 %v4158_v56  ;;  %v2888_v60 = vpop.permute.xlu0 %2887  ;;  %v2899_v56 = vsel %vm771_vm8, 0.0, %v2886_v38  ;;  %vm5347_vm5 = vmmov %vm5346_vm14 }
 0xcc9   : > { %2994 = vmatpush1.msra.mxu1 %v4174_v61  ;;  %v2893_v33 = vsel %vm771_vm8, %v2886_v38, %v2888_v60  ;;  %v2874_v61 = vsel %vm5337_vm6, %v2870_v31, %v2872_v34  ;;  %vm5343_vm8 = vmmov %vm5341_vm0  ;;  %v2858_v5 = vsel %vm739_vm10, %v2854_v59, %v2856_v47 }
 0xcca   : > { %2995 = vmatprep.subr.mxu1 %v2823_v21  ;;  %v2879_v4 = vsel %vm5343_vm8, 0.0, %v2866_v41  ;;  %vm5358_vm8 = vmmov %vm5345_vm12 }
 0xccb   : > { %2996 = vmatpush1.msra.mxu1 %v5003_v55 }
 0xccc   : > { %v2850_v32 = vpop.permute.xlu1 %2849  ;;  %3433 = vmatprep.subr.msk.mxu1 %vm5334_vm13, %v2894_v30  ;;  %v2868_v63 = vpop.permute.xlu0 %2867  ;;  %vm5348_vm13 = vmmov %vm5336_vm2 }
 0xccd   : > { %3434 = vmatpush1.msk.msra.mxu1 %vm5335_vm3, %v2900_v62  ;;  %v2873_v7 = vsel %vm5341_vm0, %v2866_v41, %v2868_v63  ;;  %vm5349_vm3 = vmmov %vm5347_vm5 }
 0xcce   : > { %3435 = vmatprep.subr.msk.mxu1 %vm5336_vm2, %v2893_v33  ;;  %vm5350_vm2 = vmmov %vm5338_vm15 }
 0xccf   : > { %3436 = vmatpush1.msk.msra.mxu1 %vm5338_vm15, %v2899_v56  ;;  %vm5351_vm6 = vmmov %vm5349_vm3  ;;  %vm5353_vm15 = vcmask 908288  }
 0xcd0   : > { %v2834_v0 = vpop.permute.xlu1 %2833  ;;  %3437 = vmatprep.subr.msk.mxu1 %vm5340_vm7, %v2874_v61  ;;  %v2852_v1 = vpop.permute.xlu0 %2851  ;;  %vm5355_vm4 = vmmov %vm5353_vm15 }
 0xcd1   : > { %3438 = vmatpush1.msk.msra.mxu1 %vm5342_vm1, %v2880_v36  ;;  %v2857_v8 = vsel %vm739_vm10, %v2850_v32, %v2852_v1  ;;  %v2838_v26 = vsel %vm5346_vm14, %v2834_v0, %v2836_v53  ;;  %v2844_v9 = vsel %vm5347_vm5, 0.0, %v2834_v0  ;;  %vm5352_vm10 = vmmov %vm5348_vm13  ;;  %vm5361_vm14 = vcmask 64512  }
 0xcd2   : > { %3439 = vmatprep.subr.msk.mxu1 %vm5344_vm9, %v2873_v7  ;;  %vm5356_vm0 = vmmov %vm5355_vm4  ;;  %vm3159_vm5 = vcmp.lt.s32.totalorder %v705_v6, 256 }
 0xcd3   : > { %3440 = vmatpush1.msk.msra.mxu1 %vm5345_vm12, %v2879_v4  ;;  %vm5357_vm1 = vmmov %vm5356_vm0 }
 0xcd4   : > { %v2830_v2 = vpop.permute.xlu1 %2829  ;;  %3005 = vmatprep.subr.mxu1 %v2858_v5  ;;  %v2832_v23 = vpop.permute.xlu0 %2831  ;;  %vm5359_vm9 = vmmov %vm5340_vm7 }
 0xcd5   : > { %3442 = vmatpush1.msk.msra.mxu1 %vm4129_vm11, %v2854_v59  ;;  %v2837_v14 = vsel %vm5349_vm3, %v2830_v2, %v2832_v23  ;;  %v2843_v15 = vsel %vm5351_vm6, 0.0, %v2830_v2  ;;  %vm5360_vm12 = vmmov %vm5358_vm8 }
 0xcd6   : > { %3007 = vmatprep.subr.mxu1 %v2857_v8 }
 0xcd7   : > { %3444 = vmatpush1.msk.msra.mxu1 %vm4129_vm11, %v2850_v32  ;;  %vm5354_vm11 = vmmov %vm5350_vm2 }
 0xcd8   : > { %v2960_v11 = vpop.permute.xlu1 %2959  ;;  %3445 = vmatprep.subr.msk.mxu1 %vm5348_vm13, %v2838_v26  ;;  %v2958_v13 = vpop.permute.xlu0 %2957 }
 0xcd9   : > { %3446 = vmatpush1.msk.msra.mxu1 %vm5350_vm2, %v2844_v9  ;;  %v2968_v40 = vsel %vm5353_vm15, %v2960_v11, 0.0  ;;  %v2962_v17 = vsel %vm5355_vm4, %v2958_v13, %v2960_v11 }
 0xcda   : > { %3447 = vmatprep.subr.msk.mxu1 %vm5352_vm10, %v2837_v14 }
 0xcdb   : > { %3448 = vmatpush1.msk.msra.mxu1 %vm5354_vm11, %v2843_v15 }
 0xcdc   : > { %v2956_v52 = vpop.permute.xlu1 %2955  ;;  %3449 = vmatprep.subr.msk.mxu1 %vm5340_vm7, %v2968_v40  ;;  %v2954_v54 = vpop.permute.xlu0 %2953 }
 0xcdd   : > { %v2967_v55 = vsel %vm5356_vm0, %v2956_v52, 0.0  ;;  %v2961_v18 = vsel %vm5357_vm1, %v2954_v54, %v2956_v52  ;;  %3450 = vmatpush2.msk.msra.mxu1 %vm5358_vm8, %v2962_v17 }
 0xcde   : > { %3451 = vmatprep.subr.msk.mxu1 %vm5359_vm9, %v2967_v55 }
 0xcdf   : > { %3452 = vmatpush2.msk.msra.mxu1 %vm5360_vm12, %v2961_v18 }
 0xce0   : > { %3046 = vmatmul.mubr.f32.vlgmr.msra.gmra.mxu1 %v2824_v16 }
 0xce1   : > { %3132 = vmatprep.mubr.f32.mxu1 %v3844_v3  ;;  %v3861_v3 = vmov 1966171168  }
 0xce2   : > { %v3143_v12 = vunpack.c.l.s4 %v3861_v3 }
 0xce4   : > { %v3144_v31 = vunpack.c.0.s8 %v3143_v12 }
 0xce6   : > { %v3147_v41 = vsub.s32 %v3144_v31, %v3062_v10 }
 0xce9   : > { %v2976_v20 = vpop.permute.xlu1 %2975  ;;  %v3059_v29 = vpop.permute.xlu0 %3058 }
 0xcea   : > { %v3064_v35 = vrot.slane %v3059_v29, %v3063_v28 }
 0xda0   : > { %v3047_v19 = vpop.f32.mrf.mxu1 }
 0xda1   : > { %v3048_v21 = vadd.f32 %v3047_v19, %v2976_v20 }
 0xda2   : > { %v3049_v22 = vpop.f32.mrf.mxu1 }
 0xda3   : > { %v3050_v51 = vadd.f32 %v3049_v22, %v2976_v20  ;;  %v3052_v25 = vmax.f32 %v3048_v21, 0.0 }
 0xda5   : > { %v3053_v24 = vmax.f32 %v3050_v51, 0.0 }
 0xda7   : > { %3098 = vmatprep.subr.mxu1 %v3053_v24 }
 0xda8   : > { %3099 = vmatpush1.msra.mxu1 %v3052_v25 }
 0xda9   : > { %3454 = vmatmul.mubr.msk.f32.vlgmr.msra.gmra.mxu1 %vm5361_vm14, %v3054_v27 }
 0xe69   : > { %v3134_v34 = vpop.f32.mrf.mxu1 }
 0xe6a   : > { %v3135_v38 = vadd.f32 %v3134_v34, %v3064_v35 }
 0xe6b   : > { %v3136_v37 = vpop.f32.mrf.mxu1 }
 0xe6c   : > { %v3137_v39 = vadd.f32 %v3136_v37, %v3064_v35 }
 0xe6e   : > { %v3141_v42 = vcombine.low %v3135_v38, %v3137_v39 }
 0xe70   : > { %v3148_v43 = vrot.slane %v3141_v42, %v3147_v41 }
 0xe72   : > { %v3155_v44 = vrot.slane %v3148_v43, %v3147_v41 }
 0xe74   : > { %3161 = vst.msk [vmem:[%s691_s29] sm:$0x3] %vm3159_vm5, %v3155_v44 }
 0xe75   : > { %3790 = shalt.err (!%p3787_p3)
}
 0xe76   : > { %s3791_s26 = scalar_lea.hbm %s3175_s6, 32  ;;  %s3795_s23 = scalar_lea.hbm %s5363_s5, 64 }
 0xe77   : > { %p3792_p4 = scmp.ne.s32.totalorder %s3175_s6, %s3791_s26  ;;  %p3796_p9 = scmp.lt.s32.totalorder %s3175_s6, %s5363_s5 }
 0xe78   : > { %p3797_p10 = scmp.lt.s32.totalorder %s3795_s23, %s3791_s26 }
 0xe79   : > { %p3793_p7 = pnand %p3792_p4, %p4019_p5 }
 0xe7a   : > { %p3798_p11 = por %p3797_p10, %p3796_p9 }
 0xe7b   : > { %p3794_p8 = pneg %p3793_p7 }
 0xe7d   : > { %p3799_p12 = pnand %p3798_p11, %p3794_p8 }
 0xe7f   : > { %3802 = shalt.err (!%p3799_p12)
}
 0xe80   : > { %3708 = dma.vmem_to_hbm [thread:$0]  (%p4019_p5), %s3178_s8, 32, %s3175_s6, %s3163_s27  }
 0xe81 PF: > { %s5364_s3 = sld [smem:[#allocation8_spill]] }
 0xe82   : > { %s5365_s1 = sld [smem:[#allocation6_spill]] }
 0xe87   : > { %p3714_p13 = scmp.ge.s32.totalorder %s5364_s3, 2 }
 0xe88   : > { %s3189_s22 = sand.u32 1, %s5365_s1  }
 0xe89   : > { %p3711_p0 = pnand %p3714_p13, %p4023_p6  ;;  %s3190_s21 = scalar_lea.sflag [#allocation4], %s3189_s22 }
 0xe8b   : > { %p3712_p1 = pneg %p3711_p0 }
 0xe8d   : > { %3820 = dma.done.wait (%p3712_p1), %s3190_s21, 32  }
 0xe8e   : > { %3822 = vsyncadd (%p3712_p1), %s3190_s21, 4294967264  ;;  %s5367_s0 = sld [smem:[#allocation9_spill]]  ;;  %s5370_s29 = smov %s3829_s30 }
 0xe8f   : > { %s5368_s25 = sld [smem:[#allocation7_spill]] }
 0xe90   : > { %s5369_s4 = sld [smem:[#allocation10_spill]] }
 0xe94   : > { %p34_p2 = scmp.ge.s32.totalorder %s5367_s0, 4  }
 0xe95   : > { %s5371_s30 = smov %s5368_s25 }
 0xe96   :  { %36 = sbr.rel (!%p34_p2) target bundleno = 14 (0xe), region = 152 }
 0xe9b   :  { %3195 = vsyncpa [#allocation4], 1 }
 0xe9c   :  { %3197 = vsyncpa [#allocation4 + $0x1], 1 }

</bundles_post_ra>
